<compile_context>
chip_gen: v7x
topology: tpu7x:2x2x1
jax: 0.10.0
libtpu: 0.0.40
codegen_flags: <defaults>
</compile_context>

<pallas_src>
import functools

import numpy as np
import jax
import jax.numpy as jnp
from jax.experimental import pallas as pl
from jax.experimental.pallas import tpu as pltpu


def cbam_kernel(x_ref, w1_ref, w2_ref, wt_ref, o_ref, *, bt, c, cr, hw, k, offs):
    # x_ref : (bt, c, hw)   channels on sublanes, flattened spatial on lanes
    # w1_ref: (cr, c)       shared 1x1-conv reduce weight (fc[0])
    # w2_ref: (c, cr)       shared 1x1-conv expand weight (fc[2])
    # wt_ref: (k*k, 2*hw)   per-tap conv-weight * valid-mask, [avg | max] halves
    xf = x_ref[...].astype(jnp.float32)                           # (bt, c, hw)

    # ---------------- Channel attention ----------------
    avg_p = jnp.sum(xf, axis=2, keepdims=True) * (1.0 / hw)       # (bt, c, 1) AdaptiveAvgPool2d(1)
    max_p = jnp.max(xf, axis=2, keepdims=True)                    # (bt, c, 1) AdaptiveMaxPool2d(1)
    # Stack [avg | max] as two lane columns so the shared MLP runs once per tile.
    lane2 = jax.lax.broadcasted_iota(jnp.int32, (bt, c, 2), 2)
    pooled = jnp.where(lane2 == 0, avg_p, max_p)                  # (bt, c, 2)

    # Batched (bt, m, k) x (bt, k, n) matmuls with the original small weights
    # (no block-diagonal kron; work and VMEM stay linear in bt).
    w1b = jnp.broadcast_to(w1_ref[...].astype(jnp.float32), (bt, cr, c))
    w2b = jnp.broadcast_to(w2_ref[...].astype(jnp.float32), (bt, c, cr))
    h = jnp.maximum(
        jnp.einsum('brc,bct->brt', w1b, pooled,
                   preferred_element_type=jnp.float32), 0.0)       # (bt, cr, 2)
    y = jnp.einsum('bcr,brt->bct', w2b, h,
                   preferred_element_type=jnp.float32)             # (bt, c, 2)
    ca = jax.nn.sigmoid(y[:, :, 0:1] + y[:, :, 1:2])               # (bt, c, 1)

    # ---------------- Spatial attention ----------------
    # x*ca is only needed for these two reductions -- it does not stay live
    # across the tap loop (the final output re-reads the input tile).
    x_ca = xf * ca                                                 # (bt, c, hw)
    avg_sp = jnp.sum(x_ca, axis=1) * (1.0 / c)                     # (bt, hw) channel mean
    max_sp = jnp.max(x_ca, axis=1)                                 # (bt, hw) channel max

    # Pack [avg | max] side-by-side along lanes: ONE roll per tap covers both.
    sp = jnp.concatenate([avg_sp, max_sp], axis=1)                 # (bt, 2*hw)

    # 7x7 'same' conv == 49-tap shifted accumulate.  For tap t with flat source
    # offset d = offs[t]: out[p] += w[t] * in[p + d] (zero outside the image).
    # The weight table is already zeroed wherever the source pixel is invalid,
    # so circular wrap (including wrap between the avg and max halves) never
    # contributes.
    n2 = 2 * hw
    acc = jnp.zeros((bt, n2), jnp.float32)
    for t in range(k * k):
        sh = (-offs[t]) % n2
        r = pltpu.roll(sp, sh, axis=1) if sh else sp
        acc = acc + r * wt_ref[pl.ds(t, 1), :]
    sa = jax.nn.sigmoid(acc[:, :hw] + acc[:, hw:])                 # (bt, hw)

    # Single full-tile, lane-dense store: out = x * (ca * sa).
    o_ref[...] = (xf * (ca * sa[:, None, :])).astype(o_ref.dtype)


@functools.lru_cache(maxsize=None)
def _tap_masks_and_offsets(H, W, K):
    """Per-tap validity masks (K*K, H*W) and flat source offsets for a KxK
    'same'-padded cross-correlation on an HxW image (PyTorch Conv2d order)."""
    pad = K // 2
    HW = H * W
    ys, xs = np.divmod(np.arange(HW, dtype=np.int32), W)
    masks = np.zeros((K * K, HW), np.float32)
    offs = []
    for i in range(K):
        for j in range(K):
            di, dj = i - pad, j - pad
            t = i * K + j
            valid = ((ys + di >= 0) & (ys + di < H) &
                     (xs + dj >= 0) & (xs + dj < W))
            masks[t] = valid.astype(np.float32)
            offs.append(di * W + dj)
    return masks, tuple(offs)


def _vmem_capacity_bytes():
    try:
        info = pltpu.get_tpu_info()
        cap = getattr(info, "vmem_capacity_bytes", None)
        if cap:
            return int(cap)
    except Exception:
        pass
    return 128 << 20


def _num_tensorcores():
    """Only keep >=2 grid steps on chips with >1 TensorCore (megacore)."""
    try:
        kind = jax.devices()[0].device_kind.lower()
        if ("lite" in kind) or ("v5e" in kind) or ("v6e" in kind):
            return 1
    except Exception:
        pass
    return 2


def _choose_block_batch(B, bytes_per_batch, budget_bytes, min_steps):
    """Largest divisor of B whose tile fits the budget; on multi-TC chips keep
    at least `min_steps` grid steps so both cores get work."""
    cap = max(1, budget_bytes // max(1, bytes_per_batch))
    if min_steps > 1 and B >= min_steps:
        cap = min(cap, B // min_steps)
    cap = max(1, min(cap, B))
    for bt in range(cap, 0, -1):
        if B % bt == 0:
            return bt
    return 1


def cbam_forward(x, w1, w2, w_sa):
    # x   : (B, C, H, W)  NCHW, like PyTorch (f32 or bf16)
    # w1  : (C//8, C)     Conv2d(C, C//8, 1, bias=False).weight squeezed
    # w2  : (C, C//8)     Conv2d(C//8, C, 1, bias=False).weight squeezed
    # w_sa: (1, 2, 7, 7)  Conv2d(2, 1, 7, padding=3, bias=False).weight
    B, C, H, W = x.shape
    HW = H * W
    Cr = w1.shape[0]
    K = w_sa.shape[-1]

    masks_np, offs = _tap_masks_and_offsets(H, W, K)               # cached per (H, W, K)
    mask = jnp.asarray(masks_np)                                   # (K*K, HW)
    wa = w_sa[0, 0].reshape(K * K, 1).astype(jnp.float32) * mask   # avg-channel taps
    wm = w_sa[0, 1].reshape(K * K, 1).astype(jnp.float32) * mask   # max-channel taps
    w_tbl = jnp.concatenate([wa, wm], axis=1)                      # (K*K, 2*HW)

    vmem_cap = _vmem_capacity_bytes()
    budget = (5 << 20) if vmem_cap <= (64 << 20) else (8 << 20)    # leave headroom on 64-MiB VMEM
    min_steps = _num_tensorcores()
    bytes_per_batch = C * HW * max(4, int(np.dtype(x.dtype).itemsize))
    Bt = _choose_block_batch(B, bytes_per_batch, budget, min_steps)

    tile_f32 = Bt * C * HW * 4
    tbl_bytes = int(w_tbl.size) * 4
    vmem_limit = int(min(vmem_cap,
                         max(32 << 20, 6 * tile_f32 + 2 * tbl_bytes + (4 << 20))))

    x3 = x.reshape(B, C, HW)
    kern = functools.partial(cbam_kernel, bt=Bt, c=C, cr=Cr, hw=HW, k=K, offs=offs)

    out = pl.pallas_call(
        kern,
        out_shape=jax.ShapeDtypeStruct((B, C, HW), x.dtype),
        grid_spec=pltpu.PrefetchScalarGridSpec(
            num_scalar_prefetch=0,
            grid=(B // Bt,),
            in_specs=[
                pl.BlockSpec((Bt, C, HW), lambda b: (b, 0, 0)),
                pl.BlockSpec((Cr, C), lambda b: (0, 0)),
                pl.BlockSpec((C, Cr), lambda b: (0, 0)),
                pl.BlockSpec((K * K, 2 * HW), lambda b: (0, 0)),
            ],
            out_specs=pl.BlockSpec((Bt, C, HW), lambda b: (b, 0, 0)),
        ),
        compiler_params=pltpu.CompilerParams(
            dimension_semantics=("parallel",),
            vmem_limit_bytes=vmem_limit),
    )(x3, w1.astype(jnp.float32), w2.astype(jnp.float32), w_tbl)
    return out.reshape(B, C, H, W)


def cbam_ref(x, w1, w2, w_sa):
    """Pure-JAX reference matching the PyTorch forward."""
    avg = jnp.mean(x, axis=(2, 3))
    mx = jnp.max(x, axis=(2, 3))

    def fc(v):
        return jnp.maximum(v @ w1.T, 0.0) @ w2.T

    ca = jax.nn.sigmoid(fc(avg) + fc(mx))
    x = x * ca[:, :, None, None]

    avg_sp = jnp.mean(x, axis=1, keepdims=True)
    max_sp = jnp.max(x, axis=1, keepdims=True)
    cat = jnp.concatenate([avg_sp, max_sp], axis=1)
    conv = jax.lax.conv_general_dilated(
        cat, w_sa, window_strides=(1, 1), padding=((3, 3), (3, 3)),
        dimension_numbers=("NCHW", "OIHW", "NCHW"))
    return x * jax.nn.sigmoid(conv)


if __name__ == "__main__":
    B, C, H, W = 2, 16, 16, 16        # in_planes=16, ratio=8 -> hidden=2
    ratio = 8
    Cr = C // ratio

    key = jax.random.PRNGKey(0)
    k1, k2, k3, k4 = jax.random.split(key, 4)
    x = jax.random.normal(k1, (B, C, H, W), jnp.float32)
    # Deterministic synthetic parameters (shapes from the module __init__).
    w1 = jax.random.normal(k2, (Cr, C), jnp.float32) * 0.3      # fc[0] weight (Cr,C,1,1) squeezed
    w2 = jax.random.normal(k3, (C, Cr), jnp.float32) * 0.3      # fc[2] weight (C,Cr,1,1) squeezed
    w_sa = jax.random.normal(k4, (1, 2, 7, 7), jnp.float32) * 0.2

    out = jax.block_until_ready(cbam_forward(x, w1, w2, w_sa))

    ref = cbam_ref(x, w1, w2, w_sa)
    assert out.shape == x.shape
    if not np.allclose(np.asarray(out), np.asarray(ref), rtol=1e-3, atol=1e-3):
        raise AssertionError("Pallas CBAM output mismatch vs JAX reference")
    print("KERNEL_OK")
</pallas_src>

<mosaic_0001>
module attributes {stable_mosaic.version = 11 : i64} {
  func.func @cbam_kernel(%arg0: i32, %arg1: memref<1x16x256xf32, #tpu.memory_space<vmem>>, %arg2: memref<2x16xf32, #tpu.memory_space<vmem>>, %arg3: memref<16x2xf32, #tpu.memory_space<vmem>>, %arg4: memref<49x512xf32, #tpu.memory_space<vmem>>, %arg5: memref<1x16x256xf32, #tpu.memory_space<vmem>>) attributes {dimension_semantics = [#tpu.dimension_semantics<parallel>], iteration_bounds = array<i64: 2>, scalar_prefetch = 0 : i64, scratch_operands = 0 : i64, tpu.core_type = #tpu.core_type<tc>, window_params = [{transform_indices = @transform_0, window_bounds = array<i64: 1, 16, 256>}, {pipeline_mode = #tpu.pipeline_mode<synchronous>, transform_indices = @transform_1, window_bounds = array<i64: 2, 16>}, {pipeline_mode = #tpu.pipeline_mode<synchronous>, transform_indices = @transform_2, window_bounds = array<i64: 16, 2>}, {pipeline_mode = #tpu.pipeline_mode<synchronous>, transform_indices = @transform_3, window_bounds = array<i64: 49, 512>}, {transform_indices = @transform_4, window_bounds = array<i64: 1, 16, 256>}]} {
    %c0 = arith.constant 0 : index
    %c0_0 = arith.constant 0 : index
    %c0_1 = arith.constant 0 : index
    %0 = vector.load %arg1[%c0, %c0_0, %c0_1] : memref<1x16x256xf32, #tpu.memory_space<vmem>>, vector<1x16x256xf32>
    %cst = arith.constant dense<0.000000e+00> : vector<1x16xf32>
    %1 = vector.multi_reduction <add>, %0, %cst [2] : vector<1x16x256xf32> to vector<1x16xf32>
    %2 = vector.shape_cast %1 : vector<1x16xf32> to vector<1x16x1xf32>
    %cst_2 = arith.constant 3.906250e-03 : f32
    %3 = vector.broadcast %cst_2 : f32 to vector<1x16x1xf32>
    %4 = arith.mulf %2, %3 : vector<1x16x1xf32>
    %cst_3 = arith.constant dense<0xFF800000> : vector<1x16xf32>
    %5 = vector.multi_reduction <maximumf>, %0, %cst_3 [2] : vector<1x16x256xf32> to vector<1x16xf32>
    %6 = vector.shape_cast %5 : vector<1x16xf32> to vector<1x16x1xf32>
    %7 = tpu.iota {dimensions = array<i32: 2>} : vector<1x16x2xi32>
    %c0_i32 = arith.constant 0 : i32
    %8 = vector.broadcast %c0_i32 : i32 to vector<1x16x2xi32>
    %9 = arith.cmpi eq, %7, %8 : vector<1x16x2xi32>
    %10 = vector.shape_cast %4 : vector<1x16x1xf32> to vector<1x16x1xf32>
    %11 = vector.broadcast %10 : vector<1x16x1xf32> to vector<1x16x2xf32>
    %12 = vector.shape_cast %6 : vector<1x16x1xf32> to vector<1x16x1xf32>
    %13 = vector.broadcast %12 : vector<1x16x1xf32> to vector<1x16x2xf32>
    %14 = arith.select %9, %11, %13 : vector<1x16x2xi1>, vector<1x16x2xf32>
    %c0_4 = arith.constant 0 : index
    %c0_5 = arith.constant 0 : index
    %15 = vector.load %arg2[%c0_4, %c0_5] : memref<2x16xf32, #tpu.memory_space<vmem>>, vector<2x16xf32>
    %16 = vector.shape_cast %15 : vector<2x16xf32> to vector<1x2x16xf32>
    %c0_6 = arith.constant 0 : index
    %c0_7 = arith.constant 0 : index
    %17 = vector.load %arg3[%c0_6, %c0_7] : memref<16x2xf32, #tpu.memory_space<vmem>>, vector<16x2xf32>
    %18 = vector.shape_cast %17 : vector<16x2xf32> to vector<1x16x2xf32>
    "tpu.trace_start"() <{level = 10 : i32, message = "brc,bct->brt"}> : () -> ()
    %cst_8 = arith.constant dense<0.000000e+00> : vector<1x2x2xf32>
    %19 = tpu.matmul %16, %14, %cst_8 {dimension_numbers = #tpu.dot_dimension_numbers<[2], [1], [1], [2], [0, 0, 0, 1, 1, 2], [0], [0]>} : vector<1x2x16xf32>, vector<1x16x2xf32>, vector<1x2x2xf32> -> vector<1x2x2xf32>
    "tpu.trace_stop"() : () -> ()
    %cst_9 = arith.constant 0.000000e+00 : f32
    %20 = vector.broadcast %cst_9 : f32 to vector<1x2x2xf32>
    %21 = arith.maximumf %19, %20 : vector<1x2x2xf32>
    "tpu.trace_start"() <{level = 10 : i32, message = "bcr,brt->bct"}> : () -> ()
    %cst_10 = arith.constant dense<0.000000e+00> : vector<1x16x2xf32>
    %22 = tpu.matmul %18, %21, %cst_10 {dimension_numbers = #tpu.dot_dimension_numbers<[2], [1], [1], [2], [0, 0, 0, 1, 1, 2], [0], [0]>} : vector<1x16x2xf32>, vector<1x2x2xf32>, vector<1x16x2xf32> -> vector<1x16x2xf32>
    "tpu.trace_stop"() : () -> ()
    %23 = vector.extract_strided_slice %22 {offsets = [0, 0, 0], sizes = [1, 16, 1], strides = [1, 1, 1]} : vector<1x16x2xf32> to vector<1x16x1xf32>
    %24 = vector.extract_strided_slice %22 {offsets = [0, 0, 1], sizes = [1, 16, 1], strides = [1, 1, 1]} : vector<1x16x2xf32> to vector<1x16x1xf32>
    %25 = arith.addf %23, %24 : vector<1x16x1xf32>
    %26 = arith.negf %25 : vector<1x16x1xf32>
    %27 = math.exp %26 : vector<1x16x1xf32>
    %cst_11 = arith.constant 1.000000e+00 : f32
    %28 = vector.broadcast %cst_11 : f32 to vector<1x16x1xf32>
    %29 = arith.addf %28, %27 : vector<1x16x1xf32>
    %30 = arith.divf %28, %29 : vector<1x16x1xf32>
    %31 = vector.broadcast %30 : vector<1x16x1xf32> to vector<1x16x256xf32>
    %32 = arith.mulf %0, %31 : vector<1x16x256xf32>
    %cst_12 = arith.constant dense<0.000000e+00> : vector<1x256xf32>
    %33 = vector.multi_reduction <add>, %32, %cst_12 [1] : vector<1x16x256xf32> to vector<1x256xf32>
    %cst_13 = arith.constant 6.250000e-02 : f32
    %34 = vector.broadcast %cst_13 : f32 to vector<1x256xf32>
    %35 = arith.mulf %33, %34 : vector<1x256xf32>
    %cst_14 = arith.constant dense<0xFF800000> : vector<1x256xf32>
    %36 = vector.multi_reduction <maximumf>, %32, %cst_14 [1] : vector<1x16x256xf32> to vector<1x256xf32>
    %37 = tpu.concatenate %35, %36 in 1 : vector<1x256xf32>, vector<1x256xf32> -> vector<1x512xf32>
    %cst_15 = arith.constant 0.000000e+00 : f32
    %38 = vector.broadcast %cst_15 : f32 to vector<1x512xf32>
    %c51_i32 = arith.constant 51 : i32
    %39 = tpu.dynamic_rotate %37 by %c51_i32 dim 1 : vector<1x512xf32>, i32 -> vector<1x512xf32>
    %c0_16 = arith.constant 0 : index
    %c0_17 = arith.constant 0 : index
    %40 = vector.load %arg4[%c0_16, %c0_17] : memref<49x512xf32, #tpu.memory_space<vmem>>, vector<1x512xf32>
    %41 = arith.mulf %39, %40 : vector<1x512xf32>
    %42 = arith.addf %38, %41 : vector<1x512xf32>
    %c50_i32 = arith.constant 50 : i32
    %43 = tpu.dynamic_rotate %37 by %c50_i32 dim 1 : vector<1x512xf32>, i32 -> vector<1x512xf32>
    %c1 = arith.constant 1 : index
    %c0_18 = arith.constant 0 : index
    %44 = vector.load %arg4[%c1, %c0_18] : memref<49x512xf32, #tpu.memory_space<vmem>>, vector<1x512xf32>
    %45 = arith.mulf %43, %44 : vector<1x512xf32>
    %46 = arith.addf %42, %45 : vector<1x512xf32>
    %c49_i32 = arith.constant 49 : i32
    %47 = tpu.dynamic_rotate %37 by %c49_i32 dim 1 : vector<1x512xf32>, i32 -> vector<1x512xf32>
    %c2 = arith.constant 2 : index
    %c0_19 = arith.constant 0 : index
    %48 = vector.load %arg4[%c2, %c0_19] : memref<49x512xf32, #tpu.memory_space<vmem>>, vector<1x512xf32>
    %49 = arith.mulf %47, %48 : vector<1x512xf32>
    %50 = arith.addf %46, %49 : vector<1x512xf32>
    %c48_i32 = arith.constant 48 : i32
    %51 = tpu.dynamic_rotate %37 by %c48_i32 dim 1 : vector<1x512xf32>, i32 -> vector<1x512xf32>
    %c3 = arith.constant 3 : index
    %c0_20 = arith.constant 0 : index
    %52 = vector.load %arg4[%c3, %c0_20] : memref<49x512xf32, #tpu.memory_space<vmem>>, vector<1x512xf32>
    %53 = arith.mulf %51, %52 : vector<1x512xf32>
    %54 = arith.addf %50, %53 : vector<1x512xf32>
    %c47_i32 = arith.constant 47 : i32
    %55 = tpu.dynamic_rotate %37 by %c47_i32 dim 1 : vector<1x512xf32>, i32 -> vector<1x512xf32>
    %c4 = arith.constant 4 : index
    %c0_21 = arith.constant 0 : index
    %56 = vector.load %arg4[%c4, %c0_21] : memref<49x512xf32, #tpu.memory_space<vmem>>, vector<1x512xf32>
    %57 = arith.mulf %55, %56 : vector<1x512xf32>
    %58 = arith.addf %54, %57 : vector<1x512xf32>
    %c46_i32 = arith.constant 46 : i32
    %59 = tpu.dynamic_rotate %37 by %c46_i32 dim 1 : vector<1x512xf32>, i32 -> vector<1x512xf32>
    %c5 = arith.constant 5 : index
    %c0_22 = arith.constant 0 : index
    %60 = vector.load %arg4[%c5, %c0_22] : memref<49x512xf32, #tpu.memory_space<vmem>>, vector<1x512xf32>
    %61 = arith.mulf %59, %60 : vector<1x512xf32>
    %62 = arith.addf %58, %61 : vector<1x512xf32>
    %c45_i32 = arith.constant 45 : i32
    %63 = tpu.dynamic_rotate %37 by %c45_i32 dim 1 : vector<1x512xf32>, i32 -> vector<1x512xf32>
    %c6 = arith.constant 6 : index
    %c0_23 = arith.constant 0 : index
    %64 = vector.load %arg4[%c6, %c0_23] : memref<49x512xf32, #tpu.memory_space<vmem>>, vector<1x512xf32>
    %65 = arith.mulf %63, %64 : vector<1x512xf32>
    %66 = arith.addf %62, %65 : vector<1x512xf32>
    %c35_i32 = arith.constant 35 : i32
    %67 = tpu.dynamic_rotate %37 by %c35_i32 dim 1 : vector<1x512xf32>, i32 -> vector<1x512xf32>
    %c7 = arith.constant 7 : index
    %c0_24 = arith.constant 0 : index
    %68 = vector.load %arg4[%c7, %c0_24] : memref<49x512xf32, #tpu.memory_space<vmem>>, vector<1x512xf32>
    %69 = arith.mulf %67, %68 : vector<1x512xf32>
    %70 = arith.addf %66, %69 : vector<1x512xf32>
    %c34_i32 = arith.constant 34 : i32
    %71 = tpu.dynamic_rotate %37 by %c34_i32 dim 1 : vector<1x512xf32>, i32 -> vector<1x512xf32>
    %c8 = arith.constant 8 : index
    %c0_25 = arith.constant 0 : index
    %72 = vector.load %arg4[%c8, %c0_25] : memref<49x512xf32, #tpu.memory_space<vmem>>, vector<1x512xf32>
    %73 = arith.mulf %71, %72 : vector<1x512xf32>
    %74 = arith.addf %70, %73 : vector<1x512xf32>
    %c33_i32 = arith.constant 33 : i32
    %75 = tpu.dynamic_rotate %37 by %c33_i32 dim 1 : vector<1x512xf32>, i32 -> vector<1x512xf32>
    %c9 = arith.constant 9 : index
    %c0_26 = arith.constant 0 : index
    %76 = vector.load %arg4[%c9, %c0_26] : memref<49x512xf32, #tpu.memory_space<vmem>>, vector<1x512xf32>
    %77 = arith.mulf %75, %76 : vector<1x512xf32>
    %78 = arith.addf %74, %77 : vector<1x512xf32>
    %c32_i32 = arith.constant 32 : i32
    %79 = tpu.dynamic_rotate %37 by %c32_i32 dim 1 : vector<1x512xf32>, i32 -> vector<1x512xf32>
    %c10 = arith.constant 10 : index
    %c0_27 = arith.constant 0 : index
    %80 = vector.load %arg4[%c10, %c0_27] : memref<49x512xf32, #tpu.memory_space<vmem>>, vector<1x512xf32>
    %81 = arith.mulf %79, %80 : vector<1x512xf32>
    %82 = arith.addf %78, %81 : vector<1x512xf32>
    %c31_i32 = arith.constant 31 : i32
    %83 = tpu.dynamic_rotate %37 by %c31_i32 dim 1 : vector<1x512xf32>, i32 -> vector<1x512xf32>
    %c11 = arith.constant 11 : index
    %c0_28 = arith.constant 0 : index
    %84 = vector.load %arg4[%c11, %c0_28] : memref<49x512xf32, #tpu.memory_space<vmem>>, vector<1x512xf32>
    %85 = arith.mulf %83, %84 : vector<1x512xf32>
    %86 = arith.addf %82, %85 : vector<1x512xf32>
    %c30_i32 = arith.constant 30 : i32
    %87 = tpu.dynamic_rotate %37 by %c30_i32 dim 1 : vector<1x512xf32>, i32 -> vector<1x512xf32>
    %c12 = arith.constant 12 : index
    %c0_29 = arith.constant 0 : index
    %88 = vector.load %arg4[%c12, %c0_29] : memref<49x512xf32, #tpu.memory_space<vmem>>, vector<1x512xf32>
    %89 = arith.mulf %87, %88 : vector<1x512xf32>
    %90 = arith.addf %86, %89 : vector<1x512xf32>
    %c29_i32 = arith.constant 29 : i32
    %91 = tpu.dynamic_rotate %37 by %c29_i32 dim 1 : vector<1x512xf32>, i32 -> vector<1x512xf32>
    %c13 = arith.constant 13 : index
    %c0_30 = arith.constant 0 : index
    %92 = vector.load %arg4[%c13, %c0_30] : memref<49x512xf32, #tpu.memory_space<vmem>>, vector<1x512xf32>
    %93 = arith.mulf %91, %92 : vector<1x512xf32>
    %94 = arith.addf %90, %93 : vector<1x512xf32>
    %c19_i32 = arith.constant 19 : i32
    %95 = tpu.dynamic_rotate %37 by %c19_i32 dim 1 : vector<1x512xf32>, i32 -> vector<1x512xf32>
    %c14 = arith.constant 14 : index
    %c0_31 = arith.constant 0 : index
    %96 = vector.load %arg4[%c14, %c0_31] : memref<49x512xf32, #tpu.memory_space<vmem>>, vector<1x512xf32>
    %97 = arith.mulf %95, %96 : vector<1x512xf32>
    %98 = arith.addf %94, %97 : vector<1x512xf32>
    %c18_i32 = arith.constant 18 : i32
    %99 = tpu.dynamic_rotate %37 by %c18_i32 dim 1 : vector<1x512xf32>, i32 -> vector<1x512xf32>
    %c15 = arith.constant 15 : index
    %c0_32 = arith.constant 0 : index
    %100 = vector.load %arg4[%c15, %c0_32] : memref<49x512xf32, #tpu.memory_space<vmem>>, vector<1x512xf32>
    %101 = arith.mulf %99, %100 : vector<1x512xf32>
    %102 = arith.addf %98, %101 : vector<1x512xf32>
    %c17_i32 = arith.constant 17 : i32
    %103 = tpu.dynamic_rotate %37 by %c17_i32 dim 1 : vector<1x512xf32>, i32 -> vector<1x512xf32>
    %c16 = arith.constant 16 : index
    %c0_33 = arith.constant 0 : index
    %104 = vector.load %arg4[%c16, %c0_33] : memref<49x512xf32, #tpu.memory_space<vmem>>, vector<1x512xf32>
    %105 = arith.mulf %103, %104 : vector<1x512xf32>
    %106 = arith.addf %102, %105 : vector<1x512xf32>
    %c16_i32 = arith.constant 16 : i32
    %107 = tpu.dynamic_rotate %37 by %c16_i32 dim 1 : vector<1x512xf32>, i32 -> vector<1x512xf32>
    %c17 = arith.constant 17 : index
    %c0_34 = arith.constant 0 : index
    %108 = vector.load %arg4[%c17, %c0_34] : memref<49x512xf32, #tpu.memory_space<vmem>>, vector<1x512xf32>
    %109 = arith.mulf %107, %108 : vector<1x512xf32>
    %110 = arith.addf %106, %109 : vector<1x512xf32>
    %c15_i32 = arith.constant 15 : i32
    %111 = tpu.dynamic_rotate %37 by %c15_i32 dim 1 : vector<1x512xf32>, i32 -> vector<1x512xf32>
    %c18 = arith.constant 18 : index
    %c0_35 = arith.constant 0 : index
    %112 = vector.load %arg4[%c18, %c0_35] : memref<49x512xf32, #tpu.memory_space<vmem>>, vector<1x512xf32>
    %113 = arith.mulf %111, %112 : vector<1x512xf32>
    %114 = arith.addf %110, %113 : vector<1x512xf32>
    %c14_i32 = arith.constant 14 : i32
    %115 = tpu.dynamic_rotate %37 by %c14_i32 dim 1 : vector<1x512xf32>, i32 -> vector<1x512xf32>
    %c19 = arith.constant 19 : index
    %c0_36 = arith.constant 0 : index
    %116 = vector.load %arg4[%c19, %c0_36] : memref<49x512xf32, #tpu.memory_space<vmem>>, vector<1x512xf32>
    %117 = arith.mulf %115, %116 : vector<1x512xf32>
    %118 = arith.addf %114, %117 : vector<1x512xf32>
    %c13_i32 = arith.constant 13 : i32
    %119 = tpu.dynamic_rotate %37 by %c13_i32 dim 1 : vector<1x512xf32>, i32 -> vector<1x512xf32>
    %c20 = arith.constant 20 : index
    %c0_37 = arith.constant 0 : index
    %120 = vector.load %arg4[%c20, %c0_37] : memref<49x512xf32, #tpu.memory_space<vmem>>, vector<1x512xf32>
    %121 = arith.mulf %119, %120 : vector<1x512xf32>
    %122 = arith.addf %118, %121 : vector<1x512xf32>
    %c3_i32 = arith.constant 3 : i32
    %123 = tpu.dynamic_rotate %37 by %c3_i32 dim 1 : vector<1x512xf32>, i32 -> vector<1x512xf32>
    %c21 = arith.constant 21 : index
    %c0_38 = arith.constant 0 : index
    %124 = vector.load %arg4[%c21, %c0_38] : memref<49x512xf32, #tpu.memory_space<vmem>>, vector<1x512xf32>
    %125 = arith.mulf %123, %124 : vector<1x512xf32>
    %126 = arith.addf %122, %125 : vector<1x512xf32>
    %c2_i32 = arith.constant 2 : i32
    %127 = tpu.dynamic_rotate %37 by %c2_i32 dim 1 : vector<1x512xf32>, i32 -> vector<1x512xf32>
    %c22 = arith.constant 22 : index
    %c0_39 = arith.constant 0 : index
    %128 = vector.load %arg4[%c22, %c0_39] : memref<49x512xf32, #tpu.memory_space<vmem>>, vector<1x512xf32>
    %129 = arith.mulf %127, %128 : vector<1x512xf32>
    %130 = arith.addf %126, %129 : vector<1x512xf32>
    %c1_i32 = arith.constant 1 : i32
    %131 = tpu.dynamic_rotate %37 by %c1_i32 dim 1 : vector<1x512xf32>, i32 -> vector<1x512xf32>
    %c23 = arith.constant 23 : index
    %c0_40 = arith.constant 0 : index
    %132 = vector.load %arg4[%c23, %c0_40] : memref<49x512xf32, #tpu.memory_space<vmem>>, vector<1x512xf32>
    %133 = arith.mulf %131, %132 : vector<1x512xf32>
    %134 = arith.addf %130, %133 : vector<1x512xf32>
    %c24 = arith.constant 24 : index
    %c0_41 = arith.constant 0 : index
    %135 = vector.load %arg4[%c24, %c0_41] : memref<49x512xf32, #tpu.memory_space<vmem>>, vector<1x512xf32>
    %136 = arith.mulf %37, %135 : vector<1x512xf32>
    %137 = arith.addf %134, %136 : vector<1x512xf32>
    %c511_i32 = arith.constant 511 : i32
    %138 = tpu.dynamic_rotate %37 by %c511_i32 dim 1 : vector<1x512xf32>, i32 -> vector<1x512xf32>
    %c25 = arith.constant 25 : index
    %c0_42 = arith.constant 0 : index
    %139 = vector.load %arg4[%c25, %c0_42] : memref<49x512xf32, #tpu.memory_space<vmem>>, vector<1x512xf32>
    %140 = arith.mulf %138, %139 : vector<1x512xf32>
    %141 = arith.addf %137, %140 : vector<1x512xf32>
    %c510_i32 = arith.constant 510 : i32
    %142 = tpu.dynamic_rotate %37 by %c510_i32 dim 1 : vector<1x512xf32>, i32 -> vector<1x512xf32>
    %c26 = arith.constant 26 : index
    %c0_43 = arith.constant 0 : index
    %143 = vector.load %arg4[%c26, %c0_43] : memref<49x512xf32, #tpu.memory_space<vmem>>, vector<1x512xf32>
    %144 = arith.mulf %142, %143 : vector<1x512xf32>
    %145 = arith.addf %141, %144 : vector<1x512xf32>
    %c509_i32 = arith.constant 509 : i32
    %146 = tpu.dynamic_rotate %37 by %c509_i32 dim 1 : vector<1x512xf32>, i32 -> vector<1x512xf32>
    %c27 = arith.constant 27 : index
    %c0_44 = arith.constant 0 : index
    %147 = vector.load %arg4[%c27, %c0_44] : memref<49x512xf32, #tpu.memory_space<vmem>>, vector<1x512xf32>
    %148 = arith.mulf %146, %147 : vector<1x512xf32>
    %149 = arith.addf %145, %148 : vector<1x512xf32>
    %c499_i32 = arith.constant 499 : i32
    %150 = tpu.dynamic_rotate %37 by %c499_i32 dim 1 : vector<1x512xf32>, i32 -> vector<1x512xf32>
    %c28 = arith.constant 28 : index
    %c0_45 = arith.constant 0 : index
    %151 = vector.load %arg4[%c28, %c0_45] : memref<49x512xf32, #tpu.memory_space<vmem>>, vector<1x512xf32>
    %152 = arith.mulf %150, %151 : vector<1x512xf32>
    %153 = arith.addf %149, %152 : vector<1x512xf32>
    %c498_i32 = arith.constant 498 : i32
    %154 = tpu.dynamic_rotate %37 by %c498_i32 dim 1 : vector<1x512xf32>, i32 -> vector<1x512xf32>
    %c29 = arith.constant 29 : index
    %c0_46 = arith.constant 0 : index
    %155 = vector.load %arg4[%c29, %c0_46] : memref<49x512xf32, #tpu.memory_space<vmem>>, vector<1x512xf32>
    %156 = arith.mulf %154, %155 : vector<1x512xf32>
    %157 = arith.addf %153, %156 : vector<1x512xf32>
    %c497_i32 = arith.constant 497 : i32
    %158 = tpu.dynamic_rotate %37 by %c497_i32 dim 1 : vector<1x512xf32>, i32 -> vector<1x512xf32>
    %c30 = arith.constant 30 : index
    %c0_47 = arith.constant 0 : index
    %159 = vector.load %arg4[%c30, %c0_47] : memref<49x512xf32, #tpu.memory_space<vmem>>, vector<1x512xf32>
    %160 = arith.mulf %158, %159 : vector<1x512xf32>
    %161 = arith.addf %157, %160 : vector<1x512xf32>
    %c496_i32 = arith.constant 496 : i32
    %162 = tpu.dynamic_rotate %37 by %c496_i32 dim 1 : vector<1x512xf32>, i32 -> vector<1x512xf32>
    %c31 = arith.constant 31 : index
    %c0_48 = arith.constant 0 : index
    %163 = vector.load %arg4[%c31, %c0_48] : memref<49x512xf32, #tpu.memory_space<vmem>>, vector<1x512xf32>
    %164 = arith.mulf %162, %163 : vector<1x512xf32>
    %165 = arith.addf %161, %164 : vector<1x512xf32>
    %c495_i32 = arith.constant 495 : i32
    %166 = tpu.dynamic_rotate %37 by %c495_i32 dim 1 : vector<1x512xf32>, i32 -> vector<1x512xf32>
    %c32 = arith.constant 32 : index
    %c0_49 = arith.constant 0 : index
    %167 = vector.load %arg4[%c32, %c0_49] : memref<49x512xf32, #tpu.memory_space<vmem>>, vector<1x512xf32>
    %168 = arith.mulf %166, %167 : vector<1x512xf32>
    %169 = arith.addf %165, %168 : vector<1x512xf32>
    %c494_i32 = arith.constant 494 : i32
    %170 = tpu.dynamic_rotate %37 by %c494_i32 dim 1 : vector<1x512xf32>, i32 -> vector<1x512xf32>
    %c33 = arith.constant 33 : index
    %c0_50 = arith.constant 0 : index
    %171 = vector.load %arg4[%c33, %c0_50] : memref<49x512xf32, #tpu.memory_space<vmem>>, vector<1x512xf32>
    %172 = arith.mulf %170, %171 : vector<1x512xf32>
    %173 = arith.addf %169, %172 : vector<1x512xf32>
    %c493_i32 = arith.constant 493 : i32
    %174 = tpu.dynamic_rotate %37 by %c493_i32 dim 1 : vector<1x512xf32>, i32 -> vector<1x512xf32>
    %c34 = arith.constant 34 : index
    %c0_51 = arith.constant 0 : index
    %175 = vector.load %arg4[%c34, %c0_51] : memref<49x512xf32, #tpu.memory_space<vmem>>, vector<1x512xf32>
    %176 = arith.mulf %174, %175 : vector<1x512xf32>
    %177 = arith.addf %173, %176 : vector<1x512xf32>
    %c483_i32 = arith.constant 483 : i32
    %178 = tpu.dynamic_rotate %37 by %c483_i32 dim 1 : vector<1x512xf32>, i32 -> vector<1x512xf32>
    %c35 = arith.constant 35 : index
    %c0_52 = arith.constant 0 : index
    %179 = vector.load %arg4[%c35, %c0_52] : memref<49x512xf32, #tpu.memory_space<vmem>>, vector<1x512xf32>
    %180 = arith.mulf %178, %179 : vector<1x512xf32>
    %181 = arith.addf %177, %180 : vector<1x512xf32>
    %c482_i32 = arith.constant 482 : i32
    %182 = tpu.dynamic_rotate %37 by %c482_i32 dim 1 : vector<1x512xf32>, i32 -> vector<1x512xf32>
    %c36 = arith.constant 36 : index
    %c0_53 = arith.constant 0 : index
    %183 = vector.load %arg4[%c36, %c0_53] : memref<49x512xf32, #tpu.memory_space<vmem>>, vector<1x512xf32>
    %184 = arith.mulf %182, %183 : vector<1x512xf32>
    %185 = arith.addf %181, %184 : vector<1x512xf32>
    %c481_i32 = arith.constant 481 : i32
    %186 = tpu.dynamic_rotate %37 by %c481_i32 dim 1 : vector<1x512xf32>, i32 -> vector<1x512xf32>
    %c37 = arith.constant 37 : index
    %c0_54 = arith.constant 0 : index
    %187 = vector.load %arg4[%c37, %c0_54] : memref<49x512xf32, #tpu.memory_space<vmem>>, vector<1x512xf32>
    %188 = arith.mulf %186, %187 : vector<1x512xf32>
    %189 = arith.addf %185, %188 : vector<1x512xf32>
    %c480_i32 = arith.constant 480 : i32
    %190 = tpu.dynamic_rotate %37 by %c480_i32 dim 1 : vector<1x512xf32>, i32 -> vector<1x512xf32>
    %c38 = arith.constant 38 : index
    %c0_55 = arith.constant 0 : index
    %191 = vector.load %arg4[%c38, %c0_55] : memref<49x512xf32, #tpu.memory_space<vmem>>, vector<1x512xf32>
    %192 = arith.mulf %190, %191 : vector<1x512xf32>
    %193 = arith.addf %189, %192 : vector<1x512xf32>
    %c479_i32 = arith.constant 479 : i32
    %194 = tpu.dynamic_rotate %37 by %c479_i32 dim 1 : vector<1x512xf32>, i32 -> vector<1x512xf32>
    %c39 = arith.constant 39 : index
    %c0_56 = arith.constant 0 : index
    %195 = vector.load %arg4[%c39, %c0_56] : memref<49x512xf32, #tpu.memory_space<vmem>>, vector<1x512xf32>
    %196 = arith.mulf %194, %195 : vector<1x512xf32>
    %197 = arith.addf %193, %196 : vector<1x512xf32>
    %c478_i32 = arith.constant 478 : i32
    %198 = tpu.dynamic_rotate %37 by %c478_i32 dim 1 : vector<1x512xf32>, i32 -> vector<1x512xf32>
    %c40 = arith.constant 40 : index
    %c0_57 = arith.constant 0 : index
    %199 = vector.load %arg4[%c40, %c0_57] : memref<49x512xf32, #tpu.memory_space<vmem>>, vector<1x512xf32>
    %200 = arith.mulf %198, %199 : vector<1x512xf32>
    %201 = arith.addf %197, %200 : vector<1x512xf32>
    %c477_i32 = arith.constant 477 : i32
    %202 = tpu.dynamic_rotate %37 by %c477_i32 dim 1 : vector<1x512xf32>, i32 -> vector<1x512xf32>
    %c41 = arith.constant 41 : index
    %c0_58 = arith.constant 0 : index
    %203 = vector.load %arg4[%c41, %c0_58] : memref<49x512xf32, #tpu.memory_space<vmem>>, vector<1x512xf32>
    %204 = arith.mulf %202, %203 : vector<1x512xf32>
    %205 = arith.addf %201, %204 : vector<1x512xf32>
    %c467_i32 = arith.constant 467 : i32
    %206 = tpu.dynamic_rotate %37 by %c467_i32 dim 1 : vector<1x512xf32>, i32 -> vector<1x512xf32>
    %c42 = arith.constant 42 : index
    %c0_59 = arith.constant 0 : index
    %207 = vector.load %arg4[%c42, %c0_59] : memref<49x512xf32, #tpu.memory_space<vmem>>, vector<1x512xf32>
    %208 = arith.mulf %206, %207 : vector<1x512xf32>
    %209 = arith.addf %205, %208 : vector<1x512xf32>
    %c466_i32 = arith.constant 466 : i32
    %210 = tpu.dynamic_rotate %37 by %c466_i32 dim 1 : vector<1x512xf32>, i32 -> vector<1x512xf32>
    %c43 = arith.constant 43 : index
    %c0_60 = arith.constant 0 : index
    %211 = vector.load %arg4[%c43, %c0_60] : memref<49x512xf32, #tpu.memory_space<vmem>>, vector<1x512xf32>
    %212 = arith.mulf %210, %211 : vector<1x512xf32>
    %213 = arith.addf %209, %212 : vector<1x512xf32>
    %c465_i32 = arith.constant 465 : i32
    %214 = tpu.dynamic_rotate %37 by %c465_i32 dim 1 : vector<1x512xf32>, i32 -> vector<1x512xf32>
    %c44 = arith.constant 44 : index
    %c0_61 = arith.constant 0 : index
    %215 = vector.load %arg4[%c44, %c0_61] : memref<49x512xf32, #tpu.memory_space<vmem>>, vector<1x512xf32>
    %216 = arith.mulf %214, %215 : vector<1x512xf32>
    %217 = arith.addf %213, %216 : vector<1x512xf32>
    %c464_i32 = arith.constant 464 : i32
    %218 = tpu.dynamic_rotate %37 by %c464_i32 dim 1 : vector<1x512xf32>, i32 -> vector<1x512xf32>
    %c45 = arith.constant 45 : index
    %c0_62 = arith.constant 0 : index
    %219 = vector.load %arg4[%c45, %c0_62] : memref<49x512xf32, #tpu.memory_space<vmem>>, vector<1x512xf32>
    %220 = arith.mulf %218, %219 : vector<1x512xf32>
    %221 = arith.addf %217, %220 : vector<1x512xf32>
    %c463_i32 = arith.constant 463 : i32
    %222 = tpu.dynamic_rotate %37 by %c463_i32 dim 1 : vector<1x512xf32>, i32 -> vector<1x512xf32>
    %c46 = arith.constant 46 : index
    %c0_63 = arith.constant 0 : index
    %223 = vector.load %arg4[%c46, %c0_63] : memref<49x512xf32, #tpu.memory_space<vmem>>, vector<1x512xf32>
    %224 = arith.mulf %222, %223 : vector<1x512xf32>
    %225 = arith.addf %221, %224 : vector<1x512xf32>
    %c462_i32 = arith.constant 462 : i32
    %226 = tpu.dynamic_rotate %37 by %c462_i32 dim 1 : vector<1x512xf32>, i32 -> vector<1x512xf32>
    %c47 = arith.constant 47 : index
    %c0_64 = arith.constant 0 : index
    %227 = vector.load %arg4[%c47, %c0_64] : memref<49x512xf32, #tpu.memory_space<vmem>>, vector<1x512xf32>
    %228 = arith.mulf %226, %227 : vector<1x512xf32>
    %229 = arith.addf %225, %228 : vector<1x512xf32>
    %c461_i32 = arith.constant 461 : i32
    %230 = tpu.dynamic_rotate %37 by %c461_i32 dim 1 : vector<1x512xf32>, i32 -> vector<1x512xf32>
    %c48 = arith.constant 48 : index
    %c0_65 = arith.constant 0 : index
    %231 = vector.load %arg4[%c48, %c0_65] : memref<49x512xf32, #tpu.memory_space<vmem>>, vector<1x512xf32>
    %232 = arith.mulf %230, %231 : vector<1x512xf32>
    %233 = arith.addf %229, %232 : vector<1x512xf32>
    %234 = vector.extract_strided_slice %233 {offsets = [0, 0], sizes = [1, 256], strides = [1, 1]} : vector<1x512xf32> to vector<1x256xf32>
    %235 = vector.extract_strided_slice %233 {offsets = [0, 256], sizes = [1, 256], strides = [1, 1]} : vector<1x512xf32> to vector<1x256xf32>
    %236 = arith.addf %234, %235 : vector<1x256xf32>
    %237 = arith.negf %236 : vector<1x256xf32>
    %238 = math.exp %237 : vector<1x256xf32>
    %cst_66 = arith.constant 1.000000e+00 : f32
    %239 = vector.broadcast %cst_66 : f32 to vector<1x256xf32>
    %240 = arith.addf %239, %238 : vector<1x256xf32>
    %241 = arith.divf %239, %240 : vector<1x256xf32>
    %242 = vector.shape_cast %241 : vector<1x256xf32> to vector<1x1x256xf32>
    %243 = vector.broadcast %30 : vector<1x16x1xf32> to vector<1x16x256xf32>
    %244 = vector.broadcast %242 : vector<1x1x256xf32> to vector<1x16x256xf32>
    %245 = arith.mulf %243, %244 : vector<1x16x256xf32>
    %246 = arith.mulf %0, %245 : vector<1x16x256xf32>
    %c0_67 = arith.constant 0 : index
    %c0_68 = arith.constant 0 : index
    %c0_69 = arith.constant 0 : index
    %247 = vector.load %arg5[%c0_67, %c0_68, %c0_69] : memref<1x16x256xf32, #tpu.memory_space<vmem>>, vector<1x16x256xf32>
    tpu.vector_store %arg5[%c0_67, %c0_68, %c0_69], %246 {strides = array<i32>} : memref<1x16x256xf32, #tpu.memory_space<vmem>>, vector<1x16x256xf32>,
    return
  }
  func.func @transform_0(%arg0: i32) -> (i32, i32, i32) {
    %c0_i32 = arith.constant 0 : i32
    %c0_i32_0 = arith.constant 0 : i32
    %c0_i32_1 = arith.constant 0 : i32
    return %arg0, %c0_i32, %c0_i32_0 : i32, i32, i32
  }
  func.func @transform_1(%arg0: i32) -> (i32, i32) {
    %c0_i32 = arith.constant 0 : i32
    %c0_i32_0 = arith.constant 0 : i32
    %c0_i32_1 = arith.constant 0 : i32
    return %c0_i32, %c0_i32_0 : i32, i32
  }
  func.func @transform_2(%arg0: i32) -> (i32, i32) {
    %c0_i32 = arith.constant 0 : i32
    %c0_i32_0 = arith.constant 0 : i32
    %c0_i32_1 = arith.constant 0 : i32
    return %c0_i32, %c0_i32_0 : i32, i32
  }
  func.func @transform_3(%arg0: i32) -> (i32, i32) {
    %c0_i32 = arith.constant 0 : i32
    %c0_i32_0 = arith.constant 0 : i32
    %c0_i32_1 = arith.constant 0 : i32
    return %c0_i32, %c0_i32_0 : i32, i32
  }
  func.func @transform_4(%arg0: i32) -> (i32, i32, i32) {
    %c0_i32 = arith.constant 0 : i32
    %c0_i32_0 = arith.constant 0 : i32
    %c0_i32_1 = arith.constant 0 : i32
    return %arg0, %c0_i32, %c0_i32_0 : i32, i32, i32
  }
}

</mosaic_0001>

<bundles_post_ra>
// kernel: tpu_custom_call.1
= control target key start
LH: loop header
LB: loop body
LE: loop exit
PB: predicated region body
PF: predicated region fallthrough
CT: control target
= control target key end

     0   :  { %9 = vsyncpa [#allocation3], 0  ;;  %s5789_s0 = inlined_call_operand.hbm [shape: f32[2,16,256], index: 0, kind: input, shape index: {}]   ;;  %s5790_s1 = inlined_call_operand.vmem [shape: f32[2,16], index: 1, kind: input, shape index: {}]   ;;  %s5791_s2 = inlined_call_operand.vmem [shape: f32[16,2], index: 2, kind: input, shape index: {}]   ;;  %s5792_s3 = inlined_call_operand.hbm [shape: f32[49,512], index: 3, kind: input, shape index: {}]   ;;  %s5793_s4 = inlined_call_operand.hbm [shape: f32[2,16,256], index: 4, kind: output, shape index: {}]  }
   0x1   :  { %11 = vsyncpa [#allocation3 + $0x1], 0 }
   0x2   :  { %12 = vsyncpa [#allocation6], 0 }
   0x3   :  { %13 = vsyncpa [#allocation4], 0 }
   0x4   :  { %15 = vsyncpa [#allocation4 + $0x1], 0  ;;  %s3155_s15 = smov 0   ;;  %s3157_s16 = smov 0  }
   0x5   :  { %s3159_s17 = smov 0   ;;  %s3161_s18 = smov 0  }
   0x6 LB: > { %s3176_s19 = sadd.s32 4294967295, %s3068_s18   ;;  %s2757_s20 = sadd.s32 4294967294, %s3068_s18   ;;  %s3068_s18 = sphi %s3161_s18, %s6469_s18   ;;  %s3064_s17 = sphi %s3159_s17, %s6468_s17   ;;  %s3060_s16 = sphi %s3157_s16, %s6467_s16   ;;  %s3056_s15 = sphi %s3155_s15, %s6466_s15  }
   0x7   : > { %p41_p0 = scmp.ne.s32.totalorder %s3060_s16, %s3056_s15  ;;  %p5794_p1 = scmp.eq.s32.totalorder %s3176_s19, 0 }
   0x8   : > { %p134_p3 = scmp.eq.s32.totalorder %s2757_s20, 1  ;;  %p2758_p5 = scmp.ge.s32.totalorder %s3068_s18, 1 }
   0x9   : > { %p3185_p4 = por %p5794_p1, %p41_p0  ;;  %p141_p7 = scmp.lt.s32.totalorder %s3068_s18, 3 }
   0xa   : > { %p3190_p6 = por %p134_p3, %p41_p0  ;;  %s3070_s24 = smov [#allocation5]  }
   0xb   : > { %s5981_s21 = scalar_select %p3185_p4, 1, 0 }
   0xc   : > { %s5982_s22 = scalar_select %p3190_p6, 1, 0 }
   0xd   : > { %p3195_p8 = pnand %p2758_p5, %p141_p7  ;;  %s159_s25 = sshll.u32 %s3070_s24, 4  ;;  %s3199_s25 = int_to_ptr.vmem [resolvable:$true] %s159_s25 }
   0xe   : > { %s3211_s27 = sadd.s32 1, %s3068_s18   ;;  %s28_s28 = sadd.s32 1, %s3064_s17 }
   0xf   : > { %s5983_s23 = scalar_select %p3195_p8, 1, 0 }
  0x10   : > { %p2812_p9 = pneg %p3195_p8  ;;  %s25_s29 = ssub.s32 %s3068_s18, %s3211_s27 }
  0x11   : > { %s2940_s6 = scalar_lea.hbm %s5792_s3, 3584 }
  0x12   : > { %p3206_p11 = pnand %p2812_p9, %p5794_p1  ;;  %p2941_p12 = scmp.ne.s32.totalorder %s5792_s3, %s2940_s6 }
  0x13   : > { %p2947_p5 = scmp.lt.u32.totalorder %s2940_s6, %s5792_s3 }
  0x14   : > { %p2942_p13 = pneg %p3206_p11 }
  0x16   : > { %p2943_p0 = pnand %p2942_p13, %p2941_p12 }
  0x18   : > { %p2944_p3 = pneg %p2943_p0 }
  0x1a   : > { %p2949_p7 = pnand %p2947_p5, %p2944_p3 }
  0x1c   : > { %2952 = shalt.err (!%p2949_p7)
}
  0x1d   : > { %s2953_s11 = scalar_lea.vmem %s3199_s25, 3584  ;;  %p2961_p2 = scmp.lt.s32.totalorder %s3199_s25, %s3199_s25 }
  0x1e   : > { %p2954_p9 = scmp.ne.s32.totalorder %s3199_s25, %s2953_s11  ;;  %p2962_p6 = scmp.lt.s32.totalorder %s2953_s11, %s2953_s11 }
  0x20   : > { %p2956_p10 = pnand %p2954_p9, %p2942_p13  ;;  %p2963_p4 = por %p2962_p6, %p2961_p2 }
  0x22   : > { %p2957_p1 = pneg %p2956_p10 }
  0x24   : > { %p2964_p8 = pnand %p2963_p4, %p2957_p1 }
  0x26   : > { %2967 = shalt.err (!%p2964_p8)
}
  0x27   : > { %s3071_s12 = smov 512   ;;  %s3072_s13 = smov 32  }
  0x28   : > { %2815 = dma.hbm_to_vmem [thread:$0]  (!%p3206_p11), %s5792_s3, 3584, %s3199_s25, [#allocation6], %s3071_s12, %s3071_s12, %s3072_s13  }
  0x29   : > { %p26_p2 = scmp.eq.s32.totalorder %s25_s29, 0  ;;  %p35_p1 = scmp.ne.s32.totalorder %s3064_s17, %s3060_s16 }
  0x2a   : > { %p36_p4 = scmp.eq.s32.totalorder %s3068_s18, 0  ;;  %p2825_p6 = scmp.lt.s32.totalorder %s3068_s18, 2 }
  0x2b   : > { %s3242_s24 = scalar_select %p26_p2, %s3064_s17, %s28_s28  }
  0x2c   : > { %p37_p8 = por %p36_p4, %p35_p1  ;;  %p5985_p10 = scmp.eq.s32.totalorder %s3176_s19, 1 }
  0x2d   : > { %s173_s5 = sand.u32 1, %s3064_s17   ;;  %s2781_s6 = sshll.u32 %s3068_s18, 9 }
  0x2e   : > { %p3246_p12 = por %p5985_p10, %p35_p1  ;;  %s2761_s7 = sshll.u32 %s173_s5, 5 }
  0x2f   : > { %s3255_s9 = scalar_lea.hbm %s5789_s0, %s2781_s6  ;;  %s177_s25 = scalar_lea.vmem [#allocation2], %s2761_s7 }
  0x30   : > { %s184_s28 = sshll.u32 %s177_s25, 4  ;;  %p3257_p11 = pnand %p2825_p6, %p37_p8  ;;  %s3261_s28 = int_to_ptr.vmem [resolvable:$true] %s184_s28 }
  0x31   : > { %s3263_s10 = scalar_lea.sflag [#allocation3], %s173_s5  ;;  %s2968_s11 = scalar_lea.hbm %s3255_s9, 512 }
  0x32   : > { %p2969_p13 = scmp.ne.s32.totalorder %s3255_s9, %s2968_s11  ;;  %p2970_p0 = pneg %p3257_p11 }
  0x33   : > { %s2973_s14 = scalar_lea.hbm %s5789_s0, 1024  ;;  %p2974_p7 = scmp.lt.u32.totalorder %s3255_s9, %s5789_s0 }
  0x34   : > { %p2971_p3 = pnand %p2970_p0, %p2969_p13  ;;  %p2975_p9 = scmp.lt.u32.totalorder %s2973_s14, %s2968_s11 }
  0x35   : > { %p2977_p1 = scmp.lt.u32.totalorder %s2968_s11, %s3255_s9 }
  0x36   : > { %p2972_p5 = pneg %p2971_p3  ;;  %p2976_p2 = por %p2975_p9, %p2974_p7 }
  0x38   : > { %p2978_p4 = por %p2977_p1, %p2976_p2 }
  0x3a   : > { %p2979_p6 = pnand %p2978_p4, %p2972_p5 }
  0x3c   : > { %2982 = shalt.err (!%p2979_p6)
}
  0x3d   : > { %s2983_s5 = scalar_lea.vmem %s3261_s28, 512  ;;  %s3073_s7 = smov [#allocation2]  }
  0x3e   : > { %p2984_p8 = scmp.ne.s32.totalorder %s3261_s28, %s2983_s5  ;;  %s2988_s26 = sshll.u32 %s3073_s7, 4  ;;  %s2989_s26 = int_to_ptr.vmem [resolvable:$false] %s2988_s26 }
  0x3f   : > { %s2990_s8 = scalar_lea.vmem %s2989_s26, 1024  ;;  %p2991_p3 = scmp.lt.s32.totalorder %s3261_s28, %s2989_s26 }
  0x40   : > { %p2986_p10 = pnand %p2984_p8, %p2970_p0  ;;  %p2992_p7 = scmp.lt.s32.totalorder %s2990_s8, %s2983_s5 }
  0x42   : > { %p2987_p13 = pneg %p2986_p10  ;;  %p2993_p9 = por %p2992_p7, %p2991_p3 }
  0x44   : > { %p2994_p2 = pnand %p2993_p9, %p2987_p13 }
  0x46   : > { %2997 = shalt.err (!%p2994_p2)
}
  0x47   : > { %s3074_s25 = smov 256   ;;  %s3075_s11 = smov 16  }
  0x48   : > { %2819 = dma.hbm_to_vmem [thread:$0]  (!%p3257_p11), %s3255_s9, 512, %s3261_s28, %s3263_s10, %s3074_s25, %s3074_s25, %s3075_s11  }
  0x49   : > { %p5988_p0 = scmp.ne.s32.totalorder %s5983_s23, 0 }
  0x4b   : > { %196 = sbr.rel (%p5988_p0) target bundleno = 1532 (0x5fc), region = 36 }
  0x52   : > { %s3294_s12 = sand.u32 1, %s3060_s16   ;;  %p5989_p5 = scmp.ne.s32.totalorder %s5981_s21, 0 }
  0x53   : > { %s5797_s13 = sshll.u32 %s3294_s12, 5  ;;  %s199_s14 = scalar_lea.sflag [#allocation3], %s3294_s12 }
  0x54   : > { %s3300_s20 = scalar_lea.vmem [#allocation2], %s5797_s13 }
  0x55   : > { %3043 = dma.done.wait (%p5989_p5), %s199_s14, 512  }
  0x56   : > { %3045 = vsyncadd (%p5989_p5), %s199_s14, 4294966784  ;;  %p5990_p11 = scmp.eq.s32.totalorder %s3176_s19, 0 }
  0x58   : > { %3047 = dma.done.wait (%p5990_p11), [#allocation6], 3584   ;;  %p5991_p1 = pmov %p5990_p11 }
  0x59   : > { %v3311_v0 = vld [vmem:[%s3300_s20] sm:$0xff]  ;;  %v3314_v1 = vld [vmem:[%s3300_s20 + $0x8] sm:$0xff]  ;;  %v3317_v2 = vld [vmem:[%s3300_s20 + $0x10] sm:$0xff]  ;;  %v3076_v8 = vmov 0.0|0.0   ;;  %vm3077_vm0 = vmmov 0   ;;  %v3078_v9 = vmov 0.0   ;;  %v5862_v10 = vlaneseq }
  0x5a   : > { %3049 = vsyncadd (%p5991_p1), [#allocation6], 4294963712  ;;  %v235_v3 = vadd.f32 %v3314_v1, %v3311_v0  ;;  %v243_v4 = vmax.f32 %v3311_v0, %v3314_v1  ;;  %v3324_v5 = vld [vmem:[%s3300_s20 + $0x18] sm:$0xff]  ;;  %2801 = vmatprep.subr.bf16.mxu0 %v3076_v8  ;;  %2793 = vmatprep.mubr.msk.f32.mxu0 %vm3077_vm0, %v3078_v9  ;;  %v254_v21 = vld [vmem:[%s5790_s1] sm:$0x3]  ;;  %vm257_vm2 = vcmask 130048  }
  0x5b   : > { %v238_v6 = vadd.f32 %v3324_v5, %v3317_v2  ;;  %v246_v7 = vmax.f32 %v3317_v2, %v3324_v5  ;;  %v3331_v12 = vand.u32 127, %v5862_v10  ;;  %v255_v22 = vld [vmem:[%s5791_s2] sm:$0xff]  ;;  %vm332_vm3 = vcmask 15360   ;;  %v256_v26 = vld [vmem:[%s5791_s2 + $0x8] sm:$0xff]  ;;  %s5824_s6 = smov 127   ;;  %s3081_s5 = smov 51  }
  0x5c   : > { %236 = vadd.xlane.f32.xlu0 %v235_v3  ;;  %244 = vmax.xlane.f32.xlu1 %v243_v4  ;;  %vm339_vm4 = vcmask 1041408   ;;  %v3080_v29 = vmov 0   ;;  %s3082_s7 = smov 50   ;;  %s3083_s26 = smov 49  }
  0x5d   : > { %vm251_vm1 = vcmp.eq.s32.totalorder %v3331_v12, 0  ;;  %2798 = vmatprep.mubr.msk.f32.mxu1 %vm332_vm3, %v255_v22  ;;  %2918 = vset.pattern.permute.xlu1 %v3080_v29  ;;  %s3084_s8 = smov 48   ;;  %s3085_s25 = smov 47   ;;  %vm492_vm5 = vcmp.lt.s32.totalorder %v3331_v12, 51  ;;  %vm535_vm6 = vcmp.lt.s32.totalorder %v3331_v12, 50  ;;  %vm579_vm7 = vcmp.lt.s32.totalorder %v3331_v12, 49 }
  0x5e   : > { %2919 = vset.pattern.permute.xlu0 %v3080_v29  ;;  %s3086_s11 = smov 46   ;;  %s3087_s14 = smov 45   ;;  %vm623_vm8 = vcmp.lt.s32.totalorder %v3331_v12, 48  ;;  %vm667_vm9 = vcmp.lt.s32.totalorder %v3331_v12, 47  ;;  %vm711_vm10 = vcmp.lt.s32.totalorder %v3331_v12, 46  ;;  %vm755_vm11 = vcmp.lt.s32.totalorder %v3331_v12, 45 }
  0x5f   : > { %s3088_s21 = smov 35   ;;  %s3089_s23 = smov 34   ;;  %vm799_vm12 = vcmp.lt.s32.totalorder %v3331_v12, 35  ;;  %vm843_vm13 = vcmp.lt.s32.totalorder %v3331_v12, 34  ;;  %vm887_vm14 = vcmp.lt.s32.totalorder %v3331_v12, 33  ;;  %vm931_vm15 = vcmp.lt.s32.totalorder %v3331_v12, 32 }
  0x60   : > { %239 = vadd.xlane.f32.xlu0 %v238_v6  ;;  %247 = vmax.xlane.f32.xlu1 %v246_v7  ;;  %s3090_s9 = smov 33   ;;  %s5798_s28 = smov 32   ;;  %vm975_vm0 = vcmp.lt.s32.totalorder %v3331_v12, 31 }
  0x61   : > { %s5800_s29 = smov 31   ;;  %s5802_s10 = smov 30  }
  0x62   : > { %s5804_s13 = smov 29  }
  0xe9   : > { %v237_v11 = vpop.xlane.xlu0 %236  ;;  %v245_v13 = vpop.xlane.xlu1 %244 }
  0xea   : > { %v241_v14 = vmul.f32 0.00390625, %v237_v11 }
  0xec   : > { %v252_v18 = vsel %vm251_vm1, %v241_v14, %v245_v13 }
  0xed   : > { %v240_v15 = vpop.xlane.xlu0 %239  ;;  %v248_v16 = vpop.xlane.xlu1 %247 }
  0xee   : > { %v242_v17 = vmul.f32 0.00390625, %v240_v15 }
  0xf0   : > { %v253_v19 = vsel %vm251_vm1, %v242_v17, %v248_v16  ;;  %vm1019_vm1 = vcmp.lt.s32.totalorder %v3331_v12, 30 }
  0xf1   : > { %v2802_v20 = vpack.c.bf16 %v253_v19, %v252_v18 }
  0xf3   : > { %2803 = vmatpush3.bf16.msra.mxu0 %v2802_v20 }
  0xf6   : > { %2794 = vmatmul.mubr.msk.f32.vlgmr.msra.gmra.mrb[0].mxu0 %vm257_vm2, %v254_v21  ;;  %vm1063_vm2 = vcmp.lt.s32.totalorder %v3331_v12, 29 }
 0x1c9   : > { %v327_v23 = vpop.f32.mrb[0].mxu0 }
 0x1ca   : > { %v331_v24 = vmax.f32 %v327_v23, 0.0  ;;  %v2795_v25 = vpop.f32.mrb[1].mxu0 }
 0x1cc   : > { %2796 = vmatprep.subr.msk.mxu1 %vm339_vm4, %v331_v24 }
 0x1cd   : > { %2797 = vmatpush3.msk.msra.mxu1 %vm339_vm4, %v331_v24  ;;  %vm1151_vm4 = vcmp.lt.s32.totalorder %v3331_v12, 18 }
 0x1ce   : > { %2799 = vmatmul.mubr.msk.f32.vlgmr.msra.gmra.mrb[0].mxu1 %vm332_vm3, %v256_v26  ;;  %vm1107_vm3 = vcmp.lt.s32.totalorder %v3331_v12, 19 }
 0x2a1   : > { %v2800_v27 = vpop.f32.mrb[0].mxu1 }
 0x2a2   : > { %422 = vrot.lane.b32.xlu1 %v2800_v27, %s5824_s6  ;;  %v409_v28 = vpop.f32.mrb[1].mxu1 }
 0x2a3   : > { %420 = vrot.lane.b32.xlu0 %v409_v28, %s5824_s6 }
 0x314   : > { %v423_v30 = vpop.permute.xlu1 %422 }
 0x315   : > { %v427_v31 = vadd.f32 %v2800_v27, %v423_v30  ;;  %v421_v32 = vpop.permute.xlu0 %420 }
 0x316   : > { %v426_v33 = vadd.f32 %v421_v32, %v409_v28 }
 0x317   : > { %v2773_v34 = vmul.f32 -1.442695, %v427_v31 }
 0x318   : > { %v2772_v35 = vmul.f32 -1.442695, %v426_v33 }
 0x319   : > { %2920 = vpow2.f32 %v2773_v34 }
 0x31a   : > { %2922 = vpow2.f32 %v2772_v35 }
 0x323   : > { %v2921_v36 = vpop.eup %2920 }
 0x324   : > { %v2923_v37 = vpop.eup %2922  ;;  %v435_v38 = vadd.f32 1.0, %v2921_v36 }
 0x325   : > { %v434_v39 = vadd.f32 1.0, %v2923_v37 }
 0x326   : > { %2924 = vrcp.f32 %v435_v38 }
 0x327   : > { %2926 = vrcp.f32 %v434_v39 }
 0x330   : > { %v2925_v40 = vpop.eup %2924 }
 0x331   : > { %447 = vperm.xlu1 %2918, %v2925_v40   ;;  %v2927_v41 = vpop.eup %2926 }
 0x335   : > { %442 = vperm.xlu1 %2918, %v2927_v41  }
 0x3b0   : > { %v3345_v42 = vpop.permute.xlu1 %447 }
 0x3b1   : > { %5992 = vst [vmem:[#allocation11_spill] sm:$0xff] %v3345_v42  ;;  %v452_v44 = vmul.f32 %v3345_v42, %v3317_v2  ;;  %v453_v45 = vmul.f32 %v3345_v42, %v3324_v5 }
 0x3b4   : > { %v3347_v43 = vpop.permute.xlu1 %442 }
 0x3b5   : > { %5993 = vst [vmem:[#allocation12_spill] sm:$0xff] %v3347_v43  ;;  %v450_v46 = vmul.f32 %v3347_v43, %v3311_v0  ;;  %v451_v47 = vmul.f32 %v3347_v43, %v3314_v1 }
 0x3b7   : > { %v3357_v48 = vadd.f32 %v452_v44, %v450_v46  ;;  %v3359_v49 = vadd.f32 %v453_v45, %v451_v47  ;;  %v470_v50 = vmax.f32 %v450_v46, %v452_v44  ;;  %v477_v51 = vmax.f32 %v451_v47, %v453_v45 }
 0x3b9   : > { %v471_v52 = vrot.slane %v470_v50, 4  ;;  %v478_v53 = vrot.slane %v477_v51, 4  ;;  %v455_v26 = vrot.slane %v3357_v48, 4  ;;  %v462_v27 = vrot.slane %v3359_v49, 4 }
 0x3bb   : > { %v472_v54 = vmax.f32 %v470_v50, %v471_v52  ;;  %v479_v55 = vmax.f32 %v477_v51, %v478_v53  ;;  %v456_v30 = vadd.f32 %v455_v26, %v3357_v48  ;;  %v463_v31 = vadd.f32 %v462_v27, %v3359_v49 }
 0x3bd   : > { %v473_v56 = vrot.slane %v472_v54, 2  ;;  %v480_v57 = vrot.slane %v479_v55, 2  ;;  %v457_v34 = vrot.slane %v456_v30, 2  ;;  %v464_v35 = vrot.slane %v463_v31, 2 }
 0x3bf   : > { %v474_v58 = vmax.f32 %v472_v54, %v473_v56  ;;  %v481_v59 = vmax.f32 %v479_v55, %v480_v57  ;;  %v458_v38 = vadd.f32 %v457_v34, %v456_v30  ;;  %v465_v39 = vadd.f32 %v464_v35, %v463_v31 }
 0x3c1   : > { %v475_v60 = vrot.slane %v474_v58, 1  ;;  %v482_v61 = vrot.slane %v481_v59, 1  ;;  %v459_v44 = vrot.slane %v458_v38, 1  ;;  %v466_v45 = vrot.slane %v465_v39, 1 }
 0x3c3   : > { %v3361_v62 = vmax.f32 %v474_v58, %v475_v60  ;;  %v3363_v63 = vmax.f32 %v481_v59, %v482_v61  ;;  %v460_v48 = vadd.f32 %v459_v44, %v458_v38  ;;  %v467_v49 = vadd.f32 %v466_v45, %v465_v39 }
 0x3c5   : > { %5994 = vst [vmem:[#allocation13_spill] sm:$0xff] %v3361_v62  ;;  %5995 = vst [vmem:[#allocation14_spill] sm:$0xff] %v3363_v63  ;;  %490 = vrot.lane.b32.xlu1 %v3363_v63, %s3081_s5  ;;  %488 = vrot.lane.b32.xlu0 %v3361_v62, %s3081_s5  ;;  %v3629_v52 = vmul.f32 0.0625, %v460_v48  ;;  %v3631_v53 = vmul.f32 0.0625, %v467_v49 }
 0x3c9   : > { %533 = vrot.lane.b32.xlu1 %v3363_v63, %s3082_s7  ;;  %531 = vrot.lane.b32.xlu0 %v3361_v62, %s3082_s7 }
 0x3cd   : > { %577 = vrot.lane.b32.xlu1 %v3363_v63, %s3083_s26  ;;  %575 = vrot.lane.b32.xlu0 %v3361_v62, %s3083_s26 }
 0x3d1   : > { %621 = vrot.lane.b32.xlu1 %v3363_v63, %s3084_s8  ;;  %619 = vrot.lane.b32.xlu0 %v3361_v62, %s3084_s8 }
 0x3d5   : > { %665 = vrot.lane.b32.xlu1 %v3363_v63, %s3085_s25  ;;  %663 = vrot.lane.b32.xlu0 %v3361_v62, %s3085_s25 }
 0x3d9   : > { %709 = vrot.lane.b32.xlu1 %v3363_v63, %s3086_s11  ;;  %707 = vrot.lane.b32.xlu0 %v3361_v62, %s3086_s11 }
 0x3dd   : > { %753 = vrot.lane.b32.xlu1 %v3363_v63, %s3087_s14  ;;  %751 = vrot.lane.b32.xlu0 %v3361_v62, %s3087_s14 }
 0x3e1   : > { %797 = vrot.lane.b32.xlu1 %v3363_v63, %s3088_s21  ;;  %795 = vrot.lane.b32.xlu0 %v3361_v62, %s3088_s21 }
 0x3e5   : > { %841 = vrot.lane.b32.xlu1 %v3363_v63, %s3089_s23  ;;  %839 = vrot.lane.b32.xlu0 %v3361_v62, %s3089_s23 }
 0x3e9   : > { %885 = vrot.lane.b32.xlu1 %v3363_v63, %s3090_s9  ;;  %883 = vrot.lane.b32.xlu0 %v3361_v62, %s3090_s9 }
 0x3ed   : > { %929 = vrot.lane.b32.xlu1 %v3363_v63, %s5798_s28  ;;  %927 = vrot.lane.b32.xlu0 %v3361_v62, %s5798_s28  ;;  %s5806_s28 = smov 19  }
 0x3f1   : > { %973 = vrot.lane.b32.xlu1 %v3363_v63, %s5800_s29  ;;  %971 = vrot.lane.b32.xlu0 %v3361_v62, %s5800_s29  ;;  %s5808_s29 = smov 18  }
 0x3f5   : > { %1017 = vrot.lane.b32.xlu1 %v3363_v63, %s5802_s10  ;;  %1015 = vrot.lane.b32.xlu0 %v3361_v62, %s5802_s10  ;;  %s5810_s10 = smov 17  }
 0x3f9   : > { %1061 = vrot.lane.b32.xlu1 %v3363_v63, %s5804_s13  ;;  %1059 = vrot.lane.b32.xlu0 %v3361_v62, %s5804_s13  ;;  %s5812_s13 = smov 16  }
 0x3fd   : > { %1105 = vrot.lane.b32.xlu1 %v3363_v63, %s5806_s28  ;;  %1103 = vrot.lane.b32.xlu0 %v3361_v62, %s5806_s28  ;;  %s5814_s28 = smov 15  }
 0x401   : > { %1149 = vrot.lane.b32.xlu1 %v3363_v63, %s5808_s29  ;;  %1147 = vrot.lane.b32.xlu0 %v3361_v62, %s5808_s29  ;;  %s5816_s29 = smov 14  }
 0x405   : > { %1193 = vrot.lane.b32.xlu1 %v3363_v63, %s5810_s10  ;;  %1191 = vrot.lane.b32.xlu0 %v3361_v62, %s5810_s10  ;;  %s3101_s10 = smov 13  }
 0x409   : > { %1237 = vrot.lane.b32.xlu1 %v3363_v63, %s5812_s13  ;;  %1235 = vrot.lane.b32.xlu0 %v3361_v62, %s5812_s13  ;;  %s5818_s13 = smov 3  }
 0x40d   : > { %1281 = vrot.lane.b32.xlu1 %v3363_v63, %s5814_s28  ;;  %1279 = vrot.lane.b32.xlu0 %v3361_v62, %s5814_s28  ;;  %s5820_s28 = smov 2  }
 0x411   : > { %1325 = vrot.lane.b32.xlu1 %v3363_v63, %s5816_s29  ;;  %1323 = vrot.lane.b32.xlu0 %v3361_v62, %s5816_s29  ;;  %s5822_s29 = smov 1  }
 0x415   : > { %1369 = vrot.lane.b32.xlu1 %v3363_v63, %s3101_s10  ;;  %1367 = vrot.lane.b32.xlu0 %v3361_v62, %s3101_s10 }
 0x419   : > { %1413 = vrot.lane.b32.xlu1 %v3363_v63, %s5818_s13  ;;  %1411 = vrot.lane.b32.xlu0 %v3361_v62, %s5818_s13  ;;  %s5826_s13 = smov 126  }
 0x41d   : > { %1457 = vrot.lane.b32.xlu1 %v3363_v63, %s5820_s28  ;;  %1455 = vrot.lane.b32.xlu0 %v3361_v62, %s5820_s28  ;;  %s3106_s28 = smov 125  }
 0x421   : > { %1501 = vrot.lane.b32.xlu1 %v3363_v63, %s5822_s29  ;;  %1499 = vrot.lane.b32.xlu0 %v3361_v62, %s5822_s29  ;;  %s5828_s29 = smov 115  }
 0x425   : > { %1576 = vrot.lane.b32.xlu1 %v3363_v63, %s5824_s6  ;;  %1574 = vrot.lane.b32.xlu0 %v3361_v62, %s5824_s6  ;;  %s5830_s6 = smov 114  }
 0x429   : > { %1620 = vrot.lane.b32.xlu1 %v3363_v63, %s5826_s13  ;;  %1618 = vrot.lane.b32.xlu0 %v3361_v62, %s5826_s13  ;;  %s5832_s13 = smov 113  }
 0x42d   : > { %1664 = vrot.lane.b32.xlu1 %v3363_v63, %s3106_s28  ;;  %1662 = vrot.lane.b32.xlu0 %v3361_v62, %s3106_s28 }
 0x431   : > { %1708 = vrot.lane.b32.xlu1 %v3363_v63, %s5828_s29  ;;  %1706 = vrot.lane.b32.xlu0 %v3361_v62, %s5828_s29  ;;  %s5834_s29 = smov 112  }
 0x435   : > { %1752 = vrot.lane.b32.xlu1 %v3363_v63, %s5830_s6  ;;  %1750 = vrot.lane.b32.xlu0 %v3361_v62, %s5830_s6  ;;  %s5836_s6 = smov 111  }
 0x437   : > { %v3481_v0 = vpop.permute.xlu1 %490  ;;  %v3483_v1 = vpop.permute.xlu0 %488 }
 0x439   : > { %1796 = vrot.lane.b32.xlu1 %v3363_v63, %s5832_s13  ;;  %1794 = vrot.lane.b32.xlu0 %v3361_v62, %s5832_s13  ;;  %s5838_s13 = smov 110  }
 0x43b   : > { %v3489_v2 = vpop.permute.xlu1 %533  ;;  %v3491_v3 = vpop.permute.xlu0 %531 }
 0x43d   : > { %1840 = vrot.lane.b32.xlu1 %v3363_v63, %s5834_s29  ;;  %1838 = vrot.lane.b32.xlu0 %v3361_v62, %s5834_s29  ;;  %s5840_s29 = smov 109  }
 0x43f   : > { %v3497_v4 = vpop.permute.xlu1 %577  ;;  %v3499_v5 = vpop.permute.xlu0 %575 }
 0x441   : > { %1884 = vrot.lane.b32.xlu1 %v3363_v63, %s5836_s6  ;;  %1882 = vrot.lane.b32.xlu0 %v3361_v62, %s5836_s6  ;;  %s5842_s6 = smov 99  }
 0x443   : > { %v3505_v6 = vpop.permute.xlu1 %621  ;;  %v3507_v7 = vpop.permute.xlu0 %619 }
 0x445   : > { %1928 = vrot.lane.b32.xlu1 %v3363_v63, %s5838_s13  ;;  %1926 = vrot.lane.b32.xlu0 %v3361_v62, %s5838_s13  ;;  %s5844_s13 = smov 98  }
 0x447   : > { %v3513_v8 = vpop.permute.xlu1 %665  ;;  %v3515_v9 = vpop.permute.xlu0 %663 }
 0x449   : > { %1972 = vrot.lane.b32.xlu1 %v3363_v63, %s5840_s29  ;;  %1970 = vrot.lane.b32.xlu0 %v3361_v62, %s5840_s29  ;;  %s5846_s29 = smov 97  }
 0x44b   : > { %v3521_v11 = vpop.permute.xlu1 %709  ;;  %v3523_v13 = vpop.permute.xlu0 %707 }
 0x44d   : > { %2016 = vrot.lane.b32.xlu1 %v3363_v63, %s5842_s6  ;;  %2014 = vrot.lane.b32.xlu0 %v3361_v62, %s5842_s6  ;;  %s5848_s6 = smov 96  }
 0x44f   : > { %v3529_v14 = vpop.permute.xlu1 %753  ;;  %v3531_v15 = vpop.permute.xlu0 %751 }
 0x451   : > { %2060 = vrot.lane.b32.xlu1 %v3363_v63, %s5844_s13  ;;  %2058 = vrot.lane.b32.xlu0 %v3361_v62, %s5844_s13  ;;  %s3118_s13 = smov 95  }
 0x453   : > { %v3537_v16 = vpop.permute.xlu1 %797  ;;  %v3539_v17 = vpop.permute.xlu0 %795 }
 0x455   : > { %2104 = vrot.lane.b32.xlu1 %v3363_v63, %s5846_s29  ;;  %2102 = vrot.lane.b32.xlu0 %v3361_v62, %s5846_s29  ;;  %s5850_s29 = smov 94  }
 0x457   : > { %v3545_v18 = vpop.permute.xlu1 %841  ;;  %v3547_v19 = vpop.permute.xlu0 %839 }
 0x459   : > { %2148 = vrot.lane.b32.xlu1 %v3363_v63, %s5848_s6  ;;  %2146 = vrot.lane.b32.xlu0 %v3361_v62, %s5848_s6  ;;  %s5852_s6 = smov 93  }
 0x45b   : > { %v3553_v20 = vpop.permute.xlu1 %885  ;;  %v3555_v21 = vpop.permute.xlu0 %883 }
 0x45d   : > { %2192 = vrot.lane.b32.xlu1 %v3363_v63, %s3118_s13  ;;  %2190 = vrot.lane.b32.xlu0 %v3361_v62, %s3118_s13 }
 0x45f   : > { %v3561_v22 = vpop.permute.xlu1 %929  ;;  %v3563_v23 = vpop.permute.xlu0 %927 }
 0x461   : > { %2236 = vrot.lane.b32.xlu1 %v3363_v63, %s5850_s29  ;;  %2234 = vrot.lane.b32.xlu0 %v3361_v62, %s5850_s29  ;;  %s5854_s29 = smov 83  }
 0x463   : > { %v3569_v24 = vpop.permute.xlu1 %973  ;;  %v3571_v25 = vpop.permute.xlu0 %971 }
 0x464   : > { %5996 = vst [vmem:[#allocation15_spill] sm:$0xff] %v3569_v24  ;;  %5997 = vst [vmem:[#allocation16_spill] sm:$0xff] %v3571_v25 }
 0x465   : > { %2280 = vrot.lane.b32.xlu1 %v3363_v63, %s5852_s6  ;;  %2278 = vrot.lane.b32.xlu0 %v3361_v62, %s5852_s6  ;;  %s5856_s6 = smov 82  }
 0x467   : > { %v3579_v28 = vpop.permute.xlu1 %1017  ;;  %v3581_v29 = vpop.permute.xlu0 %1015 }
 0x468   : > { %5998 = vst [vmem:[#allocation17_spill] sm:$0xff] %v3579_v28  ;;  %5999 = vst [vmem:[#allocation18_spill] sm:$0xff] %v3581_v29 }
 0x469   : > { %2324 = vrot.lane.b32.xlu1 %v3363_v63, %s5854_s29  ;;  %2322 = vrot.lane.b32.xlu0 %v3361_v62, %s5854_s29  ;;  %s5858_s29 = smov 81  }
 0x46b   : > { %v3589_v32 = vpop.permute.xlu1 %1061  ;;  %v3591_v33 = vpop.permute.xlu0 %1059 }
 0x46c   : > { %6000 = vst [vmem:[#allocation19_spill] sm:$0xff] %v3589_v32  ;;  %6001 = vst [vmem:[#allocation20_spill] sm:$0xff] %v3591_v33  ;;  %v3983_v32 = vld [vmem:[#allocation5 + $0x40] ss:$8 sm:$0xf] }
 0x46d   : > { %2368 = vrot.lane.b32.xlu1 %v3363_v63, %s5856_s6  ;;  %2366 = vrot.lane.b32.xlu0 %v3361_v62, %s5856_s6  ;;  %s5860_s6 = smov 80  }
 0x46f   : > { %v3597_v36 = vpop.permute.xlu1 %1105  ;;  %v3599_v37 = vpop.permute.xlu0 %1103 }
 0x470   : > { %6002 = vst [vmem:[#allocation21_spill] sm:$0xff] %v3597_v36  ;;  %6003 = vst [vmem:[#allocation22_spill] sm:$0xff] %v3599_v37 }
 0x471   : > { %2412 = vrot.lane.b32.xlu1 %v3363_v63, %s5858_s29  ;;  %2410 = vrot.lane.b32.xlu0 %v3361_v62, %s5858_s29  ;;  %s3125_s29 = smov 79  }
 0x473   : > { %v3605_v40 = vpop.permute.xlu1 %1149  ;;  %v3607_v41 = vpop.permute.xlu0 %1147 }
 0x474   : > { %6004 = vst [vmem:[#allocation23_spill] sm:$0xff] %v3605_v40  ;;  %6005 = vst [vmem:[#allocation24_spill] sm:$0xff] %v3607_v41 }
 0x475   : > { %2456 = vrot.lane.b32.xlu1 %v3363_v63, %s5860_s6  ;;  %2454 = vrot.lane.b32.xlu0 %v3361_v62, %s5860_s6  ;;  %s3126_s6 = smov 78  }
 0x477   : > { %v3613_v46 = vpop.permute.xlu1 %1193  ;;  %v3615_v47 = vpop.permute.xlu0 %1191 }
 0x478   : > { %6006 = vst [vmem:[#allocation25_spill] sm:$0xff] %v3613_v46  ;;  %6007 = vst [vmem:[#allocation26_spill] sm:$0xff] %v3615_v47  ;;  %v3907_v47 = vld [vmem:[#allocation5 + $0x23] ss:$8 sm:$0xf] }
 0x479   : > { %2500 = vrot.lane.b32.xlu1 %v3363_v63, %s3125_s29  ;;  %2498 = vrot.lane.b32.xlu0 %v3361_v62, %s3125_s29 }
 0x47b   : > { %v3621_v50 = vpop.permute.xlu1 %1237  ;;  %v3623_v51 = vpop.permute.xlu0 %1235 }
 0x47c   : > { %6008 = vst [vmem:[#allocation27_spill] sm:$0xff] %v3621_v50  ;;  %6009 = vst [vmem:[#allocation28_spill] sm:$0xff] %v3623_v51  ;;  %v3899_v51 = vld [vmem:[#allocation5 + $0x22] ss:$8 sm:$0xf] }
 0x47d   : > { %2544 = vrot.lane.b32.xlu1 %v3363_v63, %s3126_s6  ;;  %2542 = vrot.lane.b32.xlu0 %v3361_v62, %s3126_s6 }
 0x47f   : > { %v3633_v54 = vpop.permute.xlu1 %1281  ;;  %v3635_v55 = vpop.permute.xlu0 %1279 }
 0x480   : > { %6010 = vst [vmem:[#allocation29_spill] sm:$0xff] %v3633_v54  ;;  %6011 = vst [vmem:[#allocation30_spill] sm:$0xff] %v3635_v55  ;;  %v3897_v54 = vld [vmem:[#allocation5 + $0x21] ss:$8 sm:$0xf] }
 0x481   : > { %486 = vrot.lane.b32.xlu1 %v3631_v53, %s3081_s5  ;;  %484 = vrot.lane.b32.xlu0 %v3629_v52, %s3081_s5  ;;  %s6032_s5 = smov 32  }
 0x483   : > { %v3641_v56 = vpop.permute.xlu1 %1325  ;;  %v3643_v57 = vpop.permute.xlu0 %1323 }
 0x484   : > { %6012 = vst [vmem:[#allocation31_spill] sm:$0xff] %v3641_v56  ;;  %6013 = vst [vmem:[#allocation32_spill] sm:$0xff] %v3643_v57  ;;  %v3909_v57 = vld [vmem:[#allocation5 + $0x24] ss:$8 sm:$0xf] }
 0x485   : > { %529 = vrot.lane.b32.xlu1 %v3631_v53, %s3082_s7  ;;  %527 = vrot.lane.b32.xlu0 %v3629_v52, %s3082_s7  ;;  %s6035_s7 = smov 31  }
 0x487   : > { %v3649_v58 = vpop.permute.xlu1 %1369  ;;  %v3651_v59 = vpop.permute.xlu0 %1367 }
 0x488   : > { %6014 = vst [vmem:[#allocation33_spill] sm:$0xff] %v3649_v58  ;;  %6015 = vst [vmem:[#allocation34_spill] sm:$0xff] %v3651_v59  ;;  %v3887_v59 = vld [vmem:[#allocation5 + $0x20] ss:$8 sm:$0xf] }
 0x489   : > { %573 = vrot.lane.b32.xlu1 %v3631_v53, %s3083_s26  ;;  %571 = vrot.lane.b32.xlu0 %v3629_v52, %s3083_s26  ;;  %s6038_s26 = smov 30  }
 0x48b   : > { %v3657_v60 = vpop.permute.xlu1 %1413  ;;  %v3659_v61 = vpop.permute.xlu0 %1411 }
 0x48c   : > { %6016 = vst [vmem:[#allocation35_spill] sm:$0xff] %v3657_v60  ;;  %6017 = vst [vmem:[#allocation36_spill] sm:$0xff] %v3659_v61  ;;  %v3876_v61 = vld [vmem:[#allocation5 + $0x5] ss:$8 sm:$0xf] }
 0x48d   : > { %617 = vrot.lane.b32.xlu1 %v3631_v53, %s3084_s8  ;;  %615 = vrot.lane.b32.xlu0 %v3629_v52, %s3084_s8  ;;  %s6041_s8 = smov 29   ;;  %v3878_v60 = vld [vmem:[#allocation5 + $0x6] ss:$8 sm:$0xf] }
 0x48f   : > { %v3665_v26 = vpop.permute.xlu1 %1457  ;;  %v3667_v27 = vpop.permute.xlu0 %1455 }
 0x490   : > { %6018 = vst [vmem:[#allocation37_spill] sm:$0xff] %v3665_v26  ;;  %6019 = vst [vmem:[#allocation38_spill] sm:$0xff] %v3667_v27 }
 0x491   : > { %661 = vrot.lane.b32.xlu1 %v3631_v53, %s3085_s25  ;;  %659 = vrot.lane.b32.xlu0 %v3629_v52, %s3085_s25  ;;  %s6044_s25 = smov 19  }
 0x493   : > { %v3673_v30 = vpop.permute.xlu1 %1501  ;;  %v3675_v31 = vpop.permute.xlu0 %1499 }
 0x494   : > { %6020 = vst [vmem:[#allocation39_spill] sm:$0xff] %v3673_v30  ;;  %6021 = vst [vmem:[#allocation40_spill] sm:$0xff] %v3675_v31  ;;  %v3871_v31 = vld [vmem:[#allocation5 + $0x4] ss:$8 sm:$0xf] }
 0x495   : > { %705 = vrot.lane.b32.xlu1 %v3631_v53, %s3086_s11  ;;  %703 = vrot.lane.b32.xlu0 %v3629_v52, %s3086_s11  ;;  %s6047_s11 = smov 18  }
 0x497   : > { %v3681_v34 = vpop.permute.xlu1 %1576  ;;  %v3683_v35 = vpop.permute.xlu0 %1574 }
 0x498   : > { %6022 = vst [vmem:[#allocation41_spill] sm:$0xff] %v3681_v34  ;;  %6023 = vst [vmem:[#allocation42_spill] sm:$0xff] %v3683_v35 }
 0x499   : > { %749 = vrot.lane.b32.xlu1 %v3631_v53, %s3087_s14  ;;  %747 = vrot.lane.b32.xlu0 %v3629_v52, %s3087_s14  ;;  %s6050_s14 = smov 17  }
 0x49b   : > { %v3689_v38 = vpop.permute.xlu1 %1620  ;;  %v3691_v39 = vpop.permute.xlu0 %1618 }
 0x49c   : > { %6024 = vst [vmem:[#allocation43_spill] sm:$0xff] %v3689_v38  ;;  %6025 = vst [vmem:[#allocation44_spill] sm:$0xff] %v3691_v39 }
 0x49d   : > { %793 = vrot.lane.b32.xlu1 %v3631_v53, %s3088_s21  ;;  %791 = vrot.lane.b32.xlu0 %v3629_v52, %s3088_s21  ;;  %s6053_s21 = smov 16  }
 0x49f   : > { %v3697_v44 = vpop.permute.xlu1 %1664  ;;  %v3699_v45 = vpop.permute.xlu0 %1662 }
 0x4a0   : > { %6026 = vst [vmem:[#allocation45_spill] sm:$0xff] %v3697_v44  ;;  %6027 = vst [vmem:[#allocation46_spill] sm:$0xff] %v3699_v45 }
 0x4a1   : > { %837 = vrot.lane.b32.xlu1 %v3631_v53, %s3089_s23  ;;  %835 = vrot.lane.b32.xlu0 %v3629_v52, %s3089_s23  ;;  %s6056_s23 = smov 15  }
 0x4a3   : > { %v3705_v48 = vpop.permute.xlu1 %1708  ;;  %v3707_v49 = vpop.permute.xlu0 %1706 }
 0x4a4   : > { %6028 = vst [vmem:[#allocation47_spill] sm:$0xff] %v3705_v48  ;;  %6029 = vst [vmem:[#allocation48_spill] sm:$0xff] %v3707_v49 }
 0x4a5   : > { %881 = vrot.lane.b32.xlu1 %v3631_v53, %s3090_s9  ;;  %879 = vrot.lane.b32.xlu0 %v3629_v52, %s3090_s9  ;;  %s6059_s9 = smov 14  }
 0x4a7   : > { %v3713_v10 = vpop.permute.xlu1 %1752  ;;  %v3715_v42 = vpop.permute.xlu0 %1750 }
 0x4a8   : > { %6030 = vst [vmem:[#allocation49_spill] sm:$0xff] %v3713_v10  ;;  %6031 = vst [vmem:[#allocation50_spill] sm:$0xff] %v3715_v42 }
 0x4a9   : > { %925 = vrot.lane.b32.xlu1 %v3631_v53, %s6032_s5  ;;  %923 = vrot.lane.b32.xlu0 %v3629_v52, %s6032_s5  ;;  %s6064_s5 = smov 3  }
 0x4ab   : > { %v3721_v43 = vpop.permute.xlu1 %1796  ;;  %v3723_v48 = vpop.permute.xlu0 %1794 }
 0x4ac   : > { %6033 = vst [vmem:[#allocation51_spill] sm:$0xff] %v3721_v43  ;;  %6034 = vst [vmem:[#allocation52_spill] sm:$0xff] %v3723_v48 }
 0x4ad   : > { %969 = vrot.lane.b32.xlu1 %v3631_v53, %s6035_s7  ;;  %967 = vrot.lane.b32.xlu0 %v3629_v52, %s6035_s7  ;;  %s6067_s7 = smov 2  }
 0x4af   : > { %v3729_v49 = vpop.permute.xlu1 %1840  ;;  %v3731_v10 = vpop.permute.xlu0 %1838 }
 0x4b0   : > { %6036 = vst [vmem:[#allocation53_spill] sm:$0xff] %v3729_v49  ;;  %6037 = vst [vmem:[#allocation54_spill] sm:$0xff] %v3731_v10 }
 0x4b1   : > { %1013 = vrot.lane.b32.xlu1 %v3631_v53, %s6038_s26  ;;  %1011 = vrot.lane.b32.xlu0 %v3629_v52, %s6038_s26  ;;  %s6073_s26 = smov 127  }
 0x4b3   : > { %v3737_v42 = vpop.permute.xlu1 %1884  ;;  %v3739_v43 = vpop.permute.xlu0 %1882 }
 0x4b4   : > { %6039 = vst [vmem:[#allocation55_spill] sm:$0xff] %v3737_v42  ;;  %6040 = vst [vmem:[#allocation56_spill] sm:$0xff] %v3739_v43 }
 0x4b5   : > { %1057 = vrot.lane.b32.xlu1 %v3631_v53, %s6041_s8  ;;  %1055 = vrot.lane.b32.xlu0 %v3629_v52, %s6041_s8  ;;  %s6077_s8 = smov 126  }
 0x4b7   : > { %v3745_v48 = vpop.permute.xlu1 %1928  ;;  %v3747_v49 = vpop.permute.xlu0 %1926 }
 0x4b8   : > { %6042 = vst [vmem:[#allocation57_spill] sm:$0xff] %v3745_v48  ;;  %6043 = vst [vmem:[#allocation58_spill] sm:$0xff] %v3747_v49 }
 0x4b9   : > { %1101 = vrot.lane.b32.xlu1 %v3631_v53, %s6044_s25  ;;  %1099 = vrot.lane.b32.xlu0 %v3629_v52, %s6044_s25  ;;  %s6089_s25 = smov 114  }
 0x4bb   : > { %v3753_v10 = vpop.permute.xlu1 %1972  ;;  %v3755_v42 = vpop.permute.xlu0 %1970 }
 0x4bc   : > { %6045 = vst [vmem:[#allocation59_spill] sm:$0xff] %v3753_v10  ;;  %6046 = vst [vmem:[#allocation60_spill] sm:$0xff] %v3755_v42 }
 0x4bd   : > { %1145 = vrot.lane.b32.xlu1 %v3631_v53, %s6047_s11  ;;  %1143 = vrot.lane.b32.xlu0 %v3629_v52, %s6047_s11  ;;  %s6092_s11 = smov 113  }
 0x4bf   : > { %v3761_v43 = vpop.permute.xlu1 %2016  ;;  %v3763_v48 = vpop.permute.xlu0 %2014 }
 0x4c0   : > { %6048 = vst [vmem:[#allocation61_spill] sm:$0xff] %v3761_v43  ;;  %6049 = vst [vmem:[#allocation62_spill] sm:$0xff] %v3763_v48 }
 0x4c1   : > { %1189 = vrot.lane.b32.xlu1 %v3631_v53, %s6050_s14  ;;  %1187 = vrot.lane.b32.xlu0 %v3629_v52, %s6050_s14  ;;  %s6093_s14 = smov 112  }
 0x4c3   : > { %v3769_v49 = vpop.permute.xlu1 %2060  ;;  %v3771_v10 = vpop.permute.xlu0 %2058 }
 0x4c4   : > { %6051 = vst [vmem:[#allocation63_spill] sm:$0xff] %v3769_v49  ;;  %6052 = vst [vmem:[#allocation64_spill] sm:$0xff] %v3771_v10 }
 0x4c5   : > { %1233 = vrot.lane.b32.xlu1 %v3631_v53, %s6053_s21  ;;  %1231 = vrot.lane.b32.xlu0 %v3629_v52, %s6053_s21 }
 0x4c7   : > { %v3777_v42 = vpop.permute.xlu1 %2104  ;;  %v3779_v43 = vpop.permute.xlu0 %2102 }
 0x4c8   : > { %6054 = vst [vmem:[#allocation65_spill] sm:$0xff] %v3777_v42  ;;  %6055 = vst [vmem:[#allocation66_spill] sm:$0xff] %v3779_v43 }
 0x4c9   : > { %1277 = vrot.lane.b32.xlu1 %v3631_v53, %s6056_s23  ;;  %1275 = vrot.lane.b32.xlu0 %v3629_v52, %s6056_s23  ;;  %s6094_s23 = smov 111  }
 0x4cb   : > { %v3785_v48 = vpop.permute.xlu1 %2148  ;;  %v3787_v49 = vpop.permute.xlu0 %2146 }
 0x4cc   : > { %6057 = vst [vmem:[#allocation67_spill] sm:$0xff] %v3785_v48  ;;  %6058 = vst [vmem:[#allocation68_spill] sm:$0xff] %v3787_v49 }
 0x4cd   : > { %1321 = vrot.lane.b32.xlu1 %v3631_v53, %s6059_s9  ;;  %1319 = vrot.lane.b32.xlu0 %v3629_v52, %s6059_s9  ;;  %s6097_s9 = smov 110  }
 0x4cf   : > { %v3793_v10 = vpop.permute.xlu1 %2192  ;;  %v3795_v42 = vpop.permute.xlu0 %2190 }
 0x4d0   : > { %6060 = vst [vmem:[#allocation69_spill] sm:$0xff] %v3793_v10  ;;  %6061 = vst [vmem:[#allocation70_spill] sm:$0xff] %v3795_v42 }
 0x4d1   : > { %1365 = vrot.lane.b32.xlu1 %v3631_v53, %s3101_s10  ;;  %1363 = vrot.lane.b32.xlu0 %v3629_v52, %s3101_s10  ;;  %s6070_s10 = smov 1  }
 0x4d3   : > { %v3801_v43 = vpop.permute.xlu1 %2236  ;;  %v3803_v48 = vpop.permute.xlu0 %2234 }
 0x4d4   : > { %6062 = vst [vmem:[#allocation71_spill] sm:$0xff] %v3801_v43  ;;  %6063 = vst [vmem:[#allocation72_spill] sm:$0xff] %v3803_v48 }
 0x4d5   : > { %1409 = vrot.lane.b32.xlu1 %v3631_v53, %s6064_s5  ;;  %1407 = vrot.lane.b32.xlu0 %v3629_v52, %s6064_s5  ;;  %s6099_s5 = smov 109  }
 0x4d7   : > { %v3809_v49 = vpop.permute.xlu1 %2280  ;;  %v3811_v10 = vpop.permute.xlu0 %2278 }
 0x4d8   : > { %6065 = vst [vmem:[#allocation73_spill] sm:$0xff] %v3809_v49  ;;  %6066 = vst [vmem:[#allocation74_spill] sm:$0xff] %v3811_v10 }
 0x4d9   : > { %1453 = vrot.lane.b32.xlu1 %v3631_v53, %s6067_s7  ;;  %1451 = vrot.lane.b32.xlu0 %v3629_v52, %s6067_s7  ;;  %s6101_s7 = smov 99  }
 0x4db   : > { %v3817_v42 = vpop.permute.xlu1 %2324  ;;  %v3819_v43 = vpop.permute.xlu0 %2322 }
 0x4dc   : > { %6068 = vst [vmem:[#allocation75_spill] sm:$0xff] %v3817_v42  ;;  %6069 = vst [vmem:[#allocation76_spill] sm:$0xff] %v3819_v43  ;;  %v6076_v43 = vlaneseq }
 0x4dd   : > { %1497 = vrot.lane.b32.xlu1 %v3631_v53, %s6070_s10  ;;  %1495 = vrot.lane.b32.xlu0 %v3629_v52, %s6070_s10  ;;  %s6103_s10 = smov 98  }
 0x4de   : > { %v500_v45 = vshrl.u32 %v6076_v43, 7  ;;  %v1540_v43 = vld [vmem:[#allocation5 + $0x60] ss:$8 sm:$0xf] }
 0x4df   : > { %v3825_v48 = vpop.permute.xlu1 %2368  ;;  %v3827_v49 = vpop.permute.xlu0 %2366 }
 0x4e0   : > { %6071 = vst [vmem:[#allocation77_spill] sm:$0xff] %v3825_v48  ;;  %6072 = vst [vmem:[#allocation78_spill] sm:$0xff] %v3827_v49  ;;  %v3846_v44 = vsub.s32 3, %v500_v45  ;;  %v3848_v39 = vsub.s32 2, %v500_v45  ;;  %v3850_v38 = vsub.s32 1, %v500_v45 }
 0x4e1   : > { %1572 = vrot.lane.b32.xlu1 %v3631_v53, %s6073_s26  ;;  %1570 = vrot.lane.b32.xlu0 %v3629_v52, %s6073_s26  ;;  %s6105_s26 = smov 97  }
 0x4e2   : > { %6080 = vst [vmem:[#allocation83_spill] sm:$0xff] %v3848_v39  ;;  %v1553_v30 = vrot.slane %v1540_v43, %v3848_v39  ;;  %v1549_v27 = vrot.slane %v1540_v43, %v3850_v38  ;;  %v1557_v26 = vrot.slane %v1540_v43, %v3846_v44 }
 0x4e3   : > { %v3833_v10 = vpop.permute.xlu1 %2412  ;;  %v3835_v42 = vpop.permute.xlu0 %2410 }
 0x4e4   : > { %6074 = vst [vmem:[#allocation79_spill] sm:$0xff] %v3833_v10  ;;  %6075 = vst [vmem:[#allocation80_spill] sm:$0xff] %v3835_v42  ;;  %v3852_v10 = vsub.s32 0, %v500_v45  ;;  %v3858_v42 = vld [vmem:[#allocation5] ss:$8 sm:$0xf]  ;;  %v3912_v56 = vmul.f32 %v1553_v30, %v3361_v62  ;;  %v3915_v55 = vmul.f32 %v1549_v27, %v3631_v53  ;;  %v3918_v46 = vmul.f32 %v1557_v26, %v3363_v63 }
 0x4e5   : > { %1616 = vrot.lane.b32.xlu1 %v3631_v53, %s6077_s8  ;;  %1614 = vrot.lane.b32.xlu0 %v3629_v52, %s6077_s8  ;;  %v3869_v45 = vld [vmem:[#allocation5 + $0x3] ss:$8 sm:$0xf]  ;;  %v3948_v26 = vld [vmem:[#allocation5 + $0x27] ss:$8 sm:$0xf]  ;;  %v510_v30 = vrot.slane %v3858_v42, %v3848_v39 }
 0x4e6   : > { %6086 = vst [vmem:[#allocation88_spill] sm:$0xff] %v3912_v56  ;;  %6087 = vst [vmem:[#allocation89_spill] sm:$0xff] %v3915_v55  ;;  %v3940_v55 = vld [vmem:[#allocation5 + $0x25] ss:$8 sm:$0xf]  ;;  %s6107_s8 = smov 96  }
 0x4e7   : > { %v3842_v48 = vpop.permute.xlu1 %2456  ;;  %v3844_v49 = vpop.permute.xlu0 %2454  ;;  %6088 = vst [vmem:[#allocation90_spill] sm:$0xff] %v3918_v46  ;;  %6091 = vst [vmem:[#allocation92_spill] sm:$0xff] %v3940_v55 }
 0x4e8   : > { %6078 = vst [vmem:[#allocation81_spill] sm:$0xff] %v3842_v48  ;;  %6079 = vst [vmem:[#allocation82_spill] sm:$0xff] %v3844_v49  ;;  %v3861_v49 = vld [vmem:[#allocation5 + $0x1] ss:$8 sm:$0xf] }
 0x4e9   : > { %1660 = vrot.lane.b32.xlu1 %v3631_v53, %s3106_s28  ;;  %1658 = vrot.lane.b32.xlu0 %v3629_v52, %s3106_s28  ;;  %v3863_v48 = vld [vmem:[#allocation5 + $0x2] ss:$8 sm:$0xf]  ;;  %s6083_s28 = smov 115   ;;  %v554_v63 = vrot.slane %v3861_v49, %v3848_v39  ;;  %v546_v40 = vrot.slane %v3861_v49, %v3852_v10 }
 0x4ea   : > { %v598_v37 = vrot.slane %v3863_v48, %v3848_v39  ;;  %v590_v25 = vrot.slane %v3863_v48, %v3852_v10 }
 0x4eb   : > { %v3865_v35 = vpop.permute.xlu1 %2500  ;;  %v3867_v34 = vpop.permute.xlu0 %2498 }
 0x4ec   : > { %6081 = vst [vmem:[#allocation84_spill] sm:$0xff] %v3865_v35  ;;  %6082 = vst [vmem:[#allocation85_spill] sm:$0xff] %v3867_v34  ;;  %v1545_v34 = vrot.slane %v1540_v43, %v3852_v10  ;;  %v3885_v35 = vld [vmem:[#allocation5 + $0x7] ss:$8 sm:$0xf] }
 0x4ed   : > { %1704 = vrot.lane.b32.xlu1 %v3631_v53, %s6083_s28  ;;  %1702 = vrot.lane.b32.xlu0 %v3629_v52, %s6083_s28  ;;  %s6114_s28 = smov 93  }
 0x4ee   : > { %v3930_v27 = vmul.f32 %v1545_v34, %v3629_v52 }
 0x4ef   : > { %v3901_v43 = vpop.permute.xlu1 %2544  ;;  %v3903_v50 = vpop.permute.xlu0 %2542 }
 0x4f0   : > { %6084 = vst [vmem:[#allocation86_spill] sm:$0xff] %v3901_v43  ;;  %6085 = vst [vmem:[#allocation87_spill] sm:$0xff] %v3903_v50  ;;  %v502_v50 = vrot.slane %v3858_v42, %v3852_v10  ;;  %v506_v43 = vrot.slane %v3858_v42, %v3850_v38 }
 0x4f1   : > { %1748 = vrot.lane.b32.xlu1 %v3631_v53, %s6089_s25  ;;  %1746 = vrot.lane.b32.xlu0 %v3629_v52, %s6089_s25  ;;  %6090 = vst [vmem:[#allocation91_spill] sm:$0xff] %v3930_v27  ;;  %v3946_v27 = vld [vmem:[#allocation5 + $0x26] ss:$8 sm:$0xf]  ;;  %s6119_s25 = smov 83  }
 0x4f3   : > { %v487_v56 = vpop.permute.xlu1 %486  ;;  %v485_v58 = vpop.permute.xlu0 %484 }
 0x4f4   : > { %v494_v46 = vsel %vm492_vm5, %v487_v56, %v3483_v1  ;;  %v495_v34 = vsel %vm492_vm5, %v485_v58, %v487_v56  ;;  %v496_v62 = vsel %vm492_vm5, %v3481_v0, %v485_v58  ;;  %v550_v56 = vrot.slane %v3861_v49, %v3850_v38 }
 0x4f5   : > { %1792 = vrot.lane.b32.xlu1 %v3631_v53, %s6092_s11  ;;  %1790 = vrot.lane.b32.xlu0 %v3629_v52, %s6092_s11  ;;  %v521_v33 = vmul.f32 %v510_v30, %v494_v46  ;;  %v519_v28 = vmul.f32 %v502_v50, %v496_v62  ;;  %v594_v58 = vrot.slane %v3863_v48, %v3850_v38  ;;  %s6123_s11 = smov 82  }
 0x4f6   : > { %v520_v55 = vmul.f32 %v506_v43, %v495_v34 }
 0x4f7   : > { %v530_v29 = vpop.permute.xlu1 %529  ;;  %v528_v24 = vpop.permute.xlu0 %527 }
 0x4f8   : > { %v537_v36 = vsel %vm535_vm6, %v530_v29, %v3491_v3  ;;  %v538_v41 = vsel %vm535_vm6, %v528_v24, %v530_v29  ;;  %v539_v62 = vsel %vm535_vm6, %v3489_v2, %v528_v24  ;;  %v493_v29 = vsel %vm492_vm5, %v3483_v1, %v3481_v0 }
 0x4f9   : > { %v565_v46 = vmul.f32 %v554_v63, %v537_v36  ;;  %v563_v50 = vmul.f32 %v546_v40, %v539_v62  ;;  %v564_v30 = vmul.f32 %v550_v56, %v538_v41  ;;  %1836 = vrot.lane.b32.xlu1 %v3631_v53, %s6093_s14  ;;  %1834 = vrot.lane.b32.xlu0 %v3629_v52, %s6093_s14  ;;  %vm1195_vm5 = vcmp.lt.s32.totalorder %v3331_v12, 17  ;;  %s6126_s14 = smov 81  }
 0x4fa   : > { %v536_v24 = vsel %vm535_vm6, %v3491_v3, %v3489_v2  ;;  %v1218_v63 = vrot.slane %v3983_v32, %v3846_v44  ;;  %v642_v36 = vrot.slane %v3869_v45, %v3848_v39  ;;  %v634_v62 = vrot.slane %v3869_v45, %v3852_v10 }
 0x4fb   : > { %v569_v40 = vadd.f32 %v565_v46, %v521_v33  ;;  %v567_v41 = vadd.f32 %v563_v50, %v519_v28  ;;  %v568_v43 = vadd.f32 %v564_v30, %v520_v55  ;;  %v574_v34 = vpop.permute.xlu1 %573  ;;  %v572_v56 = vpop.permute.xlu0 %571  ;;  %v638_v3 = vrot.slane %v3869_v45, %v3850_v38 }
 0x4fc   : > { %v581_v0 = vsel %vm579_vm7, %v574_v34, %v3499_v5  ;;  %v582_v1 = vsel %vm579_vm7, %v572_v56, %v574_v34  ;;  %v583_v2 = vsel %vm579_vm7, %v3497_v4, %v572_v56  ;;  %v6095_v46 = vrot.slane %v3858_v42, %v3846_v44 }
 0x4fd   : > { %v609_v28 = vmul.f32 %v598_v37, %v581_v0  ;;  %v607_v33 = vmul.f32 %v590_v25, %v583_v2  ;;  %v608_v55 = vmul.f32 %v594_v58, %v582_v1  ;;  %1880 = vrot.lane.b32.xlu1 %v3631_v53, %s6094_s23  ;;  %1878 = vrot.lane.b32.xlu0 %v3629_v52, %s6094_s23  ;;  %vm5949_vm6 = vcmp.lt.s32.totalorder %v3331_v12, 16  ;;  %s6130_s23 = smov 80  }
 0x4fe   : > { %v522_v50 = vmul.f32 %v6095_v46, %v493_v29  ;;  %v6096_v30 = vrot.slane %v3861_v49, %v3846_v44  ;;  %v580_v25 = vsel %vm579_vm7, %v3499_v5, %v3497_v4  ;;  %v686_v37 = vrot.slane %v3871_v31, %v3848_v39 }
 0x4ff   : > { %v613_v58 = vadd.f32 %v609_v28, %v569_v40  ;;  %v611_v56 = vadd.f32 %v607_v33, %v567_v41  ;;  %v612_v0 = vadd.f32 %v608_v55, %v568_v43  ;;  %v618_v1 = vpop.permute.xlu1 %617  ;;  %v616_v2 = vpop.permute.xlu0 %615  ;;  %v678_v42 = vrot.slane %v3871_v31, %v3852_v10 }
 0x500   : > { %v566_v34 = vmul.f32 %v6096_v30, %v536_v24  ;;  %v625_v49 = vsel %vm623_vm8, %v618_v1, %v3507_v7  ;;  %v626_v29 = vsel %vm623_vm8, %v616_v2, %v618_v1  ;;  %v627_v4 = vsel %vm623_vm8, %v3505_v6, %v616_v2 }
 0x501   : > { %v682_v5 = vrot.slane %v3871_v31, %v3850_v38  ;;  %v653_v24 = vmul.f32 %v642_v36, %v625_v49  ;;  %v651_v40 = vmul.f32 %v634_v62, %v627_v4  ;;  %v652_v41 = vmul.f32 %v638_v3, %v626_v29  ;;  %1924 = vrot.lane.b32.xlu1 %v3631_v53, %s6097_s9 }
 0x502   : > { %1922 = vrot.lane.b32.xlu0 %v3629_v52, %s6097_s9  ;;  %v570_v43 = vadd.f32 %v566_v34, %v522_v50  ;;  %v6098_v28 = vrot.slane %v3863_v48, %v3846_v44  ;;  %v624_v55 = vsel %vm623_vm8, %v3507_v7, %v3505_v6  ;;  %v730_v36 = vrot.slane %v3876_v61, %v3848_v39  ;;  %s6463_s9 = sshll.u32 %s3294_s12, 5 }
 0x503   : > { %v657_v62 = vadd.f32 %v653_v24, %v613_v58  ;;  %v655_v3 = vadd.f32 %v651_v40, %v611_v56  ;;  %v656_v46 = vadd.f32 %v652_v41, %v612_v0  ;;  %v662_v30 = vpop.permute.xlu1 %661  ;;  %v660_v1 = vpop.permute.xlu0 %659  ;;  %v722_v50 = vrot.slane %v3876_v61, %v3852_v10 }
 0x504   : > { %v610_v33 = vmul.f32 %v6098_v28, %v580_v25  ;;  %v669_v48 = vsel %vm667_vm9, %v662_v30, %v3515_v9  ;;  %v670_v34 = vsel %vm667_vm9, %v660_v1, %v662_v30  ;;  %v671_v6 = vsel %vm667_vm9, %v3513_v8, %v660_v1 }
 0x505   : > { %v726_v7 = vrot.slane %v3876_v61, %v3850_v38  ;;  %v697_v25 = vmul.f32 %v686_v37, %v669_v48  ;;  %v695_v58 = vmul.f32 %v678_v42, %v671_v6  ;;  %v696_v56 = vmul.f32 %v682_v5, %v670_v34  ;;  %1968 = vrot.lane.b32.xlu1 %v3631_v53, %s6099_s5 }
 0x506   : > { %1966 = vrot.lane.b32.xlu0 %v3629_v52, %s6099_s5  ;;  %v614_v0 = vadd.f32 %v610_v33, %v570_v43  ;;  %v6100_v2 = vrot.slane %v3869_v45, %v3846_v44  ;;  %v668_v29 = vsel %vm667_vm9, %v3515_v9, %v3513_v8  ;;  %v774_v37 = vrot.slane %v3878_v60, %v3848_v39  ;;  %s230_s5 = scalar_lea.vmem [#allocation7], %s6463_s9 }
 0x507   : > { %v701_v42 = vadd.f32 %v697_v25, %v657_v62  ;;  %v699_v4 = vadd.f32 %v695_v58, %v655_v3  ;;  %v700_v5 = vadd.f32 %v696_v56, %v656_v46  ;;  %v706_v24 = vpop.permute.xlu1 %705  ;;  %v704_v40 = vpop.permute.xlu0 %703  ;;  %v766_v41 = vrot.slane %v3878_v60, %v3852_v10 }
 0x508   : > { %v654_v49 = vmul.f32 %v6100_v2, %v624_v55  ;;  %v713_v45 = vsel %vm711_vm10, %v706_v24, %v3523_v13  ;;  %v714_v43 = vsel %vm711_vm10, %v704_v40, %v706_v24  ;;  %v715_v8 = vsel %vm711_vm10, %v3521_v11, %v704_v40 }
 0x509   : > { %v770_v9 = vrot.slane %v3878_v60, %v3850_v38  ;;  %v741_v28 = vmul.f32 %v730_v36, %v713_v45  ;;  %v739_v33 = vmul.f32 %v722_v50, %v715_v8  ;;  %v740_v55 = vmul.f32 %v726_v7, %v714_v43  ;;  %2012 = vrot.lane.b32.xlu1 %v3631_v53, %s6101_s7 }
 0x50a   : > { %2010 = vrot.lane.b32.xlu0 %v3629_v52, %s6101_s7  ;;  %v658_v62 = vadd.f32 %v654_v49, %v614_v0  ;;  %v6102_v3 = vrot.slane %v3871_v31, %v3846_v44  ;;  %v712_v30 = vsel %vm711_vm10, %v3523_v13, %v3521_v11  ;;  %v818_v36 = vrot.slane %v3885_v35, %v3848_v39  ;;  %s2674_s7 = sshll.u32 %s230_s5, 4  ;;  %s5744_s7 = int_to_ptr.vmem [resolvable:$true] %s2674_s7 }
 0x50b   : > { %v745_v1 = vadd.f32 %v741_v28, %v701_v42  ;;  %v743_v50 = vadd.f32 %v739_v33, %v699_v4  ;;  %v744_v48 = vadd.f32 %v740_v55, %v700_v5  ;;  %v750_v34 = vpop.permute.xlu1 %749  ;;  %v748_v6 = vpop.permute.xlu0 %747  ;;  %v810_v7 = vrot.slane %v3885_v35, %v3852_v10 }
 0x50c   : > { %v698_v46 = vmul.f32 %v6102_v3, %v668_v29  ;;  %v757_v31 = vsel %vm755_vm11, %v750_v34, %v3531_v15  ;;  %v758_v25 = vsel %vm755_vm11, %v748_v6, %v750_v34  ;;  %v759_v11 = vsel %vm755_vm11, %v3529_v14, %v748_v6 }
 0x50d   : > { %v814_v13 = vrot.slane %v3885_v35, %v3850_v38  ;;  %v785_v58 = vmul.f32 %v774_v37, %v757_v31  ;;  %v783_v56 = vmul.f32 %v766_v41, %v759_v11  ;;  %v784_v0 = vmul.f32 %v770_v9, %v758_v25  ;;  %2056 = vrot.lane.b32.xlu1 %v3631_v53, %s6103_s10 }
 0x50e   : > { %2054 = vrot.lane.b32.xlu0 %v3629_v52, %s6103_s10  ;;  %v702_v2 = vadd.f32 %v698_v46, %v658_v62  ;;  %v6104_v49 = vrot.slane %v3876_v61, %v3846_v44  ;;  %v756_v42 = vsel %vm755_vm11, %v3531_v15, %v3529_v14  ;;  %v862_v37 = vrot.slane %v3887_v59, %v3848_v39 }
 0x50f   : > { %v789_v4 = vadd.f32 %v785_v58, %v745_v1  ;;  %v787_v5 = vadd.f32 %v783_v56, %v743_v50  ;;  %v788_v24 = vadd.f32 %v784_v0, %v744_v48  ;;  %v794_v40 = vpop.permute.xlu1 %793  ;;  %v792_v41 = vpop.permute.xlu0 %791  ;;  %v854_v45 = vrot.slane %v3887_v59, %v3852_v10 }
 0x510   : > { %v742_v29 = vmul.f32 %v6104_v49, %v712_v30  ;;  %v801_v61 = vsel %vm799_vm12, %v794_v40, %v3539_v17  ;;  %v802_v43 = vsel %vm799_vm12, %v792_v41, %v794_v40  ;;  %v803_v14 = vsel %vm799_vm12, %v3537_v16, %v792_v41 }
 0x511   : > { %v858_v15 = vrot.slane %v3887_v59, %v3850_v38  ;;  %v829_v8 = vmul.f32 %v818_v36, %v801_v61  ;;  %v827_v9 = vmul.f32 %v810_v7, %v803_v14  ;;  %v828_v28 = vmul.f32 %v814_v13, %v802_v43  ;;  %2100 = vrot.lane.b32.xlu1 %v3631_v53, %s6105_s26 }
 0x512   : > { %2098 = vrot.lane.b32.xlu0 %v3629_v52, %s6105_s26  ;;  %v746_v33 = vadd.f32 %v742_v29, %v702_v2  ;;  %v6106_v55 = vrot.slane %v3878_v60, %v3846_v44  ;;  %v800_v3 = vsel %vm799_vm12, %v3539_v17, %v3537_v16  ;;  %v906_v46 = vrot.slane %v3897_v54, %v3848_v39 }
 0x513   : > { %v833_v30 = vadd.f32 %v829_v8, %v789_v4  ;;  %v831_v36 = vadd.f32 %v827_v9, %v787_v5  ;;  %v832_v1 = vadd.f32 %v828_v28, %v788_v24  ;;  %v838_v50 = vpop.permute.xlu1 %837  ;;  %v836_v48 = vpop.permute.xlu0 %835  ;;  %v898_v34 = vrot.slane %v3897_v54, %v3852_v10 }
 0x514   : > { %v786_v62 = vmul.f32 %v6106_v55, %v756_v42  ;;  %v845_v60 = vsel %vm843_vm13, %v838_v50, %v3547_v19  ;;  %v846_v6 = vsel %vm843_vm13, %v836_v48, %v838_v50  ;;  %v847_v16 = vsel %vm843_vm13, %v3545_v18, %v836_v48 }
 0x515   : > { %v902_v17 = vrot.slane %v3897_v54, %v3850_v38  ;;  %v873_v7 = vmul.f32 %v862_v37, %v845_v60  ;;  %v871_v31 = vmul.f32 %v854_v45, %v847_v16  ;;  %v872_v25 = vmul.f32 %v858_v15, %v846_v6  ;;  %2144 = vrot.lane.b32.xlu1 %v3631_v53, %s6107_s8 }
 0x516   : > { %2142 = vrot.lane.b32.xlu0 %v3629_v52, %s6107_s8  ;;  %v790_v11 = vadd.f32 %v786_v62, %v746_v33  ;;  %v6108_v13 = vrot.slane %v3885_v35, %v3846_v44  ;;  %v844_v56 = vsel %vm843_vm13, %v3547_v19, %v3545_v18  ;;  %v950_v0 = vrot.slane %v3899_v51, %v3848_v39  ;;  %s2661_s8 = scalar_lea.sflag [#allocation4], %s3294_s12 }
 0x517   : > { %v877_v2 = vadd.f32 %v873_v7, %v833_v30  ;;  %v875_v49 = vadd.f32 %v871_v31, %v831_v36  ;;  %v876_v29 = vadd.f32 %v872_v25, %v832_v1  ;;  %v882_v42 = vpop.permute.xlu1 %881  ;;  %v880_v37 = vpop.permute.xlu0 %879  ;;  %v942_v4 = vrot.slane %v3899_v51, %v3852_v10 }
 0x518   : > { %v830_v58 = vmul.f32 %v6108_v13, %v800_v3  ;;  %v889_v35 = vsel %vm887_vm14, %v882_v42, %v3555_v21  ;;  %v890_v5 = vsel %vm887_vm14, %v880_v37, %v882_v42  ;;  %v891_v18 = vsel %vm887_vm14, %v3553_v20, %v880_v37 }
 0x519   : > { %v946_v19 = vrot.slane %v3899_v51, %v3850_v38  ;;  %v917_v24 = vmul.f32 %v906_v46, %v889_v35  ;;  %v915_v40 = vmul.f32 %v898_v34, %v891_v18  ;;  %v916_v41 = vmul.f32 %v902_v17, %v890_v5  ;;  %2188 = vrot.lane.b32.xlu1 %v3631_v53, %s3118_s13  ;;  %v4277_v5 = vld [vmem:[#allocation5 + $0x41] ss:$8 sm:$0xf] }
 0x51a   : > { %2186 = vrot.lane.b32.xlu0 %v3629_v52, %s3118_s13  ;;  %v834_v45 = vadd.f32 %v830_v58, %v790_v11  ;;  %v6109_v61 = vrot.slane %v3887_v59, %v3846_v44  ;;  %v888_v14 = vsel %vm887_vm14, %v3555_v21, %v3553_v20  ;;  %v994_v15 = vrot.slane %v3907_v47, %v3848_v39  ;;  %s6110_s13 = smov 94   ;;  %v6112_v11 = vld [vmem:[#allocation16_spill] sm:$0xff]  ;;  %v6113_v58 = vld [vmem:[#allocation15_spill] sm:$0xff] }
 0x51b   : > { %v921_v8 = vadd.f32 %v917_v24, %v877_v2  ;;  %v919_v9 = vadd.f32 %v915_v40, %v875_v49  ;;  %v920_v28 = vadd.f32 %v916_v41, %v876_v29  ;;  %v926_v33 = vpop.permute.xlu1 %925  ;;  %v924_v55 = vpop.permute.xlu0 %923  ;;  %v986_v62 = vrot.slane %v3907_v47, %v3852_v10 }
 0x51c   : > { %v874_v43 = vmul.f32 %v6109_v61, %v844_v56  ;;  %v933_v59 = vsel %vm931_vm15, %v926_v33, %v3563_v23  ;;  %v934_v3 = vsel %vm931_vm15, %v924_v55, %v926_v33  ;;  %v935_v20 = vsel %vm931_vm15, %v3561_v22, %v924_v55 }
 0x51d   : > { %v990_v21 = vrot.slane %v3907_v47, %v3850_v38  ;;  %v961_v46 = vmul.f32 %v950_v0, %v933_v59  ;;  %v959_v30 = vmul.f32 %v942_v4, %v935_v20  ;;  %v960_v36 = vmul.f32 %v946_v19, %v934_v3  ;;  %2232 = vrot.lane.b32.xlu1 %v3631_v53, %s6110_s13  ;;  %v6116_v4 = vld [vmem:[#allocation92_spill] sm:$0xff] }
 0x51e   : > { %2230 = vrot.lane.b32.xlu0 %v3629_v52, %s6110_s13  ;;  %v878_v1 = vadd.f32 %v874_v43, %v834_v45  ;;  %v6111_v50 = vrot.slane %v3897_v54, %v3846_v44  ;;  %v932_v34 = vsel %vm931_vm15, %v3563_v23, %v3561_v22  ;;  %v1038_v60 = vrot.slane %v3909_v57, %v3848_v39  ;;  %s2998_s13 = scalar_lea.vmem %s5744_s7, 512 }
 0x51f   : > { %v965_v6 = vadd.f32 %v961_v46, %v921_v8  ;;  %v963_v16 = vadd.f32 %v959_v30, %v919_v9  ;;  %v964_v17 = vadd.f32 %v960_v36, %v920_v28  ;;  %v970_v7 = vpop.permute.xlu1 %969  ;;  %v968_v31 = vpop.permute.xlu0 %967  ;;  %v1030_v25 = vrot.slane %v3909_v57, %v3852_v10  ;;  %p2999_p4 = scmp.ne.s32.totalorder %s5744_s7, %s2998_s13 }
 0x520   : > { %v918_v48 = vmul.f32 %v6111_v50, %v888_v14  ;;  %v977_v54 = vsel %vm975_vm0, %v970_v7, %v6112_v11  ;;  %v978_v13 = vsel %vm975_vm0, %v968_v31, %v970_v7  ;;  %v979_v22 = vsel %vm975_vm0, %v6113_v58, %v968_v31  ;;  %v6118_v14 = vld [vmem:[#allocation17_spill] sm:$0xff] }
 0x521   : > { %v1034_v23 = vrot.slane %v3909_v57, %v3850_v38  ;;  %v1005_v56 = vmul.f32 %v994_v15, %v977_v54  ;;  %v1003_v0 = vmul.f32 %v986_v62, %v979_v22  ;;  %v1004_v2 = vmul.f32 %v990_v21, %v978_v13  ;;  %2276 = vrot.lane.b32.xlu1 %v3631_v53, %s6114_s28  ;;  %v4304_v21 = vld [vmem:[#allocation5 + $0x42] ss:$8 sm:$0xf]  ;;  %p3000_p6 = pnand %p2999_p4, %p3246_p12 }
 0x522   : > { %2274 = vrot.lane.b32.xlu0 %v3629_v52, %s6114_s28  ;;  %v922_v49 = vadd.f32 %v918_v48, %v878_v1  ;;  %v6115_v29 = vrot.slane %v3899_v51, %v3846_v44  ;;  %v976_v37 = vsel %vm975_vm0, %v6112_v11, %v6113_v58  ;;  %v1082_v35 = vrot.slane %v6116_v4, %v3848_v39  ;;  %v6117_v51 = vld [vmem:[#allocation18_spill] sm:$0xff]  ;;  %s3128_s28 = smov [#allocation7]  }
 0x523   : > { %v1009_v18 = vadd.f32 %v1005_v56, %v965_v6  ;;  %v1007_v19 = vadd.f32 %v1003_v0, %v963_v16  ;;  %v1008_v24 = vadd.f32 %v1004_v2, %v964_v17  ;;  %v1014_v40 = vpop.permute.xlu1 %1013  ;;  %v1012_v41 = vpop.permute.xlu0 %1011  ;;  %v1074_v45 = vrot.slane %v6116_v4, %v3852_v10  ;;  %v6122_v6 = vld [vmem:[#allocation19_spill] sm:$0xff]  ;;  %p3001_p8 = pneg %p3000_p6 }
 0x524   : > { %v962_v42 = vmul.f32 %v6115_v29, %v932_v34  ;;  %v1021_v61 = vsel %vm1019_vm1, %v1014_v40, %v6117_v51  ;;  %v1022_v43 = vsel %vm1019_vm1, %v1012_v41, %v1014_v40  ;;  %v1023_v15 = vsel %vm1019_vm1, %v6118_v14, %v1012_v41  ;;  %v6124_v29 = vld [vmem:[#allocation22_spill] sm:$0xff] }
 0x525   : > { %v1078_v8 = vrot.slane %v6116_v4, %v3850_v38  ;;  %v1049_v9 = vmul.f32 %v1038_v60, %v1021_v61  ;;  %v1047_v28 = vmul.f32 %v1030_v25, %v1023_v15  ;;  %v1048_v33 = vmul.f32 %v1034_v23, %v1022_v43  ;;  %2320 = vrot.lane.b32.xlu1 %v3631_v53, %s6119_s25 }
 0x526   : > { %2318 = vrot.lane.b32.xlu0 %v3629_v52, %s6119_s25  ;;  %v966_v55 = vadd.f32 %v962_v42, %v922_v49  ;;  %v6120_v62 = vrot.slane %v3907_v47, %v3846_v44  ;;  %v1262_v3 = vrot.slane %v4277_v5, %v3846_v44  ;;  %v1126_v20 = vrot.slane %v3946_v27, %v3848_v39  ;;  %v6121_v47 = vld [vmem:[#allocation20_spill] sm:$0xff]  ;;  %s3002_s25 = sshll.u32 %s3128_s28, 4  ;;  %s3003_s25 = int_to_ptr.vmem [resolvable:$false] %s3002_s25 }
 0x527   : > { %v1053_v46 = vadd.f32 %v1049_v9, %v1009_v18  ;;  %v1051_v30 = vadd.f32 %v1047_v28, %v1007_v19  ;;  %v1052_v36 = vadd.f32 %v1048_v33, %v1008_v24  ;;  %v1058_v1 = vpop.permute.xlu1 %1057  ;;  %v1056_v50 = vpop.permute.xlu0 %1055  ;;  %v1118_v48 = vrot.slane %v3946_v27, %v3852_v10  ;;  %p3005_p10 = scmp.lt.s32.totalorder %s5744_s7, %s3003_s25 }
 0x528   : > { %v1006_v59 = vmul.f32 %v6120_v62, %v976_v37  ;;  %v1065_v34 = vsel %vm1063_vm2, %v1058_v1, %v6121_v47  ;;  %v1066_v60 = vsel %vm1063_vm2, %v1056_v50, %v1058_v1  ;;  %v1067_v16 = vsel %vm1063_vm2, %v6122_v6, %v1056_v50 }
 0x529   : > { %v1122_v17 = vrot.slane %v3946_v27, %v3850_v38  ;;  %v1093_v7 = vmul.f32 %v1082_v35, %v1065_v34  ;;  %v1091_v31 = vmul.f32 %v1074_v45, %v1067_v16  ;;  %v1092_v25 = vmul.f32 %v1078_v8, %v1066_v60  ;;  %2364 = vrot.lane.b32.xlu1 %v3631_v53, %s6123_s11  ;;  %v6125_v35 = vld [vmem:[#allocation21_spill] sm:$0xff] }
 0x52a   : > { %2362 = vrot.lane.b32.xlu0 %v3629_v52, %s6123_s11  ;;  %v1010_v11 = vadd.f32 %v1006_v59, %v966_v55  ;;  %v1020_v54 = vsel %vm1019_vm1, %v6117_v51, %v6118_v14  ;;  %v1306_v13 = vrot.slane %v4304_v21, %v3846_v44  ;;  %v1170_v58 = vrot.slane %v3948_v26, %v3848_v39  ;;  %v6128_v55 = vld [vmem:[#allocation24_spill] sm:$0xff] }
 0x52b   : > { %v1097_v22 = vadd.f32 %v1093_v7, %v1053_v46  ;;  %v1095_v23 = vadd.f32 %v1091_v31, %v1051_v30  ;;  %v1096_v56 = vadd.f32 %v1092_v25, %v1052_v36  ;;  %v1102_v0 = vpop.permute.xlu1 %1101  ;;  %v1100_v2 = vpop.permute.xlu0 %1099  ;;  %v1162_v49 = vrot.slane %v3948_v26, %v3852_v10 }
 0x52c   : > { %v1109_v42 = vsel %vm1107_vm3, %v1102_v0, %v6124_v29  ;;  %v1110_v37 = vsel %vm1107_vm3, %v1100_v2, %v1102_v0  ;;  %v1111_v18 = vsel %vm1107_vm3, %v6125_v35, %v1100_v2  ;;  %v1166_v19 = vrot.slane %v3948_v26, %v3850_v38  ;;  %v4406_v2 = vld [vmem:[#allocation5 + $0x45] ss:$8 sm:$0xf] }
 0x52d   : > { %v1137_v24 = vmul.f32 %v1126_v20, %v1109_v42  ;;  %v1135_v40 = vmul.f32 %v1118_v48, %v1111_v18  ;;  %v1136_v41 = vmul.f32 %v1122_v17, %v1110_v37  ;;  %2408 = vrot.lane.b32.xlu1 %v3631_v53, %s6126_s14  ;;  %v6127_v45 = vrot.slane %v3909_v57, %v3846_v44  ;;  %v6129_v20 = vld [vmem:[#allocation23_spill] sm:$0xff] }
 0x52e   : > { %2406 = vrot.lane.b32.xlu0 %v3629_v52, %s6126_s14  ;;  %v1064_v61 = vsel %vm1063_vm2, %v6121_v47, %v6122_v6  ;;  %v1108_v43 = vsel %vm1107_vm3, %v6124_v29, %v6125_v35  ;;  %vm5943_vm7 = vcmp.lt.s32.totalorder %v3331_v12, 15  ;;  %v1214_v14 = vrot.slane %v3983_v32, %v3848_v39 }
 0x52f   : > { %v1050_v51 = vmul.f32 %v6127_v45, %v1020_v54  ;;  %v1141_v15 = vadd.f32 %v1137_v24, %v1097_v22  ;;  %v1139_v8 = vadd.f32 %v1135_v40, %v1095_v23  ;;  %v1140_v9 = vadd.f32 %v1136_v41, %v1096_v56  ;;  %v1146_v57 = vpop.permute.xlu1 %1145  ;;  %v1144_v28 = vpop.permute.xlu0 %1143  ;;  %v6133_v54 = vld [vmem:[#allocation25_spill] sm:$0xff]  ;;  %v6136_v40 = vld [vmem:[#allocation27_spill] sm:$0xff]  ;;  %v6137_v41 = vld [vmem:[#allocation28_spill] sm:$0xff] }
 0x530   : > { %v1206_v33 = vrot.slane %v3983_v32, %v3852_v10  ;;  %v1153_v62 = vsel %vm1151_vm4, %v1146_v57, %v6128_v55  ;;  %v1154_v59 = vsel %vm1151_vm4, %v1144_v28, %v1146_v57  ;;  %v1155_v46 = vsel %vm1151_vm4, %v6129_v20, %v1144_v28  ;;  %v4394_v22 = vld [vmem:[#allocation5 + $0x43] ss:$8 sm:$0xf]  ;;  %v4419_v24 = vld [vmem:[#allocation5 + $0x47] ss:$8 sm:$0xf] }
 0x531   : > { %v1210_v30 = vrot.slane %v3983_v32, %v3850_v38  ;;  %vm5945_vm8 = vcmp.lt.s32.totalorder %v3331_v12, 14  ;;  %v1181_v36 = vmul.f32 %v1170_v58, %v1153_v62  ;;  %v1179_v1 = vmul.f32 %v1162_v49, %v1155_v46  ;;  %2452 = vrot.lane.b32.xlu1 %v3631_v53, %s6130_s23  ;;  %v6134_v58 = vld [vmem:[#allocation26_spill] sm:$0xff] }
 0x532   : > { %v1180_v50 = vmul.f32 %v1166_v19, %v1154_v59  ;;  %2450 = vrot.lane.b32.xlu0 %v3629_v52, %s6130_s23  ;;  %v1054_v48 = vadd.f32 %v1050_v51, %v1010_v11  ;;  %v6131_v47 = vrot.slane %v6116_v4, %v3846_v44  ;;  %v6132_v60 = vrot.slane %v3946_v27, %v3846_v44  ;;  %v4396_v27 = vld [vmem:[#allocation5 + $0x44] ss:$8 sm:$0xf]  ;;  %v4408_v49 = vld [vmem:[#allocation5 + $0x46] ss:$8 sm:$0xf] }
 0x533   : > { %vm5948_vm9 = vcmp.lt.s32.totalorder %v3331_v12, 13  ;;  %v1152_v16 = vsel %vm1151_vm4, %v6128_v55, %v6129_v20  ;;  %v1185_v17 = vadd.f32 %v1181_v36, %v1141_v15  ;;  %v1183_v7 = vadd.f32 %v1179_v1, %v1139_v8  ;;  %v1190_v25 = vpop.permute.xlu1 %1189  ;;  %v1188_v11 = vpop.permute.xlu0 %1187  ;;  %v4425_v51 = vld [vmem:[#allocation5 + $0x61] ss:$8 sm:$0xf] }
 0x534   : > { %v1094_v34 = vmul.f32 %v6131_v47, %v1064_v61  ;;  %v1138_v6 = vmul.f32 %v6132_v60, %v1108_v43  ;;  %v1184_v31 = vadd.f32 %v1180_v50, %v1140_v9  ;;  %v1196_v4 = vsel %vm1195_vm5, %v6134_v58, %v6133_v54  ;;  %v4427_v61 = vld [vmem:[#allocation5 + $0x62] ss:$8 sm:$0xf]  ;;  %v4446_v55 = vld [vmem:[#allocation5 + $0x63] ss:$8 sm:$0xf] }
 0x535   : > { %v1197_v23 = vsel %vm1195_vm5, %v1190_v25, %v6134_v58  ;;  %v1198_v56 = vsel %vm1195_vm5, %v1188_v11, %v1190_v25  ;;  %v1199_v0 = vsel %vm1195_vm5, %v6133_v54, %v1188_v11  ;;  %2496 = vrot.lane.b32.xlu1 %v3631_v53, %s3125_s29  ;;  %v6135_v18 = vrot.slane %v3948_v26, %v3846_v44  ;;  %v4448_v62 = vld [vmem:[#allocation5 + $0x64] ss:$8 sm:$0xf]  ;;  %v4460_v36 = vld [vmem:[#allocation5 + $0x66] ss:$8 sm:$0xf] }
 0x536   : > { %v1225_v29 = vmul.f32 %v1214_v14, %v1197_v23  ;;  %v1223_v42 = vmul.f32 %v1206_v33, %v1199_v0  ;;  %v1224_v37 = vmul.f32 %v1210_v30, %v1198_v56  ;;  %2494 = vrot.lane.b32.xlu0 %v3629_v52, %s3125_s29  ;;  %v1098_v35 = vadd.f32 %v1094_v34, %v1054_v48  ;;  %v6140_v59 = vld [vmem:[#allocation29_spill] sm:$0xff]  ;;  %v6141_v20 = vld [vmem:[#allocation30_spill] sm:$0xff]  ;;  %v6143_v34 = vld [vmem:[#allocation31_spill] sm:$0xff]  ;;  %s2782_s29 = sshll.u32 %s3176_s19, 9 }
 0x537   : > { %v1182_v19 = vmul.f32 %v6135_v18, %v1152_v16  ;;  %vm5953_vm10 = vcmp.lt.s32.totalorder %v3331_v12, 3  ;;  %vm1459_vm11 = vcmp.lt.s32.totalorder %v3331_v12, 2  ;;  %v1240_v45 = vsel %vm5949_vm6, %v6137_v41, %v6136_v40  ;;  %v4435_v15 = vpop.permute.xlu1 %1233  ;;  %v4437_v8 = vpop.permute.xlu0 %1231  ;;  %v4472_v47 = vld [vmem:[#allocation5 + $0x67] ss:$8 sm:$0xf]  ;;  %s5740_s19 = scalar_lea.hbm %s5793_s4, %s2782_s29 }
 0x538   : > { %v4429_v43 = vadd.f32 %v1225_v29, %v1185_v17  ;;  %v4431_v14 = vadd.f32 %v1223_v42, %v1183_v7  ;;  %v4433_v26 = vadd.f32 %v1224_v37, %v1184_v31  ;;  %v1142_v9 = vadd.f32 %v1138_v6, %v1098_v35  ;;  %6142 = vst [vmem:[#allocation92_spill] sm:$0xff] %v4472_v47  ;;  %v6144_v60 = vld [vmem:[#allocation32_spill] sm:$0xff]  ;;  %v6148_v29 = vld [vmem:[#allocation33_spill] sm:$0xff]  ;;  %v6149_v42 = vld [vmem:[#allocation34_spill] sm:$0xff] }
 0x539   : > { %v1226_v57 = vmul.f32 %v1218_v63, %v1196_v4  ;;  %v1350_v28 = vrot.slane %v4394_v22, %v3846_v44  ;;  %v1394_v33 = vrot.slane %v4396_v27, %v3846_v44  ;;  %v1284_v46 = vsel %vm5943_vm7, %v6141_v20, %v6140_v59  ;;  %v4458_v63 = vld [vmem:[#allocation5 + $0x65] ss:$8 sm:$0xf]  ;;  %2540 = vrot.lane.b32.xlu1 %v3631_v53, %s3126_s6  ;;  %v4484_v7 = vld [vmem:[#allocation5 + $0x80] ss:$8 sm:$0xf] }
 0x53a   : > { %6138 = vst [vmem:[#allocation16_spill] sm:$0xff] %v4431_v14  ;;  %6139 = vst [vmem:[#allocation15_spill] sm:$0xff] %v4433_v26  ;;  %v1438_v30 = vrot.slane %v4406_v2, %v3846_v44  ;;  %2538 = vrot.lane.b32.xlu0 %v3629_v52, %s3126_s6  ;;  %v1186_v1 = vadd.f32 %v1182_v19, %v1142_v9  ;;  %v1270_v50 = vmul.f32 %v1262_v3, %v1240_v45  ;;  %v4486_v31 = vld [vmem:[#allocation5 + $0x81] ss:$8 sm:$0xf]  ;;  %s3127_s6 = smov 77  }
 0x53b   : > { %vm1503_vm12 = vcmp.lt.s32.totalorder %v3331_v12, 1  ;;  %v1328_v6 = vsel %vm5945_vm8, %v6144_v60, %v6143_v34  ;;  %6145 = vst [vmem:[#allocation18_spill] sm:$0xff] %v4484_v7  ;;  %v4488_v25 = vpop.permute.xlu1 %1277  ;;  %v4490_v11 = vpop.permute.xlu0 %1275  ;;  %v1314_v58 = vmul.f32 %v1306_v13, %v1284_v46  ;;  %v4499_v56 = vld [vmem:[#allocation5 + $0x82] ss:$8 sm:$0xf]  ;;  %v1372_v37 = vsel %vm5948_vm9, %v6149_v42, %v6148_v29 }
 0x53c   : > { %6146 = vst [vmem:[#allocation17_spill] sm:$0xff] %v4488_v25  ;;  %6147 = vst [vmem:[#allocation20_spill] sm:$0xff] %v4490_v11  ;;  %v1230_v54 = vadd.f32 %v1226_v57, %v1186_v1  ;;  %v4501_v0 = vld [vmem:[#allocation5 + $0x83] ss:$8 sm:$0xf]  ;;  %vm5952_vm13 = vcmp.lt.s32.totalorder %v3331_v12, 127  ;;  %v1358_v45 = vmul.f32 %v1350_v28, %v1328_v6  ;;  %v1402_v9 = vmul.f32 %v1394_v33, %v1372_v37 }
 0x53d   : > { %v4512_v18 = vld [vmem:[#allocation5 + $0x84] ss:$8 sm:$0xf]  ;;  %2584 = vrot.lane.b32.xlu1 %v3631_v53, %s3127_s6  ;;  %v4522_v46 = vld [vmem:[#allocation5 + $0x85] ss:$8 sm:$0xf]  ;;  %v1241_v53 = vsel %vm5949_vm6, %v4435_v15, %v6137_v41 }
 0x53e   : > { %2582 = vrot.lane.b32.xlu0 %v3629_v52, %s3127_s6  ;;  %v1274_v19 = vadd.f32 %v1270_v50, %v1230_v54  ;;  %v6150_v1 = vld [vmem:[#allocation35_spill] sm:$0xff]  ;;  %v6151_v35 = vld [vmem:[#allocation36_spill] sm:$0xff]  ;;  %vm1622_vm14 = vcmp.lt.s32.totalorder %v3331_v12, 126  ;;  %v1258_v50 = vrot.slane %v4277_v5, %v3848_v39  ;;  %vm1666_vm15 = vcmp.lt.s32.totalorder %v3331_v12, 125  ;;  %v6154_v4 = vld [vmem:[#allocation37_spill] sm:$0xff] }
 0x53f   : > { %v1416_v13 = vsel %vm5953_vm10, %v6151_v35, %v6150_v1  ;;  %v4533_v28 = vld [vmem:[#allocation5 + $0x86] ss:$8 sm:$0xf]  ;;  %v4537_v6 = vpop.permute.xlu1 %1321  ;;  %v4539_v54 = vpop.permute.xlu0 %1319  ;;  %vm5959_vm0 = vcmp.lt.s32.totalorder %v3331_v12, 115  ;;  %vm1754_vm1 = vcmp.lt.s32.totalorder %v3331_v12, 114  ;;  %vm1798_vm2 = vcmp.lt.s32.totalorder %v3331_v12, 113 }
 0x540   : > { %6152 = vst [vmem:[#allocation19_spill] sm:$0xff] %v4537_v6  ;;  %6153 = vst [vmem:[#allocation22_spill] sm:$0xff] %v4539_v54  ;;  %v1318_v57 = vadd.f32 %v1314_v58, %v1274_v19  ;;  %v4545_v23 = vld [vmem:[#allocation5 + $0x87] ss:$8 sm:$0xf]  ;;  %vm5962_vm3 = vcmp.lt.s32.totalorder %v3331_v12, 112  ;;  %v1302_v19 = vrot.slane %v4304_v21, %v3848_v39  ;;  %v1446_v16 = vmul.f32 %v1438_v30, %v1416_v13 }
 0x541   : > { %v6155_v3 = vld [vmem:[#allocation38_spill] sm:$0xff]  ;;  %v6157_v52 = vld [vmem:[#allocation13_spill] sm:$0xff]  ;;  %vm5961_vm4 = vcmp.lt.s32.totalorder %v3331_v12, 111  ;;  %v1269_v33 = vmul.f32 %v1258_v50, %v1241_v53  ;;  %vm5963_vm5 = vcmp.lt.s32.totalorder %v3331_v12, 110  ;;  %v1329_v53 = vsel %vm5945_vm8, %v4537_v6, %v6144_v60  ;;  %v6182_v11 = vld [vmem:[#allocation52_spill] sm:$0xff] }
 0x542   : > { %v1460_v58 = vsel %vm1459_vm11, %v6155_v3, %v6154_v4  ;;  %v4560_v37 = vld [vmem:[#allocation5 + $0xa0] ss:$8 sm:$0xf]  ;;  %2586 = vrot.lane.b32.xlu0 %v6157_v52, %s3127_s6  ;;  %v1362_v17 = vadd.f32 %v1358_v45, %v1318_v57  ;;  %v4574_v48 = vld [vmem:[#allocation5 + $0xa1] ss:$8 sm:$0xf]  ;;  %v1346_v4 = vrot.slane %v4394_v22, %v3848_v39  ;;  %v1390_v30 = vrot.slane %v4396_v27, %v3848_v39 }
 0x543   : > { %v6156_v41 = vld [vmem:[#allocation14_spill] sm:$0xff]  ;;  %v6158_v52 = vld [vmem:[#allocation39_spill] sm:$0xff]  ;;  %v6159_v45 = vld [vmem:[#allocation40_spill] sm:$0xff]  ;;  %v4592_v1 = vpop.permute.xlu1 %1365  ;;  %v4594_v26 = vpop.permute.xlu0 %1363  ;;  %v6164_v60 = vrot.slane %v4419_v24, %v3846_v44  ;;  %vm5965_vm8 = vcmp.lt.s32.totalorder %v3331_v12, 99  ;;  %v1434_v50 = vrot.slane %v4406_v2, %v3848_v39  ;;  %vm5968_vm6 = vcmp.lt.s32.totalorder %v3331_v12, 97 }
 0x544   : > { %2588 = vrot.lane.b32.xlu1 %v6156_v41, %s3127_s6  ;;  %v4576_v32 = vld [vmem:[#allocation5 + $0xa2] ss:$8 sm:$0xf]  ;;  %v1285_v41 = vsel %vm5943_vm7, %v4488_v25, %v6141_v20  ;;  %v1504_v57 = vsel %vm1503_vm12, %v6159_v45, %v6158_v52  ;;  %v4588_v13 = vld [vmem:[#allocation5 + $0xa3] ss:$8 sm:$0xf]  ;;  %v1406_v14 = vadd.f32 %v1402_v9, %v1362_v17  ;;  %v6162_v20 = vrot.slane %v4408_v49, %v3846_v44 }
 0x545   : > { %6160 = vst [vmem:[#allocation21_spill] sm:$0xff] %v4592_v1  ;;  %6161 = vst [vmem:[#allocation24_spill] sm:$0xff] %v4594_v26  ;;  %vm5964_vm7 = vcmp.lt.s32.totalorder %v3331_v12, 109  ;;  %v4611_v9 = vld [vmem:[#allocation5 + $0xa4] ss:$8 sm:$0xf]  ;;  %v1534_v26 = vmul.f32 %v6164_v60, %v1504_v57  ;;  %v1273_v57 = vadd.f32 %v1269_v33, %v4429_v43  ;;  %v1357_v60 = vmul.f32 %v1346_v4, %v1329_v53 }
 0x546   : > { %v1490_v29 = vmul.f32 %v6162_v20, %v1460_v58  ;;  %v4613_v58 = vld [vmem:[#allocation5 + $0xa5] ss:$8 sm:$0xf]  ;;  %v1313_v20 = vmul.f32 %v1302_v19, %v1285_v41  ;;  %v1450_v52 = vadd.f32 %v1446_v16, %v1406_v14  ;;  %v4623_v34 = vld [vmem:[#allocation5 + $0xa6] ss:$8 sm:$0xf]  ;;  %v1373_v19 = vsel %vm5948_vm9, %v4592_v1, %v6149_v42 }
 0x547   : > { %6163 = vst [vmem:[#allocation23_spill] sm:$0xff] %v4613_v58  ;;  %6165 = vst [vmem:[#allocation25_spill] sm:$0xff] %v4623_v34  ;;  %v6166_v41 = vld [vmem:[#allocation41_spill] sm:$0xff]  ;;  %v6167_v17 = vld [vmem:[#allocation42_spill] sm:$0xff]  ;;  %v4638_v54 = vpop.permute.xlu1 %1409  ;;  %v4640_v6 = vpop.permute.xlu0 %1407  ;;  %vm2062_vm9 = vcmp.lt.s32.totalorder %v3331_v12, 98  ;;  %v6171_v42 = vrot.slane %v4425_v51, %v3848_v39 }
 0x548   : > { %v1579_v14 = vsel %vm5952_vm13, %v6167_v17, %v6166_v41  ;;  %v4633_v16 = vld [vmem:[#allocation5 + $0xa7] ss:$8 sm:$0xf]  ;;  %6169 = vst [vmem:[#allocation27_spill] sm:$0xff] %v4638_v54  ;;  %6170 = vst [vmem:[#allocation28_spill] sm:$0xff] %v4640_v6  ;;  %v1494_v59 = vadd.f32 %v1490_v29, %v1450_v52  ;;  %v1417_v43 = vsel %vm5953_vm10, %v4638_v54, %v6151_v35  ;;  %vm2150_vm13 = vcmp.lt.s32.totalorder %v3331_v12, 96 }
 0x549   : > { %6168 = vst [vmem:[#allocation26_spill] sm:$0xff] %v4633_v16  ;;  %v1317_v33 = vadd.f32 %v1313_v20, %v1273_v57  ;;  %v1401_v29 = vmul.f32 %v1390_v30, %v1373_v19  ;;  %v1478_v52 = vrot.slane %v4408_v49, %v3848_v39  ;;  %v4659_v17 = vmul.f32 %v6171_v42, %v1579_v14  ;;  %v6172_v41 = vld [vmem:[#allocation43_spill] sm:$0xff]  ;;  %v6173_v6 = vld [vmem:[#allocation44_spill] sm:$0xff]  ;;  %v6174_v30 = vld [vmem:[#allocation45_spill] sm:$0xff] }
 0x54a   : > { %v1538_v53 = vadd.f32 %v1534_v26, %v1494_v59  ;;  %v1623_v1 = vsel %vm1622_vm14, %v6173_v6, %v6172_v41  ;;  %vm5969_vm10 = vcmp.lt.s32.totalorder %v3331_v12, 95  ;;  %v6175_v20 = vld [vmem:[#allocation46_spill] sm:$0xff]  ;;  %v6176_v59 = vld [vmem:[#allocation47_spill] sm:$0xff]  ;;  %v6177_v19 = vld [vmem:[#allocation48_spill] sm:$0xff]  ;;  %v1445_v42 = vmul.f32 %v1434_v50, %v1417_v43 }
 0x54b   : > { %v1667_v26 = vsel %vm1666_vm15, %v6175_v20, %v6174_v30  ;;  %v1711_v14 = vsel %vm5959_vm0, %v6177_v19, %v6176_v59  ;;  %v1361_v57 = vadd.f32 %v1357_v60, %v1317_v33  ;;  %v4677_v4 = vpop.permute.xlu1 %1453  ;;  %v4679_v41 = vpop.permute.xlu0 %1451  ;;  %v6179_v6 = vld [vmem:[#allocation49_spill] sm:$0xff]  ;;  %v6180_v54 = vld [vmem:[#allocation50_spill] sm:$0xff]  ;;  %v6181_v16 = vld [vmem:[#allocation51_spill] sm:$0xff]  ;;  %vm2238_vm0 = vcmp.lt.s32.totalorder %v3331_v12, 94 }
 0x54c   : > { %6178 = vst [vmem:[#allocation30_spill] sm:$0xff] %v4679_v41  ;;  %v1755_v35 = vsel %vm1754_vm1, %v6180_v54, %v6179_v6  ;;  %v1799_v30 = vsel %vm1798_vm2, %v6182_v11, %v6181_v16  ;;  %v6183_v20 = vld [vmem:[#allocation53_spill] sm:$0xff]  ;;  %v6184_v25 = vld [vmem:[#allocation54_spill] sm:$0xff]  ;;  %v1461_v50 = vsel %vm1459_vm11, %v4677_v4, %v6155_v3  ;;  %v6185_v43 = vld [vmem:[#allocation55_spill] sm:$0xff]  ;;  %v1522_v16 = vrot.slane %v4419_v24, %v3848_v39 }
 0x54d   : > { %v1843_v60 = vsel %vm5962_vm3, %v6184_v25, %v6183_v20  ;;  %v6186_v33 = vld [vmem:[#allocation56_spill] sm:$0xff]  ;;  %v1405_v54 = vadd.f32 %v1401_v29, %v1361_v57  ;;  %v1489_v59 = vmul.f32 %v1478_v52, %v1461_v50  ;;  %v6187_v20 = vrot.slane %v4427_v61, %v3848_v39  ;;  %v6190_v29 = vld [vmem:[#allocation90_spill] sm:$0xff] }
 0x54e   : > { %v1887_v6 = vsel %vm5961_vm4, %v6186_v33, %v6185_v43  ;;  %v6188_v11 = vrot.slane %v4446_v55, %v3848_v39  ;;  %v6189_v3 = vrot.slane %v4448_v62, %v3848_v39  ;;  %vm2282_vm4 = vcmp.lt.s32.totalorder %v3331_v12, 93  ;;  %v6198_v43 = vld [vmem:[#allocation59_spill] sm:$0xff]  ;;  %v6199_v33 = vld [vmem:[#allocation60_spill] sm:$0xff] }
 0x54f   : > { %v1652_v25 = vmul.f32 %v6187_v20, %v1623_v1  ;;  %v4719_v52 = vadd.f32 %v6190_v29, %v1538_v53  ;;  %v6192_v57 = vrot.slane %v4458_v63, %v3848_v39  ;;  %v6193_v1 = vrot.slane %v4460_v36, %v3848_v39  ;;  %v6194_v20 = vld [vmem:[#allocation57_spill] sm:$0xff]  ;;  %v4736_v53 = vpop.permute.xlu1 %1497  ;;  %v4738_v29 = vpop.permute.xlu0 %1495 }
 0x550   : > { %v4710_v19 = vmul.f32 %v6188_v11, %v1667_v26  ;;  %v4715_v41 = vmul.f32 %v6189_v3, %v1711_v14  ;;  %v6195_v26 = vld [vmem:[#allocation58_spill] sm:$0xff]  ;;  %vm2326_vm3 = vcmp.lt.s32.totalorder %v3331_v12, 83  ;;  %v1449_v3 = vadd.f32 %v1445_v42, %v1405_v54  ;;  %v6200_v42 = vld [vmem:[#allocation61_spill] sm:$0xff] }
 0x551   : > { %6191 = vst [vmem:[#allocation32_spill] sm:$0xff] %v4719_v52  ;;  %v4724_v50 = vmul.f32 %v6192_v57, %v1755_v35  ;;  %v4729_v11 = vmul.f32 %v6193_v1, %v1799_v30  ;;  %v1931_v14 = vsel %vm5963_vm5, %v6195_v26, %v6194_v20  ;;  %v6196_v35 = vrot.slane %v4472_v47, %v3848_v39 }
 0x552   : > { %v6197_v30 = vrot.slane %v4484_v7, %v3848_v39  ;;  %v1975_v20 = vsel %vm5964_vm7, %v6199_v33, %v6198_v43  ;;  %vm2370_vm5 = vcmp.lt.s32.totalorder %v3331_v12, 82  ;;  %v1505_v54 = vsel %vm1503_vm12, %v4736_v53, %v6159_v45 }
 0x553   : > { %v4743_v57 = vmul.f32 %v6196_v35, %v1843_v60  ;;  %v6201_v60 = vld [vmem:[#allocation62_spill] sm:$0xff]  ;;  %v1533_v26 = vmul.f32 %v1522_v16, %v1505_v54  ;;  %v6202_v43 = vrot.slane %v4486_v31, %v3848_v39  ;;  %vm2414_vm7 = vcmp.lt.s32.totalorder %v3331_v12, 81  ;;  %v6206_v54 = vld [vmem:[#allocation64_spill] sm:$0xff] }
 0x554   : > { %v4748_v1 = vmul.f32 %v6197_v30, %v1887_v6  ;;  %v2019_v35 = vsel %vm5965_vm8, %v6201_v60, %v6200_v42  ;;  %v1493_v30 = vadd.f32 %v1489_v59, %v1449_v3  ;;  %v6203_v59 = vrot.slane %v4499_v56, %v3848_v39  ;;  %v6205_v3 = vld [vmem:[#allocation63_spill] sm:$0xff]  ;;  %v6208_v6 = vld [vmem:[#allocation66_spill] sm:$0xff]  ;;  %v4791_v60 = vpop.permute.xlu1 %1572  ;;  %v4793_v42 = vpop.permute.xlu0 %1570 }
 0x555   : > { %v4768_v33 = vmul.f32 %v6202_v43, %v1931_v14  ;;  %v2063_v43 = vsel %vm2062_vm9, %v6206_v54, %v6205_v3  ;;  %v6207_v14 = vld [vmem:[#allocation65_spill] sm:$0xff]  ;;  %vm5970_vm8 = vcmp.lt.s32.totalorder %v3331_v12, 80  ;;  %6209 = vst [vmem:[#allocation36_spill] sm:$0xff] %v4791_v60  ;;  %6210 = vst [vmem:[#allocation38_spill] sm:$0xff] %v4793_v42  ;;  %v6216_v60 = vld [vmem:[#allocation70_spill] sm:$0xff] }
 0x556   : > { %v4780_v16 = vmul.f32 %v6203_v59, %v1975_v20  ;;  %v2107_v45 = vsel %vm5968_vm6, %v6208_v6, %v6207_v14  ;;  %v1537_v52 = vadd.f32 %v1533_v26, %v1493_v30  ;;  %v6211_v20 = vrot.slane %v4501_v0, %v3848_v39  ;;  %v6213_v6 = vld [vmem:[#allocation67_spill] sm:$0xff]  ;;  %v6214_v26 = vld [vmem:[#allocation68_spill] sm:$0xff]  ;;  %v6215_v42 = vld [vmem:[#allocation69_spill] sm:$0xff] }
 0x557   : > { %v2151_v30 = vsel %vm2150_vm13, %v6214_v26, %v6213_v6  ;;  %vm5971_vm6 = vcmp.lt.s32.totalorder %v3331_v12, 79  ;;  %v6217_v3 = vld [vmem:[#allocation88_spill] sm:$0xff]  ;;  %v6218_v14 = vrot.slane %v4512_v18, %v3848_v39  ;;  %v6220_v6 = vrot.slane %v4522_v46, %v3848_v39 }
 0x558   : > { %6204 = vst [vmem:[#allocation34_spill] sm:$0xff] %v4780_v16  ;;  %v4798_v59 = vmul.f32 %v6211_v20, %v2019_v35  ;;  %v2195_v35 = vsel %vm5969_vm10, %v6216_v60, %v6215_v42  ;;  %v1568_v54 = vadd.f32 %v6217_v3, %v1537_v52  ;;  %v6222_v16 = vld [vmem:[#allocation71_spill] sm:$0xff]  ;;  %v6223_v20 = vld [vmem:[#allocation72_spill] sm:$0xff]  ;;  %vm2546_vm10 = vcmp.lt.s32.totalorder %v3331_v12, 78 }
 0x559   : > { %v4826_v26 = vmul.f32 %v6220_v6, %v2107_v45  ;;  %v2239_v52 = vsel %vm2238_vm0, %v6223_v20, %v6222_v16  ;;  %v6224_v60 = vrot.slane %v4533_v28, %v3848_v39  ;;  %v6226_v16 = vrot.slane %v4545_v23, %v3848_v39  ;;  %v6229_v6 = vld [vmem:[#allocation74_spill] sm:$0xff]  ;;  %v6232_v3 = vld [vmem:[#allocation75_spill] sm:$0xff] }
 0x55a   : > { %6212 = vst [vmem:[#allocation14_spill] sm:$0xff] %v4798_v59  ;;  %v4821_v59 = vmul.f32 %v6218_v14, %v2063_v43  ;;  %v1612_v45 = vadd.f32 %v4659_v17, %v1568_v54  ;;  %v4842_v43 = vpop.permute.xlu1 %1616  ;;  %v4844_v14 = vpop.permute.xlu0 %1614  ;;  %v6228_v54 = vld [vmem:[#allocation73_spill] sm:$0xff] }
 0x55b   : > { %6221 = vst [vmem:[#allocation40_spill] sm:$0xff] %v4826_v26  ;;  %v4849_v42 = vmul.f32 %v6224_v60, %v2151_v30  ;;  %v4854_v20 = vmul.f32 %v6226_v16, %v2195_v35  ;;  %v2283_v26 = vsel %vm2282_vm4, %v6229_v6, %v6228_v54  ;;  %v6230_v16 = vrot.slane %v4560_v37, %v3848_v39  ;;  %v6235_v60 = vld [vmem:[#allocation78_spill] sm:$0xff] }
 0x55c   : > { %6219 = vst [vmem:[#allocation13_spill] sm:$0xff] %v4821_v59  ;;  %v1656_v59 = vadd.f32 %v1652_v25, %v1612_v45  ;;  %v6234_v45 = vld [vmem:[#allocation77_spill] sm:$0xff]  ;;  %v6236_v25 = vrot.slane %v4574_v48, %v3848_v39 }
 0x55d   : > { %6225 = vst [vmem:[#allocation90_spill] sm:$0xff] %v4849_v42  ;;  %6227 = vst [vmem:[#allocation88_spill] sm:$0xff] %v4854_v20  ;;  %v4871_v35 = vmul.f32 %v6230_v16, %v2239_v52  ;;  %v6233_v20 = vld [vmem:[#allocation76_spill] sm:$0xff]  ;;  %v2371_v30 = vsel %vm2370_vm5, %v6235_v60, %v6234_v45  ;;  %v6238_v16 = vrot.slane %v4576_v32, %v3848_v39  ;;  %v6240_v60 = vld [vmem:[#allocation79_spill] sm:$0xff] }
 0x55e   : > { %v2327_v17 = vsel %vm2326_vm3, %v6233_v20, %v6232_v3  ;;  %v1700_v6 = vadd.f32 %v4710_v19, %v1656_v59  ;;  %v4890_v3 = vpop.permute.xlu1 %1660  ;;  %v4892_v20 = vpop.permute.xlu0 %1658  ;;  %v4897_v54 = vmul.f32 %v6236_v25, %v2283_v26  ;;  %v6242_v19 = vrot.slane %v4588_v13, %v3848_v39  ;;  %v6244_v59 = vld [vmem:[#allocation81_spill] sm:$0xff]  ;;  %v6245_v42 = vld [vmem:[#allocation82_spill] sm:$0xff] }
 0x55f   : > { %6231 = vst [vmem:[#allocation93_spill] sm:$0xff] %v4871_v35  ;;  %v4908_v52 = vmul.f32 %v6238_v16, %v2327_v17  ;;  %v6241_v35 = vld [vmem:[#allocation80_spill] sm:$0xff]  ;;  %v2459_v17 = vsel %vm5970_vm8, %v6245_v42, %v6244_v59  ;;  %v6246_v16 = vrot.slane %v4611_v9, %v3848_v39  ;;  %vm6252_vm8 = vcmp.lt.s32.totalorder %v3331_v12, 16 }
 0x560   : > { %6237 = vst [vmem:[#allocation94_spill] sm:$0xff] %v4897_v54  ;;  %v2415_v26 = vsel %vm2414_vm7, %v6241_v35, %v6240_v60  ;;  %v1744_v25 = vadd.f32 %v4715_v41, %v1700_v6  ;;  %v4920_v54 = vmul.f32 %v6242_v19, %v2371_v30  ;;  %v6248_v60 = vld [vmem:[#allocation84_spill] sm:$0xff]  ;;  %v6250_v19 = vrot.slane %v4613_v58, %v3848_v39  ;;  %v6255_v30 = vld [vmem:[#allocation87_spill] sm:$0xff]  ;;  %v6258_v35 = vld [vmem:[#allocation17_spill] sm:$0xff] }
 0x561   : > { %6239 = vst [vmem:[#allocation95_spill] sm:$0xff] %v4908_v52  ;;  %v4944_v42 = vmul.f32 %v6246_v16, %v2415_v26  ;;  %v1242_v26 = vsel %vm6252_vm8, %v4437_v8, %v4435_v15  ;;  %v6268_v52 = vld [vmem:[#allocation19_spill] sm:$0xff] }
 0x562   : > { %6243 = vst [vmem:[#allocation96_spill] sm:$0xff] %v4920_v54  ;;  %v1788_v41 = vadd.f32 %v4724_v50, %v1744_v25  ;;  %v4931_v6 = vpop.permute.xlu1 %1704  ;;  %v4933_v45 = vpop.permute.xlu0 %1702  ;;  %v6249_v50 = vld [vmem:[#allocation85_spill] sm:$0xff]  ;;  %v4957_v59 = vmul.f32 %v6250_v19, %v2459_v17  ;;  %v6287_v58 = vld [vmem:[#allocation35_spill] sm:$0xff] }
 0x563   : > { %6247 = vst [vmem:[#allocation97_spill] sm:$0xff] %v4944_v42  ;;  %v2503_v25 = vsel %vm5971_vm6, %v6249_v50, %v6248_v60  ;;  %vm6253_vm6 = vmmov %vm6252_vm8  ;;  %v6254_v60 = vld [vmem:[#allocation86_spill] sm:$0xff] }
 0x564   : > { %6251 = vst [vmem:[#allocation98_spill] sm:$0xff] %v4957_v59  ;;  %v1243_v16 = vsel %vm6253_vm6, %v6136_v40, %v4437_v8  ;;  %v2547_v50 = vsel %vm2546_vm10, %v6255_v30, %v6254_v60  ;;  %v6256_v40 = vrot.slane %v4623_v34, %v3848_v39  ;;  %v6259_v59 = vld [vmem:[#allocation20_spill] sm:$0xff]  ;;  %vm6260_vm6 = vcmp.lt.s32.totalorder %v3331_v12, 15  ;;  %v6261_v60 = vld [vmem:[#allocation29_spill] sm:$0xff]  ;;  %v6269_v34 = vld [vmem:[#allocation22_spill] sm:$0xff] }
 0x565   : > { %v1286_v42 = vsel %vm6260_vm6, %v6259_v59, %v6258_v35  ;;  %vm6262_vm8 = vmmov %vm6260_vm6  ;;  %v1832_v19 = vadd.f32 %v4729_v11, %v1788_v41  ;;  %vm6270_vm6 = vcmp.lt.s32.totalorder %v3331_v12, 14 }
 0x566   : > { %v4982_v8 = vmul.f32 %v6256_v40, %v2503_v25  ;;  %v1287_v17 = vsel %vm6262_vm8, %v6261_v60, %v6259_v59  ;;  %v4993_v30 = vpop.permute.xlu1 %1748  ;;  %v4995_v15 = vpop.permute.xlu0 %1746  ;;  %v6263_v25 = vrot.slane %v4277_v5, %v3852_v10  ;;  %v6265_v59 = vld [vmem:[#allocation26_spill] sm:$0xff]  ;;  %vm6272_vm8 = vmmov %vm6270_vm6 }
 0x567   : > { %v6266_v11 = vrot.slane %v6265_v59, %v3848_v39  ;;  %v6276_v39 = vld [vmem:[#allocation24_spill] sm:$0xff] }
 0x568   : > { %6257 = vst [vmem:[#allocation99_spill] sm:$0xff] %v4982_v8  ;;  %v1267_v40 = vmul.f32 %v6263_v25, %v1243_v16  ;;  %v6264_v8 = vrot.slane %v4277_v5, %v3850_v38  ;;  %v1330_v16 = vsel %vm6270_vm6, %v6269_v34, %v6268_v52  ;;  %v6271_v25 = vld [vmem:[#allocation31_spill] sm:$0xff]  ;;  %vm6277_vm6 = vcmp.lt.s32.totalorder %v3331_v12, 13  ;;  %v6280_v52 = vld [vmem:[#allocation16_spill] sm:$0xff] }
 0x569   : > { %v5010_v41 = vmul.f32 %v6266_v11, %v2547_v50  ;;  %v1331_v5 = vsel %vm6272_vm8, %v6271_v25, %v6269_v34  ;;  %v6274_v50 = vrot.slane %v4304_v21, %v3850_v38  ;;  %v6278_v25 = vld [vmem:[#allocation33_spill] sm:$0xff]  ;;  %vm6279_vm8 = vmmov %vm6277_vm6 }
 0x56a   : > { %v1268_v54 = vmul.f32 %v6264_v8, %v1242_v26  ;;  %v6273_v8 = vrot.slane %v4304_v21, %v3852_v10  ;;  %v5041_v21 = vpop.permute.xlu1 %1792  ;;  %v1271_v35 = vadd.f32 %v1267_v40, %v6280_v52  ;;  %v6281_v26 = vld [vmem:[#allocation15_spill] sm:$0xff] }
 0x56b   : > { %6267 = vst [vmem:[#allocation17_spill] sm:$0xff] %v5010_v41  ;;  %v1312_v11 = vmul.f32 %v6274_v50, %v1286_v42  ;;  %v6275_v41 = vld [vmem:[#allocation21_spill] sm:$0xff]  ;;  %v5043_v42 = vpop.permute.xlu0 %1790  ;;  %v1953_v50 = vrot.slane %v4486_v31, %v3846_v44 }
 0x56c   : > { %v1311_v60 = vmul.f32 %v6273_v8, %v1287_v17  ;;  %v1374_v34 = vsel %vm6277_vm6, %v6276_v39, %v6275_v41  ;;  %v1375_v17 = vsel %vm6279_vm8, %v6278_v25, %v6276_v39  ;;  %v1876_v8 = vadd.f32 %v4743_v57, %v1832_v19  ;;  %v6284_v57 = vld [vmem:[#allocation27_spill] sm:$0xff]  ;;  %v6285_v19 = vld [vmem:[#allocation28_spill] sm:$0xff] }
 0x56d   : > { %v1272_v59 = vadd.f32 %v1268_v54, %v6281_v26  ;;  %v6282_v41 = vrot.slane %v4394_v22, %v3852_v10  ;;  %v6283_v39 = vrot.slane %v4394_v22, %v3850_v38  ;;  %vm6286_vm6 = vcmp.lt.s32.totalorder %v3331_v12, 3 }
 0x56e   : > { %v1418_v47 = vsel %vm6286_vm6, %v6285_v19, %v6284_v57  ;;  %vm6288_vm8 = vmmov %vm6286_vm6  ;;  %v1989_v54 = vrot.slane %v4499_v56, %v3850_v38  ;;  %v1315_v26 = vadd.f32 %v1311_v60, %v1271_v35  ;;  %v6289_v22 = vrot.slane %v4396_v27, %v3852_v10  ;;  %v6291_v57 = vld [vmem:[#allocation30_spill] sm:$0xff]  ;;  %v5082_v60 = vpop.permute.xlu1 %1836 }
 0x56f   : > { %v1355_v7 = vmul.f32 %v6282_v41, %v1331_v5  ;;  %v1356_v25 = vmul.f32 %v6283_v39, %v1330_v16  ;;  %v1419_v40 = vsel %vm6288_vm8, %v6287_v58, %v6285_v19  ;;  %v1316_v52 = vadd.f32 %v1312_v11, %v1272_v59  ;;  %v6292_v19 = vld [vmem:[#allocation37_spill] sm:$0xff]  ;;  %v5084_v59 = vpop.permute.xlu0 %1834 }
 0x570   : > { %v1399_v16 = vmul.f32 %v6289_v22, %v1375_v17  ;;  %v6290_v41 = vrot.slane %v4396_v27, %v3850_v38  ;;  %v1462_v58 = vsel %vm1459_vm11, %v6291_v57, %v4677_v4  ;;  %v1463_v5 = vsel %vm1459_vm11, %v6292_v19, %v6291_v57 }
 0x571   : > { %v1920_v35 = vadd.f32 %v4748_v1, %v1876_v8  ;;  %v1997_v27 = vrot.slane %v4499_v56, %v3846_v44  ;;  %v1359_v11 = vadd.f32 %v1355_v7, %v1315_v26  ;;  %v6293_v17 = vrot.slane %v4406_v2, %v3852_v10  ;;  %v6295_v8 = vld [vmem:[#allocation39_spill] sm:$0xff] }
 0x572   : > { %v1400_v39 = vmul.f32 %v6290_v41, %v1374_v34  ;;  %v1360_v34 = vadd.f32 %v1356_v25, %v1316_v52  ;;  %v6294_v22 = vrot.slane %v4406_v2, %v3850_v38  ;;  %v1506_v1 = vsel %vm1503_vm12, %v4738_v29, %v4736_v53 }
 0x573   : > { %v1443_v4 = vmul.f32 %v6293_v17, %v1419_v40  ;;  %v1507_v57 = vsel %vm1503_vm12, %v6295_v8, %v4738_v29  ;;  %v1403_v40 = vadd.f32 %v1399_v16, %v1359_v11  ;;  %v6296_v2 = vrot.slane %v4408_v49, %v3852_v10  ;;  %v5113_v17 = vpop.permute.xlu1 %1880  ;;  %v5115_v29 = vpop.permute.xlu0 %1878  ;;  %v6312_v8 = vld [vmem:[#allocation91_spill] sm:$0xff] }
 0x574   : > { %v1444_v41 = vmul.f32 %v6294_v22, %v1418_v47  ;;  %v1404_v26 = vadd.f32 %v1400_v39, %v1360_v34  ;;  %v6297_v53 = vrot.slane %v4408_v49, %v3850_v38  ;;  %v1964_v19 = vadd.f32 %v4768_v33, %v1920_v35  ;;  %v6315_v22 = vld [vmem:[#allocation43_spill] sm:$0xff] }
 0x575   : > { %v1487_v47 = vmul.f32 %v6296_v2, %v1463_v5  ;;  %v1447_v5 = vadd.f32 %v1443_v4, %v1403_v40  ;;  %v6298_v49 = vrot.slane %v4419_v24, %v3852_v10  ;;  %v6299_v33 = vrot.slane %v4419_v24, %v3850_v38  ;;  %v6302_v24 = vld [vmem:[#allocation36_spill] sm:$0xff] }
 0x576   : > { %v1488_v52 = vmul.f32 %v6297_v53, %v1462_v58  ;;  %v1448_v11 = vadd.f32 %v1444_v41, %v1404_v26  ;;  %vm6303_vm11 = vcmp.lt.s32.totalorder %v3331_v12, 127  ;;  %v6313_v34 = vrot.slane %v4425_v51, %v3852_v10 }
 0x577   : > { %v1531_v58 = vmul.f32 %v6298_v49, %v1507_v57  ;;  %v1532_v35 = vmul.f32 %v6299_v33, %v1506_v1  ;;  %v1491_v41 = vadd.f32 %v1487_v47, %v1447_v5  ;;  %v6300_v1 = vld [vmem:[#allocation34_spill] sm:$0xff]  ;;  %v5142_v53 = vpop.permute.xlu1 %1924  ;;  %v5144_v49 = vpop.permute.xlu0 %1922  ;;  %vm6305_vm12 = vmmov %vm6303_vm11 }
 0x578   : > { %v1492_v40 = vadd.f32 %v1488_v52, %v1448_v11  ;;  %v2008_v26 = vadd.f32 %v6300_v1, %v1964_v19  ;;  %v6301_v1 = vld [vmem:[#allocation42_spill] sm:$0xff]  ;;  %vm6307_vm6 = vmmov %vm6303_vm11 }
 0x579   : > { %v1535_v52 = vadd.f32 %v1531_v58, %v1491_v41  ;;  %v1580_v57 = vsel %vm6303_vm11, %v6302_v24, %v6301_v1  ;;  %v6304_v33 = vld [vmem:[#allocation38_spill] sm:$0xff]  ;;  %v6306_v41 = vld [vmem:[#allocation41_spill] sm:$0xff]  ;;  %v6309_v58 = vld [vmem:[#allocation44_spill] sm:$0xff]  ;;  %v1626_v1 = vsel %vm1622_vm14, %v6315_v22, %v4844_v14 }
 0x57a   : > { %v1536_v5 = vadd.f32 %v1532_v35, %v1492_v40  ;;  %v1581_v4 = vsel %vm6305_vm12, %v6304_v33, %v6302_v24  ;;  %v1582_v40 = vsel %vm6307_vm6, %v6306_v41, %v6304_v33  ;;  %v6308_v11 = vld [vmem:[#allocation14_spill] sm:$0xff]  ;;  %v1624_v35 = vsel %vm1622_vm14, %v4842_v43, %v6309_v58  ;;  %v6310_v24 = vld [vmem:[#allocation89_spill] sm:$0xff] }
 0x57b   : > { %v2052_v47 = vadd.f32 %v6308_v11, %v2008_v26  ;;  %v1625_v33 = vsel %vm1622_vm14, %v4844_v14, %v4842_v43  ;;  %v5187_v41 = vpop.permute.xlu1 %1968  ;;  %v5189_v19 = vpop.permute.xlu0 %1966  ;;  %v6311_v26 = vrot.slane %v4425_v51, %v3850_v38  ;;  %v1566_v58 = vadd.f32 %v6312_v8, %v1535_v52 }
 0x57c   : > { %v1567_v2 = vadd.f32 %v6310_v24, %v1536_v5  ;;  %v1606_v39 = vmul.f32 %v6313_v34, %v1581_v4  ;;  %v6314_v43 = vrot.slane %v4425_v51, %v3846_v44  ;;  %v6316_v8 = vrot.slane %v4427_v61, %v3850_v38  ;;  %v6318_v4 = vld [vmem:[#allocation46_spill] sm:$0xff]  ;;  %v6321_v5 = vld [vmem:[#allocation45_spill] sm:$0xff] }
 0x57d   : > { %v1607_v11 = vmul.f32 %v6311_v26, %v1580_v57  ;;  %v6317_v34 = vrot.slane %v4427_v61, %v3852_v10  ;;  %v1669_v14 = vsel %vm1666_vm15, %v4892_v20, %v4890_v3  ;;  %v1670_v25 = vsel %vm1666_vm15, %v6321_v5, %v4892_v20 }
 0x57e   : > { %v1609_v16 = vmul.f32 %v6314_v43, %v1582_v40  ;;  %v1651_v52 = vmul.f32 %v6316_v8, %v1624_v35  ;;  %v1668_v40 = vsel %vm1666_vm15, %v4890_v3, %v6318_v4  ;;  %v6319_v43 = vld [vmem:[#allocation13_spill] sm:$0xff]  ;;  %v1610_v4 = vadd.f32 %v1606_v39, %v1566_v58 }
 0x57f   : > { %v1650_v51 = vmul.f32 %v6317_v34, %v1625_v33  ;;  %v5226_v22 = vpop.permute.xlu1 %2012  ;;  %v5228_v24 = vpop.permute.xlu0 %2010  ;;  %v2096_v8 = vadd.f32 %v6319_v43, %v2052_v47  ;;  %v1611_v34 = vadd.f32 %v1607_v11, %v1567_v2  ;;  %v6320_v3 = vrot.slane %v4427_v61, %v3846_v44  ;;  %v6324_v47 = vld [vmem:[#allocation48_spill] sm:$0xff] }
 0x580   : > { %v6322_v35 = vrot.slane %v4446_v55, %v3850_v38  ;;  %v6323_v26 = vrot.slane %v4446_v55, %v3852_v10  ;;  %vm6325_vm14 = vcmp.lt.s32.totalorder %v3331_v12, 115  ;;  %v6327_v2 = vld [vmem:[#allocation32_spill] sm:$0xff]  ;;  %v2429_v58 = vrot.slane %v4611_v9, %v3850_v38 }
 0x581   : > { %v1653_v57 = vmul.f32 %v6320_v3, %v1626_v1  ;;  %v1712_v39 = vsel %vm6325_vm14, %v4931_v6, %v6324_v47  ;;  %vm6326_vm8 = vmmov %vm6325_vm14  ;;  %v1613_v20 = vadd.f32 %v1609_v16, %v6327_v2  ;;  %v1655_v1 = vadd.f32 %v1651_v52, %v1611_v34 }
 0x582   : > { %v1695_v33 = vmul.f32 %v6322_v35, %v1668_v40  ;;  %v1694_v7 = vmul.f32 %v6323_v26, %v1669_v14  ;;  %v1713_v61 = vsel %vm6326_vm8, %v4933_v45, %v4931_v6  ;;  %v1654_v11 = vadd.f32 %v1650_v51, %v1610_v4  ;;  %v6329_v14 = vld [vmem:[#allocation47_spill] sm:$0xff]  ;;  %vm6330_vm15 = vmmov %vm6326_vm8  ;;  %v6331_v26 = vld [vmem:[#allocation50_spill] sm:$0xff] }
 0x583   : > { %v6328_v5 = vrot.slane %v4446_v55, %v3846_v44  ;;  %v1714_v35 = vsel %vm6330_vm15, %v6329_v14, %v4933_v45  ;;  %v1756_v6 = vsel %vm1754_vm1, %v4993_v30, %v6331_v26  ;;  %v5272_v16 = vpop.permute.xlu1 %2056  ;;  %v5274_v52 = vpop.permute.xlu0 %2054  ;;  %v6332_v51 = vld [vmem:[#allocation40_spill] sm:$0xff]  ;;  %v6333_v55 = vrot.slane %v4448_v62, %v3850_v38 }
 0x584   : > { %v2140_v43 = vadd.f32 %v6332_v51, %v2096_v8  ;;  %v6334_v34 = vrot.slane %v4448_v62, %v3852_v10  ;;  %v1757_v45 = vsel %vm1754_vm1, %v4995_v15, %v4993_v30  ;;  %v2425_v3 = vrot.slane %v4611_v9, %v3852_v10  ;;  %v6335_v8 = vld [vmem:[#allocation49_spill] sm:$0xff]  ;;  %v6338_v30 = vld [vmem:[#allocation52_spill] sm:$0xff] }
 0x585   : > { %v1697_v40 = vmul.f32 %v6328_v5, %v1670_v25  ;;  %v1739_v25 = vmul.f32 %v6333_v55, %v1712_v39  ;;  %v1657_v47 = vadd.f32 %v1653_v57, %v1613_v20  ;;  %v1699_v2 = vadd.f32 %v1695_v33, %v1655_v1 }
 0x586   : > { %v1738_v4 = vmul.f32 %v6334_v34, %v1713_v61  ;;  %v1698_v5 = vadd.f32 %v1694_v7, %v1654_v11  ;;  %v1758_v39 = vsel %vm1754_vm1, %v6335_v8, %v4995_v15  ;;  %v6336_v14 = vrot.slane %v4448_v62, %v3846_v44 }
 0x587   : > { %v6337_v26 = vrot.slane %v4458_v63, %v3850_v38  ;;  %v1800_v57 = vsel %vm1798_vm2, %v5041_v21, %v6338_v30  ;;  %v1801_v7 = vsel %vm1798_vm2, %v5043_v42, %v5041_v21  ;;  %v1701_v33 = vadd.f32 %v1697_v40, %v1657_v47  ;;  %v5310_v20 = vpop.permute.xlu1 %2100  ;;  %v5312_v1 = vpop.permute.xlu0 %2098  ;;  %v6342_v40 = vld [vmem:[#allocation51_spill] sm:$0xff] }
 0x588   : > { %v1741_v61 = vmul.f32 %v6336_v14, %v1714_v35  ;;  %v6339_v15 = vrot.slane %v4458_v63, %v3852_v10  ;;  %v2437_v11 = vrot.slane %v4611_v9, %v3846_v44  ;;  %v6340_v35 = vld [vmem:[#allocation90_spill] sm:$0xff]  ;;  %v1743_v55 = vadd.f32 %v1739_v25, %v1699_v2  ;;  %v6348_v2 = vld [vmem:[#allocation23_spill] sm:$0xff] }
 0x589   : > { %v1783_v51 = vmul.f32 %v6337_v26, %v1756_v6  ;;  %v2184_v6 = vadd.f32 %v6340_v35, %v2140_v43  ;;  %v1742_v34 = vadd.f32 %v1738_v4, %v1698_v5  ;;  %v6341_v8 = vrot.slane %v4458_v63, %v3846_v44  ;;  %v6345_v43 = vld [vmem:[#allocation54_spill] sm:$0xff]  ;;  %v6351_v35 = vld [vmem:[#allocation56_spill] sm:$0xff]  ;;  %v6455_v9 = vld [vmem:[#allocation87_spill] sm:$0xff] }
 0x58a   : > { %v1782_v62 = vmul.f32 %v6339_v15, %v1757_v45  ;;  %v1802_v45 = vsel %vm1798_vm2, %v6342_v40, %v5043_v42  ;;  %v6343_v47 = vrot.slane %v4460_v36, %v3850_v38  ;;  %v6344_v26 = vrot.slane %v4460_v36, %v3852_v10  ;;  %v6374_v5 = vld [vmem:[#allocation60_spill] sm:$0xff] }
 0x58b   : > { %v1785_v21 = vmul.f32 %v6341_v8, %v1758_v39  ;;  %vm6346_vm1 = vcmp.lt.s32.totalorder %v3331_v12, 112  ;;  %v1745_v4 = vadd.f32 %v1741_v61, %v1701_v33  ;;  %v1787_v42 = vadd.f32 %v1783_v51, %v1743_v55  ;;  %v5352_v61 = vpop.permute.xlu0 %2142  ;;  %v6353_v51 = vld [vmem:[#allocation88_spill] sm:$0xff] }
 0x58c   : > { %v1827_v14 = vmul.f32 %v6343_v47, %v1800_v57  ;;  %v1826_v30 = vmul.f32 %v6344_v26, %v1801_v7  ;;  %v1844_v25 = vsel %vm6346_vm1, %v5082_v60, %v6345_v43  ;;  %vm6347_vm11 = vmmov %vm6346_vm1  ;;  %v1786_v57 = vadd.f32 %v1782_v62, %v1742_v34  ;;  %v6349_v7 = vld [vmem:[#allocation53_spill] sm:$0xff]  ;;  %v6355_v34 = vld [vmem:[#allocation92_spill] sm:$0xff] }
 0x58d   : > { %v1845_v63 = vsel %vm6347_vm11, %v5084_v59, %v5082_v60  ;;  %vm6350_vm2 = vmmov %vm6346_vm1  ;;  %vm6352_vm12 = vcmp.lt.s32.totalorder %v3331_v12, 111  ;;  %v5350_v60 = vpop.permute.xlu1 %2144  ;;  %v2228_v33 = vadd.f32 %v6353_v51, %v2184_v6  ;;  %v6354_v55 = vrot.slane %v4460_v36, %v3846_v44 }
 0x58e   : > { %v1846_v15 = vsel %vm6350_vm2, %v6349_v7, %v5084_v59  ;;  %v1888_v8 = vsel %vm6352_vm12, %v5113_v17, %v6351_v35  ;;  %v6356_v40 = vrot.slane %v6355_v34, %v3850_v38  ;;  %v6357_v59 = vrot.slane %v6355_v34, %v3852_v10  ;;  %vm6358_vm6 = vmmov %vm6352_vm12 }
 0x58f   : > { %v1829_v62 = vmul.f32 %v6354_v55, %v1802_v45  ;;  %v1889_v43 = vsel %vm6358_vm6, %v5115_v29, %v5113_v17  ;;  %v1789_v7 = vadd.f32 %v1785_v21, %v1745_v4  ;;  %v1831_v35 = vadd.f32 %v1827_v14, %v1787_v42  ;;  %vm6363_vm14 = vmmov %vm6358_vm6  ;;  %v6364_v17 = vld [vmem:[#allocation58_spill] sm:$0xff] }
 0x590   : > { %v1871_v47 = vmul.f32 %v6356_v40, %v1844_v25  ;;  %v1870_v26 = vmul.f32 %v6357_v59, %v1845_v63  ;;  %v1830_v6 = vadd.f32 %v1826_v30, %v1786_v57  ;;  %v6359_v45 = vrot.slane %v6355_v34, %v3846_v44  ;;  %v6360_v25 = vld [vmem:[#allocation18_spill] sm:$0xff]  ;;  %v6362_v63 = vld [vmem:[#allocation55_spill] sm:$0xff]  ;;  %v5393_v57 = vpop.permute.xlu0 %2186 }
 0x591   : > { %v6361_v55 = vrot.slane %v6360_v25, %v3850_v38  ;;  %v1890_v59 = vsel %vm6363_vm14, %v6362_v63, %v5115_v29  ;;  %vm6365_vm8 = vcmp.lt.s32.totalorder %v3331_v12, 110  ;;  %v6366_v14 = vrot.slane %v6360_v25, %v3852_v10  ;;  %v5391_v42 = vpop.permute.xlu1 %2188  ;;  %v6368_v29 = vld [vmem:[#allocation25_spill] sm:$0xff] }
 0x592   : > { %v1873_v51 = vmul.f32 %v6359_v45, %v1846_v15  ;;  %v1932_v21 = vsel %vm6365_vm8, %v5142_v53, %v6364_v17  ;;  %vm6367_vm15 = vmmov %vm6365_vm8  ;;  %v2517_v15 = vrot.slane %v6368_v29, %v3850_v38  ;;  %v1833_v45 = vadd.f32 %v1829_v62, %v1789_v7  ;;  %v6370_v17 = vld [vmem:[#allocation57_spill] sm:$0xff] }
 0x593   : > { %v1915_v40 = vmul.f32 %v6361_v55, %v1888_v8  ;;  %v1914_v30 = vmul.f32 %v6366_v14, %v1889_v43  ;;  %v1933_v4 = vsel %vm6367_vm15, %v5144_v49, %v5142_v53  ;;  %v6369_v8 = vld [vmem:[#allocation93_spill] sm:$0xff]  ;;  %v1875_v55 = vadd.f32 %v1871_v47, %v1831_v35  ;;  %vm6371_vm1 = vmmov %vm6365_vm8 }
 0x594   : > { %v2272_v34 = vadd.f32 %v6369_v8, %v2228_v33  ;;  %v1874_v63 = vadd.f32 %v1870_v26, %v1830_v6  ;;  %v1934_v43 = vsel %vm6371_vm1, %v6370_v17, %v5144_v49  ;;  %v6372_v53 = vrot.slane %v6360_v25, %v3846_v44 }
 0x595   : > { %v6373_v36 = vrot.slane %v4486_v31, %v3850_v38  ;;  %vm6375_vm11 = vcmp.lt.s32.totalorder %v3331_v12, 109  ;;  %v1877_v47 = vadd.f32 %v1873_v51, %v1833_v45  ;;  %v1919_v49 = vadd.f32 %v1915_v40, %v1875_v55  ;;  %v5430_v51 = vpop.permute.xlu0 %2230  ;;  %v6380_v40 = vld [vmem:[#allocation94_spill] sm:$0xff] }
 0x596   : > { %v1917_v14 = vmul.f32 %v6372_v53, %v1890_v59  ;;  %v1976_v33 = vsel %vm6375_vm11, %v5187_v41, %v6374_v5  ;;  %vm6376_vm2 = vmmov %vm6375_vm11  ;;  %v6377_v26 = vrot.slane %v4486_v31, %v3852_v10  ;;  %v2513_v35 = vrot.slane %v6368_v29, %v3852_v10  ;;  %v6378_v5 = vld [vmem:[#allocation59_spill] sm:$0xff] }
 0x597   : > { %v1959_v39 = vmul.f32 %v6373_v36, %v1932_v21  ;;  %v1977_v62 = vsel %vm6376_vm2, %v5189_v19, %v5187_v41  ;;  %v1918_v6 = vadd.f32 %v1914_v30, %v1874_v63  ;;  %v1961_v36 = vmul.f32 %v1953_v50, %v1934_v43  ;;  %vm6379_vm12 = vmmov %vm6376_vm2  ;;  %v5428_v41 = vpop.permute.xlu1 %2232  ;;  %v6382_v50 = vld [vmem:[#allocation62_spill] sm:$0xff]  ;;  %v6386_v43 = vld [vmem:[#allocation61_spill] sm:$0xff] }
 0x598   : > { %v1958_v7 = vmul.f32 %v6377_v26, %v1933_v4  ;;  %v1978_v25 = vsel %vm6379_vm12, %v6378_v5, %v5189_v19  ;;  %v2316_v59 = vadd.f32 %v6380_v40, %v2272_v34  ;;  %v2003_v21 = vmul.f32 %v1989_v54, %v1976_v33  ;;  %v6385_v54 = vld [vmem:[#allocation26_spill] sm:$0xff]  ;;  %v6388_v33 = vld [vmem:[#allocation64_spill] sm:$0xff]  ;;  %v6392_v5 = vld [vmem:[#allocation95_spill] sm:$0xff] }
 0x599   : > { %v6381_v30 = vrot.slane %v4499_v56, %v3852_v10  ;;  %vm6383_vm6 = vcmp.lt.s32.totalorder %v3331_v12, 99  ;;  %v1921_v8 = vadd.f32 %v1917_v14, %v1877_v47  ;;  %v1963_v34 = vadd.f32 %v1959_v39, %v1919_v49  ;;  %v2275_v49 = vpop.permute.xlu0 %2274 }
 0x59a   : > { %v2020_v4 = vsel %vm6383_vm6, %v5226_v22, %v6382_v50  ;;  %vm6384_vm14 = vmmov %vm6383_vm6  ;;  %v2525_v45 = vrot.slane %v6368_v29, %v3846_v44  ;;  %v2561_v55 = vrot.slane %v6385_v54, %v3850_v38  ;;  %v1962_v63 = vadd.f32 %v1958_v7, %v1918_v6  ;;  %v6391_v6 = vld [vmem:[#allocation63_spill] sm:$0xff] }
 0x59b   : > { %v2002_v31 = vmul.f32 %v6381_v30, %v1977_v62  ;;  %v2021_v19 = vsel %vm6384_vm14, %v5228_v24, %v5226_v22  ;;  %v2005_v17 = vmul.f32 %v1997_v27, %v1978_v25  ;;  %vm6387_vm8 = vmmov %vm6383_vm6  ;;  %v2064_v22 = vsel %vm2062_vm9, %v5272_v16, %v6388_v33 }
 0x59c   : > { %v2022_v53 = vsel %vm6387_vm8, %v6386_v43, %v5228_v24  ;;  %v1965_v39 = vadd.f32 %v1961_v36, %v1921_v8  ;;  %v6389_v14 = vrot.slane %v4501_v0, %v3850_v38  ;;  %v6390_v47 = vrot.slane %v4501_v0, %v3852_v10  ;;  %v2277_v24 = vpop.permute.xlu1 %2276 }
 0x59d   : > { %v2065_v27 = vsel %vm2062_vm9, %v5274_v52, %v5272_v16  ;;  %v2007_v26 = vadd.f32 %v2003_v21, %v1963_v34  ;;  %v2006_v7 = vadd.f32 %v2002_v31, %v1962_v63  ;;  %v2066_v36 = vsel %vm2062_vm9, %v6391_v6, %v5274_v52  ;;  %v6395_v16 = vld [vmem:[#allocation66_spill] sm:$0xff] }
 0x59e   : > { %v2047_v62 = vmul.f32 %v6389_v14, %v2020_v4  ;;  %v2046_v56 = vmul.f32 %v6390_v47, %v2021_v19  ;;  %v2360_v25 = vadd.f32 %v6392_v5, %v2316_v59  ;;  %v6393_v40 = vrot.slane %v4501_v0, %v3846_v44  ;;  %v5498_v34 = vld [vmem:[#allocation5 + $0xc0] ss:$8 sm:$0xf] }
 0x59f   : > { %v6394_v50 = vrot.slane %v4512_v18, %v3850_v38  ;;  %vm6396_vm15 = vcmp.lt.s32.totalorder %v3331_v12, 97  ;;  %v2009_v31 = vadd.f32 %v2005_v17, %v1965_v39  ;;  %v6398_v59 = vrot.slane %v4512_v18, %v3852_v10  ;;  %v2319_v39 = vpop.permute.xlu0 %2318 }
 0x5a0   : > { %v2049_v30 = vmul.f32 %v6393_v40, %v2022_v53  ;;  %v2108_v21 = vsel %vm6396_vm15, %v5310_v20, %v6395_v16  ;;  %vm6397_vm1 = vmmov %vm6396_vm15  ;;  %v2557_v19 = vrot.slane %v6385_v54, %v3852_v10  ;;  %v2569_v8 = vrot.slane %v6385_v54, %v3846_v44 }
 0x5a1   : > { %v2091_v4 = vmul.f32 %v6394_v50, %v2064_v22  ;;  %v2109_v52 = vsel %vm6397_vm1, %v5312_v1, %v5310_v20  ;;  %v2090_v0 = vmul.f32 %v6398_v59, %v2065_v27  ;;  %v2051_v63 = vadd.f32 %v2047_v62, %v2007_v26  ;;  %v6400_v20 = vld [vmem:[#allocation65_spill] sm:$0xff]  ;;  %vm6401_vm9 = vmmov %vm6397_vm1  ;;  %v2321_v22 = vpop.permute.xlu1 %2320  ;;  %v6408_v59 = vld [vmem:[#allocation70_spill] sm:$0xff] }
 0x5a2   : > { %v2050_v43 = vadd.f32 %v2046_v56, %v2006_v7  ;;  %v6399_v53 = vrot.slane %v4512_v18, %v3846_v44  ;;  %v2110_v17 = vsel %vm6401_vm9, %v6400_v20, %v5312_v1  ;;  %v6402_v14 = vrot.slane %v4522_v46, %v3850_v38  ;;  %v6404_v56 = vld [vmem:[#allocation68_spill] sm:$0xff] }
 0x5a3   : > { %v6403_v27 = vrot.slane %v4522_v46, %v3852_v10  ;;  %v2152_v18 = vsel %vm2150_vm13, %v5350_v60, %v6404_v56  ;;  %v2153_v1 = vsel %vm2150_vm13, %v5352_v61, %v5350_v60  ;;  %v2053_v26 = vadd.f32 %v2049_v30, %v2009_v31 }
 0x5a4   : > { %v2093_v33 = vmul.f32 %v6399_v53, %v2066_v36  ;;  %v2135_v47 = vmul.f32 %v6402_v14, %v2108_v21  ;;  %v2095_v7 = vadd.f32 %v2091_v4, %v2051_v63  ;;  %v2601_v6 = vrot.slane %v5498_v34, %v3852_v10  ;;  %v6405_v36 = vld [vmem:[#allocation96_spill] sm:$0xff]  ;;  %v6407_v21 = vld [vmem:[#allocation67_spill] sm:$0xff] }
 0x5a5   : > { %v2134_v62 = vmul.f32 %v6403_v27, %v2109_v52  ;;  %v2404_v5 = vadd.f32 %v6405_v36, %v2360_v25  ;;  %v2094_v40 = vadd.f32 %v2090_v0, %v2050_v43  ;;  %v6406_v50 = vrot.slane %v4522_v46, %v3846_v44  ;;  %v2365_v0 = vpop.permute.xlu1 %2364  ;;  %v6420_v36 = vld [vmem:[#allocation97_spill] sm:$0xff] }
 0x5a6   : > { %v2154_v52 = vsel %vm2150_vm13, %v6407_v21, %v5352_v61  ;;  %vm6409_vm11 = vcmp.lt.s32.totalorder %v3331_v12, 95  ;;  %v6410_v30 = vrot.slane %v4533_v28, %v3850_v38  ;;  %v6411_v25 = vrot.slane %v4533_v28, %v3852_v10  ;;  %v2363_v61 = vpop.permute.xlu0 %2362 }
 0x5a7   : > { %v2137_v16 = vmul.f32 %v6406_v50, %v2110_v17  ;;  %v2196_v60 = vsel %vm6409_vm11, %v5391_v42, %v6408_v59  ;;  %vm6412_vm2 = vmmov %vm6409_vm11  ;;  %v2613_v63 = vrot.slane %v5498_v34, %v3846_v44  ;;  %v2097_v43 = vadd.f32 %v2093_v33, %v2053_v26  ;;  %v6413_v17 = vld [vmem:[#allocation69_spill] sm:$0xff]  ;;  %v6419_v26 = vld [vmem:[#allocation71_spill] sm:$0xff] }
 0x5a8   : > { %v2179_v4 = vmul.f32 %v6410_v30, %v2152_v18  ;;  %v2178_v31 = vmul.f32 %v6411_v25, %v2153_v1  ;;  %v2197_v46 = vsel %vm6412_vm2, %v5393_v57, %v5391_v42  ;;  %v2139_v53 = vadd.f32 %v2135_v47, %v2095_v7  ;;  %vm6414_vm13 = vmmov %vm6412_vm2  ;;  %v6417_v1 = vld [vmem:[#allocation72_spill] sm:$0xff] }
 0x5a9   : > { %v2138_v20 = vadd.f32 %v2134_v62, %v2094_v40  ;;  %v2198_v14 = vsel %vm6414_vm13, %v6413_v17, %v5393_v57  ;;  %v6415_v27 = vrot.slane %v4533_v28, %v3846_v44  ;;  %v6416_v42 = vrot.slane %v4545_v23, %v3850_v38 }
 0x5aa   : > { %v2240_v33 = vsel %vm2238_vm0, %v5428_v41, %v6417_v1  ;;  %v2241_v47 = vsel %vm2238_vm0, %v5430_v51, %v5428_v41  ;;  %v2141_v62 = vadd.f32 %v2137_v16, %v2097_v43  ;;  %v6418_v57 = vrot.slane %v4545_v23, %v3852_v10  ;;  %v2409_v16 = vpop.permute.xlu1 %2408  ;;  %v2407_v30 = vpop.permute.xlu0 %2406 }
 0x5ab   : > { %v2181_v56 = vmul.f32 %v6415_v27, %v2154_v52  ;;  %v2223_v18 = vmul.f32 %v6416_v42, %v2196_v60  ;;  %v2242_v7 = vsel %vm2238_vm0, %v6419_v26, %v5430_v51  ;;  %v2448_v40 = vadd.f32 %v6420_v36, %v2404_v5  ;;  %v6422_v60 = vld [vmem:[#allocation74_spill] sm:$0xff] }
 0x5ac   : > { %v2222_v28 = vmul.f32 %v6418_v57, %v2197_v46  ;;  %v2183_v50 = vadd.f32 %v2179_v4, %v2139_v53  ;;  %v2182_v21 = vadd.f32 %v2178_v31, %v2138_v20  ;;  %v6421_v52 = vrot.slane %v4545_v23, %v3846_v44  ;;  %v6425_v31 = vld [vmem:[#allocation73_spill] sm:$0xff] }
 0x5ad   : > { %v2284_v41 = vsel %vm2282_vm4, %v2277_v24, %v6422_v60  ;;  %v6423_v25 = vrot.slane %v4560_v37, %v3850_v38  ;;  %v6424_v51 = vrot.slane %v4560_v37, %v3852_v10  ;;  %v2285_v4 = vsel %vm2282_vm4, %v2275_v49, %v2277_v24 }
 0x5ae   : > { %v2225_v59 = vmul.f32 %v6421_v52, %v2198_v14  ;;  %v2286_v23 = vsel %vm2282_vm4, %v6425_v31, %v2275_v49  ;;  %v2185_v43 = vadd.f32 %v2181_v56, %v2141_v62  ;;  %v2227_v53 = vadd.f32 %v2223_v18, %v2183_v50  ;;  %v6427_v14 = vld [vmem:[#allocation76_spill] sm:$0xff]  ;;  %v2451_v36 = vpop.permute.xlu0 %2450 }
 0x5af   : > { %v2267_v46 = vmul.f32 %v6423_v25, %v2240_v33  ;;  %v2266_v5 = vmul.f32 %v6424_v51, %v2241_v47  ;;  %v6426_v20 = vrot.slane %v4560_v37, %v3846_v44  ;;  %v2328_v27 = vsel %vm2326_vm3, %v2321_v22, %v6427_v14  ;;  %v6429_v47 = vld [vmem:[#allocation75_spill] sm:$0xff]  ;;  %v6436_v51 = vld [vmem:[#allocation77_spill] sm:$0xff]  ;;  %v6438_v31 = vld [vmem:[#allocation80_spill] sm:$0xff] }
 0x5b0   : > { %v2226_v42 = vadd.f32 %v2222_v28, %v2182_v21  ;;  %v6428_v1 = vrot.slane %v4574_v48, %v3850_v38  ;;  %v2329_v24 = vsel %vm2326_vm3, %v2319_v39, %v2321_v22  ;;  %v2330_v49 = vsel %vm2326_vm3, %v6429_v47, %v2319_v39  ;;  %v6432_v28 = vld [vmem:[#allocation78_spill] sm:$0xff]  ;;  %v6442_v47 = vld [vmem:[#allocation79_spill] sm:$0xff] }
 0x5b1   : > { %v2269_v17 = vmul.f32 %v6426_v20, %v2242_v7  ;;  %v2229_v56 = vadd.f32 %v2225_v59, %v2185_v43  ;;  %v6430_v37 = vrot.slane %v4574_v48, %v3852_v10  ;;  %v6431_v62 = vrot.slane %v4574_v48, %v3846_v44  ;;  %v2453_v7 = vpop.permute.xlu1 %2452  ;;  %v6439_v43 = vld [vmem:[#allocation98_spill] sm:$0xff] }
 0x5b2   : > { %v2311_v33 = vmul.f32 %v6428_v1, %v2284_v41  ;;  %v2372_v26 = vsel %vm2370_vm5, %v2365_v0, %v6432_v28  ;;  %v2271_v22 = vadd.f32 %v2267_v46, %v2227_v53  ;;  %v2270_v50 = vadd.f32 %v2266_v5, %v2226_v42  ;;  %v2495_v42 = vpop.permute.xlu0 %2494  ;;  %v6446_v28 = vld [vmem:[#allocation81_spill] sm:$0xff] }
 0x5b3   : > { %v2310_v18 = vmul.f32 %v6430_v37, %v2285_v4  ;;  %v2313_v57 = vmul.f32 %v6431_v62, %v2286_v23  ;;  %v6433_v39 = vrot.slane %v4576_v32, %v3850_v38  ;;  %v2373_v52 = vsel %vm2370_vm5, %v2363_v61, %v2365_v0 }
 0x5b4   : > { %v2273_v59 = vadd.f32 %v2269_v17, %v2229_v56  ;;  %v6434_v48 = vrot.slane %v4576_v32, %v3852_v10  ;;  %v6435_v41 = vrot.slane %v4576_v32, %v3846_v44  ;;  %v2374_v46 = vsel %vm2370_vm5, %v6436_v51, %v2363_v61 }
 0x5b5   : > { %v2355_v21 = vmul.f32 %v6433_v39, %v2328_v27  ;;  %vm2590_vm0 = vcmp.lt.s32.totalorder %v3331_v12, 77  ;;  %v2315_v5 = vadd.f32 %v2311_v33, %v2271_v22  ;;  %v6437_v4 = vrot.slane %v4588_v13, %v3850_v38  ;;  %v2497_v27 = vpop.permute.xlu1 %2496 }
 0x5b6   : > { %v2354_v60 = vmul.f32 %v6434_v48, %v2329_v24  ;;  %v2357_v25 = vmul.f32 %v6435_v41, %v2330_v49  ;;  %v2416_v23 = vsel %vm2414_vm7, %v2409_v16, %v6438_v31  ;;  %v2492_v53 = vadd.f32 %v6439_v43, %v2448_v40  ;;  %v6443_v49 = vld [vmem:[#allocation82_spill] sm:$0xff] }
 0x5b7   : > { %v2399_v0 = vmul.f32 %v6437_v4, %v2372_v26  ;;  %v2314_v20 = vadd.f32 %v2310_v18, %v2270_v50  ;;  %v2317_v32 = vadd.f32 %v2313_v57, %v2273_v59  ;;  %v6440_v17 = vrot.slane %v4588_v13, %v3852_v10  ;;  %v6448_v26 = vld [vmem:[#allocation85_spill] sm:$0xff] }
 0x5b8   : > { %v2417_v61 = vsel %vm2414_vm7, %v2407_v30, %v2409_v16  ;;  %v2359_v1 = vadd.f32 %v2355_v21, %v2315_v5  ;;  %v6441_v33 = vrot.slane %v4588_v13, %v3846_v44  ;;  %v2418_v40 = vsel %vm2414_vm7, %v6442_v47, %v2407_v30 }
 0x5b9   : > { %v2398_v14 = vmul.f32 %v6440_v17, %v2373_v52  ;;  %vm6444_vm3 = vcmp.lt.s32.totalorder %v3331_v12, 80  ;;  %v2358_v37 = vadd.f32 %v2354_v60, %v2314_v20  ;;  %v2361_v18 = vadd.f32 %v2357_v25, %v2317_v32  ;;  %v2541_v21 = vpop.permute.xlu1 %2540  ;;  %v2539_v52 = vpop.permute.xlu0 %2538  ;;  %v6453_v60 = vld [vmem:[#allocation84_spill] sm:$0xff]  ;;  %v6458_v20 = vld [vmem:[#allocation99_spill] sm:$0xff] }
 0x5ba   : > { %v2401_v24 = vmul.f32 %v6441_v33, %v2374_v46  ;;  %v2460_v56 = vsel %vm6444_vm3, %v2453_v7, %v6443_v49  ;;  %v2443_v16 = vmul.f32 %v2429_v58, %v2416_v23  ;;  %vm6445_vm4 = vmmov %vm6444_vm3  ;;  %v2403_v57 = vadd.f32 %v2399_v0, %v2359_v1  ;;  %v6457_v23 = vld [vmem:[#allocation86_spill] sm:$0xff] }
 0x5bb   : > { %v2461_v62 = vsel %vm6445_vm4, %v2451_v36, %v2453_v7  ;;  %v2442_v13 = vmul.f32 %v2425_v3, %v2417_v61  ;;  %vm6447_vm7 = vmmov %vm6444_vm3  ;;  %vm6449_vm5 = vcmp.lt.s32.totalorder %v3331_v12, 79  ;;  %v2402_v50 = vadd.f32 %v2398_v14, %v2358_v37  ;;  %v6460_v37 = vld [vmem:[#allocation17_spill] sm:$0xff] }
 0x5bc   : > { %v2462_v30 = vsel %vm6447_vm7, %v6446_v28, %v2451_v36  ;;  %v2504_v22 = vsel %vm6449_vm5, %v2497_v27, %v6448_v26  ;;  %v2445_v58 = vmul.f32 %v2437_v11, %v2418_v40  ;;  %v6450_v7 = vrot.slane %v6348_v2, %v3850_v38  ;;  %vm6451_vm12 = vmmov %vm6449_vm5 }
 0x5bd   : > { %v2505_v3 = vsel %vm6451_vm12, %v2495_v42, %v2497_v27  ;;  %v2405_v59 = vadd.f32 %v2401_v24, %v2361_v18  ;;  %v6452_v36 = vrot.slane %v6348_v2, %v3852_v10  ;;  %vm6454_vm6 = vmmov %vm6449_vm5  ;;  %v2548_v11 = vsel %vm2546_vm10, %v2541_v21, %v6455_v9  ;;  %v2585_v61 = vpop.permute.xlu1 %2584  ;;  %v2583_v27 = vpop.permute.xlu0 %2582 }
 0x5be   : > { %v2487_v39 = vmul.f32 %v6450_v7, %v2460_v56  ;;  %v2506_v41 = vsel %vm6454_vm6, %v6453_v60, %v2495_v42  ;;  %v2447_v25 = vadd.f32 %v2443_v16, %v2403_v57  ;;  %v6456_v51 = vrot.slane %v6348_v2, %v3846_v44 }
 0x5bf   : > { %v2486_v48 = vmul.f32 %v6452_v36, %v2461_v62  ;;  %v2531_v5 = vmul.f32 %v2517_v15, %v2504_v22  ;;  %v2549_v4 = vsel %vm2546_vm10, %v2539_v52, %v2541_v21  ;;  %v2446_v0 = vadd.f32 %v2442_v13, %v2402_v50 }
 0x5c0   : > { %v2489_v46 = vmul.f32 %v6456_v51, %v2462_v30  ;;  %v2530_v31 = vmul.f32 %v2513_v35, %v2505_v3  ;;  %v2550_v43 = vsel %vm2546_vm10, %v6457_v23, %v2539_v52  ;;  %v2536_v32 = vadd.f32 %v6458_v20, %v2492_v53  ;;  %v2936_v51 = vld [vmem:[%s3300_s20] sm:$0xff] }
 0x5c1   : > { %v2449_v2 = vadd.f32 %v2445_v58, %v2405_v59  ;;  %v2491_v17 = vadd.f32 %v2487_v39, %v2447_v25  ;;  %v2533_v15 = vmul.f32 %v2525_v45, %v2506_v41  ;;  %v2575_v14 = vmul.f32 %v2561_v55, %v2548_v11  ;;  %v6459_v55 = vld [vmem:[#allocation83_spill] sm:$0xff]  ;;  %v2589_v56 = vpop.permute.xlu1 %2588 }
 0x5c2   : > { %v2490_v42 = vadd.f32 %v2486_v48, %v2446_v0  ;;  %v2574_v35 = vmul.f32 %v2557_v19, %v2549_v4  ;;  %v2593_v53 = vsel %vm2590_vm0, %v2583_v27, %v2585_v61  ;;  %v2605_v1 = vrot.slane %v5498_v34, %v3850_v38  ;;  %v2587_v38 = vpop.permute.xlu0 %2586  ;;  %v6461_v48 = vld [vmem:[#allocation12_spill] sm:$0xff]  ;;  %v6462_v41 = vld [vmem:[#allocation11_spill] sm:$0xff] }
 0x5c3   : > { %v2493_v33 = vadd.f32 %v2489_v46, %v2449_v2  ;;  %v2535_v29 = vadd.f32 %v2531_v5, %v2491_v17  ;;  %v2577_v45 = vmul.f32 %v2569_v8, %v2550_v43  ;;  %v2609_v24 = vrot.slane %v5498_v34, %v6459_v55  ;;  %v2937_v5 = vld [vmem:[%s3300_s20 + $0x10] sm:$0xff] }
 0x5c4   : > { %v2534_v47 = vadd.f32 %v2530_v31, %v2490_v42  ;;  %v2618_v19 = vmul.f32 %v2601_v6, %v2593_v53  ;;  %v2580_v18 = vadd.f32 %v6460_v37, %v2536_v32  ;;  %v2594_v62 = vsel %vm2590_vm0, %v2589_v56, %v2583_v27  ;;  %v2939_v31 = vld [vmem:[%s3300_s20 + $0x18] sm:$0xff] }
 0x5c5   : > { %v2537_v40 = vadd.f32 %v2533_v15, %v2493_v33  ;;  %v2579_v49 = vadd.f32 %v2575_v14, %v2535_v29  ;;  %v2591_v54 = vsel %vm2590_vm0, %v2587_v38, %v2589_v56  ;;  %v2592_v8 = vsel %vm2590_vm0, %v2585_v61, %v2587_v38 }
 0x5c6   : > { %v2578_v16 = vadd.f32 %v2574_v35, %v2534_v47  ;;  %v2621_v13 = vmul.f32 %v2613_v63, %v2594_v62  ;;  %v2619_v6 = vmul.f32 %v2605_v1, %v2592_v8  ;;  %v2620_v28 = vmul.f32 %v2609_v24, %v2591_v54 }
 0x5c7   : > { %v2581_v57 = vadd.f32 %v2577_v45, %v2537_v40 }
 0x5c8   : > { %v2622_v30 = vadd.f32 %v2618_v19, %v2578_v16  ;;  %v2623_v22 = vadd.f32 %v2619_v6, %v2579_v49  ;;  %v2624_v50 = vadd.f32 %v2620_v28, %v2580_v18 }
 0x5c9   : > { %v2625_v26 = vadd.f32 %v2621_v13, %v2581_v57 }
 0x5ca   : > { %v2626_v58 = vadd.f32 %v2624_v50, %v2622_v30 }
 0x5cb   : > { %v2627_v7 = vadd.f32 %v2625_v26, %v2623_v22 }
 0x5cc   : > { %v2774_v39 = vmul.f32 -1.442695, %v2626_v58 }
 0x5cd   : > { %v2775_v3 = vmul.f32 -1.442695, %v2627_v7 }
 0x5ce   : > { %2928 = vpow2.f32 %v2774_v39 }
 0x5cf   : > { %2930 = vpow2.f32 %v2775_v3 }
 0x5d8   : > { %v2929_v12 = vpop.eup %2928 }
 0x5d9   : > { %v2931_v21 = vpop.eup %2930  ;;  %v2634_v52 = vadd.f32 1.0, %v2929_v12 }
 0x5da   : > { %v2635_v44 = vadd.f32 1.0, %v2931_v21 }
 0x5db   : > { %2932 = vrcp.f32 %v2634_v52 }
 0x5dc   : > { %2934 = vrcp.f32 %v2635_v44 }
 0x5e5   : > { %v2933_v34 = vpop.eup %2932 }
 0x5e6   : > { %v2935_v63 = vpop.eup %2934  ;;  %v2643_v59 = vrot.slane %v2933_v34, %v3852_v10 }
 0x5e7   : > { %v2647_v36 = vrot.slane %v2935_v63, %v3852_v10  ;;  %v2938_v10 = vld [vmem:[%s3300_s20 + $0x8] sm:$0xff]  ;;  %s3004_s20 = scalar_lea.vmem %s3003_s25, 1024 }
 0x5e8   : > { %v2648_v60 = vmul.f32 %v2643_v59, %v6461_v48  ;;  %v2650_v9 = vmul.f32 %v2643_v59, %v6462_v41  ;;  %p3006_p13 = scmp.lt.s32.totalorder %s3004_s20, %s2998_s13 }
 0x5e9   : > { %v2649_v11 = vmul.f32 %v2647_v36, %v6461_v48  ;;  %v2651_v25 = vmul.f32 %v2647_v36, %v6462_v41 }
 0x5ea   : > { %v2652_v46 = vmul.f32 %v2936_v51, %v2648_v60  ;;  %v2654_v4 = vmul.f32 %v2937_v5, %v2650_v9  ;;  %p3007_p3 = por %p3006_p13, %p3005_p10 }
 0x5eb   : > { %v2653_v0 = vmul.f32 %v2938_v10, %v2649_v11  ;;  %v2655_v23 = vmul.f32 %v2939_v31, %v2651_v25 }
 0x5ec   : > { %2656 = vst [vmem:[%s230_s5] sm:$0xff] %v2652_v46  ;;  %2658 = vst [vmem:[%s230_s5 + $0x10] sm:$0xff] %v2654_v4  ;;  %p3008_p7 = pnand %p3007_p3, %p3001_p8 }
 0x5ed   : > { %2657 = vst [vmem:[%s230_s5 + $0x8] sm:$0xff] %v2653_v0  ;;  %2659 = vst [vmem:[%s230_s5 + $0x18] sm:$0xff] %v2655_v23 }
 0x5ee   : > { %3011 = shalt.err (!%p3008_p7)
}
 0x5ef   : > { %s3012_s11 = scalar_lea.hbm %s5740_s19, 512  ;;  %s3016_s6 = scalar_lea.hbm %s5793_s4, 1024 }
 0x5f0   : > { %p3013_p9 = scmp.ne.s32.totalorder %s5740_s19, %s3012_s11  ;;  %p3017_p5 = scmp.lt.u32.totalorder %s5740_s19, %s5793_s4 }
 0x5f1   : > { %p3018_p11 = scmp.lt.u32.totalorder %s3016_s6, %s3012_s11  ;;  %p3020_p4 = scmp.lt.u32.totalorder %s3012_s11, %s5740_s19 }
 0x5f2   : > { %p3014_p2 = pnand %p3013_p9, %p3246_p12 }
 0x5f3   : > { %p3019_p1 = por %p3018_p11, %p3017_p5 }
 0x5f4   : > { %p3015_p0 = pneg %p3014_p2 }
 0x5f5   : > { %p3021_p6 = por %p3020_p4, %p3019_p1 }
 0x5f7   : > { %p3022_p8 = pnand %p3021_p6, %p3015_p0 }
 0x5f9   : > { %3025 = shalt.err (!%p3022_p8)
}
 0x5fa   : > { %s3129_s5 = smov 256  }
 0x5fb   : > { %2810 = dma.vmem_to_hbm [thread:$0]  (%p3246_p12), %s5744_s7, 512, %s5740_s19, %s2661_s8, %s3129_s5, %s3129_s5, %s6053_s21  }
 0x5fc PF: > { %s2689_s10 = sand.u32 1, %s3056_s15   ;;  %p6464_p10 = scmp.ne.s32.totalorder %s5982_s22, 0 }
 0x5fd   : > { %p6465_p13 = scmp.ge.s32.totalorder %s3068_s18, 2  ;;  %s2690_s26 = scalar_lea.sflag [#allocation4], %s2689_s10 }
 0x5ff   : > { %p2821_p3 = pnand %p6465_p13, %p6464_p10 }
 0x601   : > { %3051 = dma.done.wait (!%p2821_p3), %s2690_s26, 512  }
 0x602   : > { %3053 = vsyncadd (!%p2821_p3), %s2690_s26, 4294966784  ;;  %p18_p7 = scmp.ge.s32.totalorder %s3211_s27, 4   ;;  %s6466_s15 = smov %s3060_s16 }
 0x603   : > { %s6467_s16 = smov %s3064_s17  ;;  %s6468_s17 = smov %s3242_s24 }
 0x604   : > { %s6469_s18 = smov %s3211_s27  ;;  %20 = sbr.rel (!%p18_p7) target bundleno = 6 (0x6), region = 133 }
 0x60b   :  { %2695 = vsyncpa [#allocation3], 1 }
 0x60c   :  { %2697 = vsyncpa [#allocation3 + $0x1], 1 }
 0x60d   :  { %2698 = vsyncpa [#allocation6], 1 }
 0x60e   :  { %2699 = vsyncpa [#allocation4], 1 }
 0x60f   :  { %2701 = vsyncpa [#allocation4 + $0x1], 1 }

</bundles_post_ra>
